<compile_context>
chip_gen: v6e
topology: v6e:2x2x1
jax: 0.10.0
libtpu: 0.0.40
codegen_flags: <defaults>
</compile_context>

<pallas_src>
import jax
import jax.numpy as jnp
from jax.experimental import pallas as pl
from jax.experimental.pallas import tpu as pltpu

# ---------------- config (small, consistent with the module) ----------------
NUM_LAYERS   = 3
NUM_BLOCKS   = 2
L_TOTAL      = NUM_LAYERS * NUM_BLOCKS
KERNEL_SIZE  = 2
RESIDUAL_CH  = 32
DILATION_CH  = 32
SKIP_CH      = 64
CLASSES      = 64
COND_CH      = 16
T            = 128
B            = 2
BT           = B * T


# ------------------------------- Pallas kernel -------------------------------
def wavenet_kernel(x_ref, h_ref, wstart_ref, wdil01T_ref, wfgT_ref, vcondT_ref,
                   wresT_ref, wend1T_ref, wend2T_ref, out_ref):
    x = x_ref[...]                                   # [1, BT]
    h = h_ref[...]                                   # [COND_CH, BT]

    # start_conv: 1x1 conv, 1 -> R channels, bias=False  -> outer-product
    # broadcast on the VPU (no K=1 matmul).
    residual = wstart_ref[...] * x                   # [R,1] * [1,BT] -> [R,BT]
    skips = jnp.zeros_like(residual)                 # torch.zeros_like(residual)

    # Conditioning for every layer and both gates in ONE matmul (hoisted).
    h_cond = jnp.dot(vcondT_ref[...], h,
                     preferred_element_type=jnp.float32)   # [L*2D, BT]

    # Mask marking the first time step of every length-T batch chunk (the
    # causal left-pad position); hoisted out of the layer loop.
    col = jax.lax.broadcasted_iota(jnp.int32, (DILATION_CH, BT), 1)
    chunk_start = (col % T) == 0

    for l in range(L_TOTAL):
        # dilation stays 1: the module never multiplies it inside the loop.
        # Both conv taps in one matmul; rows [0:D) = tap@t-1, rows [D:2D) = tap@t.
        z01 = jnp.dot(wdil01T_ref[l], residual,
                      preferred_element_type=jnp.float32)      # [2D, BT]
        # Causal shift applied to the tap-0 matmul output (equivalent to
        # shifting the input): XLU roll + one VPU select, no concat buffers.
        z_shift = jnp.where(chunk_start, 0.0,
                            pltpu.roll(z01[:DILATION_CH], shift=1, axis=1))
        z = z_shift + z01[DILATION_CH:]                          # [D, BT]

        # Gated activation unit: fused [wf; wg] weight + hoisted conditioning.
        pre = (jnp.dot(wfgT_ref[l], z, preferred_element_type=jnp.float32)
               + h_cond[l * 2 * DILATION_CH:(l + 1) * 2 * DILATION_CH])  # [2D, BT]
        gated = jnp.tanh(pre[:DILATION_CH]) * jax.nn.sigmoid(pre[DILATION_CH:])

        # 1x1 conv back to residual channels (bias=False).
        layer_out = jnp.dot(wresT_ref[l], gated,
                            preferred_element_type=jnp.float32)  # [R, BT]
        residual = residual + layer_out
        skips = skips + layer_out

    # end_conv: ReLU -> 1x1 (R->S) -> ReLU -> 1x1 (S->classes), bias=False.
    y = jnp.dot(wend1T_ref[...], jax.nn.relu(skips),
                preferred_element_type=jnp.float32)              # [S, BT]
    out_ref[...] = jnp.dot(wend2T_ref[...], jax.nn.relu(y),
                           preferred_element_type=jnp.float32)   # [CLASSES, BT]


# --------------------------------- wrapper -----------------------------------
def _full_spec(shape):
    nd = len(shape)
    return pl.BlockSpec(shape, lambda i, _nd=nd: (0,) * _nd)


@jax.jit
def wavenet_forward(x_ncl, h_ncl, params):
    """x_ncl: [B, 1, T]  h_ncl: [B, COND_CH, T]  ->  logits [B, CLASSES, T]."""
    (wstart, wdil, wf, wg, vf, vg, wres, wend1, wend2) = params

    # ---- channel-major inputs with batch folded into the lane (time) axis
    x_cm = x_ncl.astype(jnp.float32).reshape(1, BT)                    # [1, BT]
    h_cm = jnp.transpose(h_ncl.astype(jnp.float32),
                         (1, 0, 2)).reshape(COND_CH, BT)               # [C, BT]

    # ---- pack / transpose weights once in the wrapper (layout plumbing)
    wstart_cm = jnp.transpose(wstart)                                  # [R, 1]
    wdil01T = jnp.transpose(wdil, (0, 1, 3, 2)).reshape(
        L_TOTAL, KERNEL_SIZE * DILATION_CH, RESIDUAL_CH)               # [L, 2D, R]
    wfgT = jnp.concatenate(
        [jnp.transpose(wf, (0, 2, 1)), jnp.transpose(wg, (0, 2, 1))],
        axis=1)                                                        # [L, 2D, D]
    vcondT = jnp.concatenate(
        [jnp.transpose(vf, (0, 2, 1)), jnp.transpose(vg, (0, 2, 1))],
        axis=1).reshape(L_TOTAL * 2 * DILATION_CH, COND_CH)            # [L*2D, C]
    wresT = jnp.transpose(wres, (0, 2, 1))                             # [L, R, D]
    wend1T = jnp.transpose(wend1)                                      # [S, R]
    wend2T = jnp.transpose(wend2)                                      # [CLASSES, S]

    args = (x_cm, h_cm, wstart_cm, wdil01T, wfgT, vcondT, wresT, wend1T, wend2T)

    out_cm = pl.pallas_call(
        wavenet_kernel,
        out_shape=jax.ShapeDtypeStruct((CLASSES, BT), jnp.float32),
        grid=(1,),
        in_specs=[_full_spec(a.shape) for a in args],
        out_specs=_full_spec((CLASSES, BT)),
        compiler_params=pltpu.CompilerParams(
            dimension_semantics=("arbitrary",)),
    )(*args)

    # back to PyTorch NCL layout
    return jnp.transpose(out_cm.reshape(CLASSES, B, T), (1, 0, 2))     # [B, CLASSES, T]


# --------------------------- pure-JAX reference -------------------------------
def wavenet_reference(x_ncl, h_ncl, params):
    (wstart, wdil, wf, wg, vf, vg, wres, wend1, wend2) = params
    x = jnp.transpose(x_ncl, (0, 2, 1)).astype(jnp.float32)
    h = jnp.transpose(h_ncl, (0, 2, 1)).astype(jnp.float32)
    residual = x * wstart[None]                                # [B, T, R]
    skips = jnp.zeros_like(residual)
    for l in range(L_TOTAL):
        dilation = 1
        x_shift = jnp.concatenate(
            [jnp.zeros((B, dilation, RESIDUAL_CH), jnp.float32),
             residual[:, :T - dilation]], axis=1)
        z = x_shift @ wdil[l, 0] + residual @ wdil[l, 1]
        f = jnp.tanh(z @ wf[l] + h @ vf[l])
        g = jax.nn.sigmoid(z @ wg[l] + h @ vg[l])
        layer_out = (f * g) @ wres[l]
        residual = residual + layer_out
        skips = skips + layer_out
    y = jax.nn.relu(skips) @ wend1
    y = jax.nn.relu(y) @ wend2
    return jnp.transpose(y, (0, 2, 1))


# ----------------------------------- main -------------------------------------
if __name__ == "__main__":
    key = jax.random.PRNGKey(0)
    ks = jax.random.split(key, 12)

    # Deterministic synthetic parameters (bias=False throughout, per module).
    wstart = jax.random.normal(ks[0], (1, RESIDUAL_CH), jnp.float32) * 0.3
    wdil   = jax.random.normal(ks[1], (L_TOTAL, KERNEL_SIZE, RESIDUAL_CH, DILATION_CH),
                               jnp.float32) * 0.1
    wf     = jax.random.normal(ks[2], (L_TOTAL, DILATION_CH, DILATION_CH), jnp.float32) * 0.1
    wg     = jax.random.normal(ks[3], (L_TOTAL, DILATION_CH, DILATION_CH), jnp.float32) * 0.1
    vf     = jax.random.normal(ks[4], (L_TOTAL, COND_CH, DILATION_CH), jnp.float32) * 0.1
    vg     = jax.random.normal(ks[5], (L_TOTAL, COND_CH, DILATION_CH), jnp.float32) * 0.1
    wres   = jax.random.normal(ks[6], (L_TOTAL, DILATION_CH, RESIDUAL_CH), jnp.float32) * 0.1
    wend1  = jax.random.normal(ks[7], (RESIDUAL_CH, SKIP_CH), jnp.float32) * 0.1
    wend2  = jax.random.normal(ks[8], (SKIP_CH, CLASSES), jnp.float32) * 0.1
    params = (wstart, wdil, wf, wg, vf, vg, wres, wend1, wend2)

    # Inputs in PyTorch NCL layout.
    x = jax.random.normal(ks[9], (B, 1, T), jnp.float32)
    h = jax.random.normal(ks[10], (B, COND_CH, T), jnp.float32)

    out = wavenet_forward(x, h, params)
    out = jax.block_until_ready(out)

    ref = wavenet_reference(x, h, params)
    assert out.shape == (B, CLASSES, T), out.shape
    assert jnp.allclose(out, ref, atol=5e-4, rtol=5e-4), "mismatch vs JAX reference"

    print("KERNEL_OK")
</pallas_src>

<mosaic_0001>
module attributes {stable_mosaic.version = 11 : i64} {
  func.func @wavenet_kernel(%arg0: i32, %arg1: memref<1x256xf32, #tpu.memory_space<vmem>>, %arg2: memref<16x256xf32, #tpu.memory_space<vmem>>, %arg3: memref<32x1xf32, #tpu.memory_space<vmem>>, %arg4: memref<6x64x32xf32, #tpu.memory_space<vmem>>, %arg5: memref<6x64x32xf32, #tpu.memory_space<vmem>>, %arg6: memref<384x16xf32, #tpu.memory_space<vmem>>, %arg7: memref<6x32x32xf32, #tpu.memory_space<vmem>>, %arg8: memref<64x32xf32, #tpu.memory_space<vmem>>, %arg9: memref<64x64xf32, #tpu.memory_space<vmem>>, %arg10: memref<64x256xf32, #tpu.memory_space<vmem>>) attributes {dimension_semantics = [#tpu.dimension_semantics<arbitrary>], iteration_bounds = array<i64: 1>, scalar_prefetch = 0 : i64, scratch_operands = 0 : i64, tpu.core_type = #tpu.core_type<tc>, window_params = [{pipeline_mode = #tpu.pipeline_mode<synchronous>, transform_indices = @transform_0, window_bounds = array<i64: 1, 256>}, {pipeline_mode = #tpu.pipeline_mode<synchronous>, transform_indices = @transform_1, window_bounds = array<i64: 16, 256>}, {pipeline_mode = #tpu.pipeline_mode<synchronous>, transform_indices = @transform_2, window_bounds = array<i64: 32, 1>}, {pipeline_mode = #tpu.pipeline_mode<synchronous>, transform_indices = @transform_3, window_bounds = array<i64: 6, 64, 32>}, {pipeline_mode = #tpu.pipeline_mode<synchronous>, transform_indices = @transform_4, window_bounds = array<i64: 6, 64, 32>}, {pipeline_mode = #tpu.pipeline_mode<synchronous>, transform_indices = @transform_5, window_bounds = array<i64: 384, 16>}, {pipeline_mode = #tpu.pipeline_mode<synchronous>, transform_indices = @transform_6, window_bounds = array<i64: 6, 32, 32>}, {pipeline_mode = #tpu.pipeline_mode<synchronous>, transform_indices = @transform_7, window_bounds = array<i64: 64, 32>}, {pipeline_mode = #tpu.pipeline_mode<synchronous>, transform_indices = @transform_8, window_bounds = array<i64: 64, 64>}, {pipeline_mode = #tpu.pipeline_mode<synchronous>, transform_indices = @transform_9, window_bounds = array<i64: 64, 256>}]} {
    %c0 = arith.constant 0 : index
    %c0_0 = arith.constant 0 : index
    %0 = vector.load %arg1[%c0, %c0_0] : memref<1x256xf32, #tpu.memory_space<vmem>>, vector<1x256xf32>
    %c0_1 = arith.constant 0 : index
    %c0_2 = arith.constant 0 : index
    %1 = vector.load %arg2[%c0_1, %c0_2] : memref<16x256xf32, #tpu.memory_space<vmem>>, vector<16x256xf32>
    %c0_3 = arith.constant 0 : index
    %c0_4 = arith.constant 0 : index
    %2 = vector.load %arg3[%c0_3, %c0_4] : memref<32x1xf32, #tpu.memory_space<vmem>>, vector<32x1xf32>
    %3 = vector.broadcast %2 : vector<32x1xf32> to vector<32x256xf32>
    %4 = vector.broadcast %0 : vector<1x256xf32> to vector<32x256xf32>
    %5 = arith.mulf %3, %4 : vector<32x256xf32>
    %cst = arith.constant 0.000000e+00 : f32
    %6 = vector.broadcast %cst : f32 to vector<32x256xf32>
    %c0_5 = arith.constant 0 : index
    %c0_6 = arith.constant 0 : index
    %7 = vector.load %arg6[%c0_5, %c0_6] : memref<384x16xf32, #tpu.memory_space<vmem>>, vector<384x16xf32>
    %cst_7 = arith.constant dense<0.000000e+00> : vector<384x256xf32>
    %8 = tpu.matmul %7, %1, %cst_7 {dimension_numbers = #tpu.dot_dimension_numbers<[1], [0], [0], [1], [0, 0, 1, 1], [], []>} : vector<384x16xf32>, vector<16x256xf32>, vector<384x256xf32> -> vector<384x256xf32>
    %9 = tpu.iota {dimensions = array<i32: 1>} : vector<32x256xi32>
    %c128_i32 = arith.constant 128 : i32
    %c0_i32 = arith.constant 0 : i32
    %10 = arith.cmpi eq, %c128_i32, %c0_i32 : i32
    %c1_i32 = arith.constant 1 : i32
    %11 = arith.select %10, %c1_i32, %c128_i32 : i32
    %12 = vector.broadcast %11 : i32 to vector<32x256xi32>
    %13 = arith.remsi %9, %12 : vector<32x256xi32>
    %c0_i32_8 = arith.constant 0 : i32
    %14 = vector.broadcast %c0_i32_8 : i32 to vector<32x256xi32>
    %15 = arith.cmpi ne, %13, %14 : vector<32x256xi32>
    %c0_i32_9 = arith.constant 0 : i32
    %16 = vector.broadcast %c0_i32_9 : i32 to vector<32x256xi32>
    %17 = arith.cmpi slt, %13, %16 : vector<32x256xi32>
    %c0_i32_10 = arith.constant 0 : i32
    %18 = arith.cmpi slt, %11, %c0_i32_10 : i32
    %19 = vector.broadcast %18 : i1 to vector<32x256xi1>
    %20 = vector.broadcast %19 : vector<32x256xi1> to vector<32x256xi1>
    %21 = arith.xori %17, %20 : vector<32x256xi1>
    %22 = arith.andi %21, %15 : vector<32x256xi1>
    %23 = vector.broadcast %11 : i32 to vector<32x256xi32>
    %24 = arith.addi %13, %23 : vector<32x256xi32>
    %25 = arith.select %22, %24, %13 : vector<32x256xi1>, vector<32x256xi32>
    %c0_i32_11 = arith.constant 0 : i32
    %26 = vector.broadcast %c0_i32_11 : i32 to vector<32x256xi32>
    %27 = arith.cmpi eq, %25, %26 : vector<32x256xi32>
    %c0_12 = arith.constant 0 : index
    %c0_13 = arith.constant 0 : index
    %c0_14 = arith.constant 0 : index
    %28 = vector.load %arg4[%c0_12, %c0_13, %c0_14] : memref<6x64x32xf32, #tpu.memory_space<vmem>>, vector<1x64x32xf32>
    %29 = vector.shape_cast %28 : vector<1x64x32xf32> to vector<64x32xf32>
    %cst_15 = arith.constant dense<0.000000e+00> : vector<64x256xf32>
    %30 = tpu.matmul %29, %5, %cst_15 {dimension_numbers = #tpu.dot_dimension_numbers<[1], [0], [0], [1], [0, 0, 1, 1], [], []>} : vector<64x32xf32>, vector<32x256xf32>, vector<64x256xf32> -> vector<64x256xf32>
    %31 = vector.extract_strided_slice %30 {offsets = [0, 0], sizes = [32, 256], strides = [1, 1]} : vector<64x256xf32> to vector<32x256xf32>
    %c1_i32_16 = arith.constant 1 : i32
    %32 = tpu.dynamic_rotate %31 by %c1_i32_16 dim 1 : vector<32x256xf32>, i32 -> vector<32x256xf32>
    %cst_17 = arith.constant 0.000000e+00 : f32
    %33 = vector.broadcast %cst_17 : f32 to vector<32x256xf32>
    %34 = arith.select %27, %33, %32 : vector<32x256xi1>, vector<32x256xf32>
    %35 = vector.extract_strided_slice %30 {offsets = [32, 0], sizes = [32, 256], strides = [1, 1]} : vector<64x256xf32> to vector<32x256xf32>
    %36 = arith.addf %34, %35 : vector<32x256xf32>
    %c0_18 = arith.constant 0 : index
    %c0_19 = arith.constant 0 : index
    %c0_20 = arith.constant 0 : index
    %37 = vector.load %arg5[%c0_18, %c0_19, %c0_20] : memref<6x64x32xf32, #tpu.memory_space<vmem>>, vector<1x64x32xf32>
    %38 = vector.shape_cast %37 : vector<1x64x32xf32> to vector<64x32xf32>
    %cst_21 = arith.constant dense<0.000000e+00> : vector<64x256xf32>
    %39 = tpu.matmul %38, %36, %cst_21 {dimension_numbers = #tpu.dot_dimension_numbers<[1], [0], [0], [1], [0, 0, 1, 1], [], []>} : vector<64x32xf32>, vector<32x256xf32>, vector<64x256xf32> -> vector<64x256xf32>
    %40 = vector.extract_strided_slice %8 {offsets = [0, 0], sizes = [64, 256], strides = [1, 1]} : vector<384x256xf32> to vector<64x256xf32>
    %41 = arith.addf %39, %40 : vector<64x256xf32>
    %42 = vector.extract_strided_slice %41 {offsets = [0, 0], sizes = [32, 256], strides = [1, 1]} : vector<64x256xf32> to vector<32x256xf32>
    %43 = math.tanh %42 : vector<32x256xf32>
    %44 = vector.extract_strided_slice %41 {offsets = [32, 0], sizes = [32, 256], strides = [1, 1]} : vector<64x256xf32> to vector<32x256xf32>
    %45 = arith.negf %44 : vector<32x256xf32>
    %46 = math.exp %45 : vector<32x256xf32>
    %cst_22 = arith.constant 1.000000e+00 : f32
    %47 = vector.broadcast %cst_22 : f32 to vector<32x256xf32>
    %48 = arith.addf %47, %46 : vector<32x256xf32>
    %49 = arith.divf %47, %48 : vector<32x256xf32>
    %50 = arith.mulf %43, %49 : vector<32x256xf32>
    %c0_23 = arith.constant 0 : index
    %c0_24 = arith.constant 0 : index
    %c0_25 = arith.constant 0 : index
    %51 = vector.load %arg7[%c0_23, %c0_24, %c0_25] : memref<6x32x32xf32, #tpu.memory_space<vmem>>, vector<1x32x32xf32>
    %52 = vector.shape_cast %51 : vector<1x32x32xf32> to vector<32x32xf32>
    %cst_26 = arith.constant dense<0.000000e+00> : vector<32x256xf32>
    %53 = tpu.matmul %52, %50, %cst_26 {dimension_numbers = #tpu.dot_dimension_numbers<[1], [0], [0], [1], [0, 0, 1, 1], [], []>} : vector<32x32xf32>, vector<32x256xf32>, vector<32x256xf32> -> vector<32x256xf32>
    %54 = arith.addf %5, %53 : vector<32x256xf32>
    %55 = arith.addf %6, %53 : vector<32x256xf32>
    %c1 = arith.constant 1 : index
    %c0_27 = arith.constant 0 : index
    %c0_28 = arith.constant 0 : index
    %56 = vector.load %arg4[%c1, %c0_27, %c0_28] : memref<6x64x32xf32, #tpu.memory_space<vmem>>, vector<1x64x32xf32>
    %57 = vector.shape_cast %56 : vector<1x64x32xf32> to vector<64x32xf32>
    %cst_29 = arith.constant dense<0.000000e+00> : vector<64x256xf32>
    %58 = tpu.matmul %57, %54, %cst_29 {dimension_numbers = #tpu.dot_dimension_numbers<[1], [0], [0], [1], [0, 0, 1, 1], [], []>} : vector<64x32xf32>, vector<32x256xf32>, vector<64x256xf32> -> vector<64x256xf32>
    %59 = vector.extract_strided_slice %58 {offsets = [0, 0], sizes = [32, 256], strides = [1, 1]} : vector<64x256xf32> to vector<32x256xf32>
    %c1_i32_30 = arith.constant 1 : i32
    %60 = tpu.dynamic_rotate %59 by %c1_i32_30 dim 1 : vector<32x256xf32>, i32 -> vector<32x256xf32>
    %cst_31 = arith.constant 0.000000e+00 : f32
    %61 = vector.broadcast %cst_31 : f32 to vector<32x256xf32>
    %62 = arith.select %27, %61, %60 : vector<32x256xi1>, vector<32x256xf32>
    %63 = vector.extract_strided_slice %58 {offsets = [32, 0], sizes = [32, 256], strides = [1, 1]} : vector<64x256xf32> to vector<32x256xf32>
    %64 = arith.addf %62, %63 : vector<32x256xf32>
    %c1_32 = arith.constant 1 : index
    %c0_33 = arith.constant 0 : index
    %c0_34 = arith.constant 0 : index
    %65 = vector.load %arg5[%c1_32, %c0_33, %c0_34] : memref<6x64x32xf32, #tpu.memory_space<vmem>>, vector<1x64x32xf32>
    %66 = vector.shape_cast %65 : vector<1x64x32xf32> to vector<64x32xf32>
    %cst_35 = arith.constant dense<0.000000e+00> : vector<64x256xf32>
    %67 = tpu.matmul %66, %64, %cst_35 {dimension_numbers = #tpu.dot_dimension_numbers<[1], [0], [0], [1], [0, 0, 1, 1], [], []>} : vector<64x32xf32>, vector<32x256xf32>, vector<64x256xf32> -> vector<64x256xf32>
    %68 = vector.extract_strided_slice %8 {offsets = [64, 0], sizes = [64, 256], strides = [1, 1]} : vector<384x256xf32> to vector<64x256xf32>
    %69 = arith.addf %67, %68 : vector<64x256xf32>
    %70 = vector.extract_strided_slice %69 {offsets = [0, 0], sizes = [32, 256], strides = [1, 1]} : vector<64x256xf32> to vector<32x256xf32>
    %71 = math.tanh %70 : vector<32x256xf32>
    %72 = vector.extract_strided_slice %69 {offsets = [32, 0], sizes = [32, 256], strides = [1, 1]} : vector<64x256xf32> to vector<32x256xf32>
    %73 = arith.negf %72 : vector<32x256xf32>
    %74 = math.exp %73 : vector<32x256xf32>
    %cst_36 = arith.constant 1.000000e+00 : f32
    %75 = vector.broadcast %cst_36 : f32 to vector<32x256xf32>
    %76 = arith.addf %75, %74 : vector<32x256xf32>
    %77 = arith.divf %75, %76 : vector<32x256xf32>
    %78 = arith.mulf %71, %77 : vector<32x256xf32>
    %c1_37 = arith.constant 1 : index
    %c0_38 = arith.constant 0 : index
    %c0_39 = arith.constant 0 : index
    %79 = vector.load %arg7[%c1_37, %c0_38, %c0_39] : memref<6x32x32xf32, #tpu.memory_space<vmem>>, vector<1x32x32xf32>
    %80 = vector.shape_cast %79 : vector<1x32x32xf32> to vector<32x32xf32>
    %cst_40 = arith.constant dense<0.000000e+00> : vector<32x256xf32>
    %81 = tpu.matmul %80, %78, %cst_40 {dimension_numbers = #tpu.dot_dimension_numbers<[1], [0], [0], [1], [0, 0, 1, 1], [], []>} : vector<32x32xf32>, vector<32x256xf32>, vector<32x256xf32> -> vector<32x256xf32>
    %82 = arith.addf %54, %81 : vector<32x256xf32>
    %83 = arith.addf %55, %81 : vector<32x256xf32>
    %c2 = arith.constant 2 : index
    %c0_41 = arith.constant 0 : index
    %c0_42 = arith.constant 0 : index
    %84 = vector.load %arg4[%c2, %c0_41, %c0_42] : memref<6x64x32xf32, #tpu.memory_space<vmem>>, vector<1x64x32xf32>
    %85 = vector.shape_cast %84 : vector<1x64x32xf32> to vector<64x32xf32>
    %cst_43 = arith.constant dense<0.000000e+00> : vector<64x256xf32>
    %86 = tpu.matmul %85, %82, %cst_43 {dimension_numbers = #tpu.dot_dimension_numbers<[1], [0], [0], [1], [0, 0, 1, 1], [], []>} : vector<64x32xf32>, vector<32x256xf32>, vector<64x256xf32> -> vector<64x256xf32>
    %87 = vector.extract_strided_slice %86 {offsets = [0, 0], sizes = [32, 256], strides = [1, 1]} : vector<64x256xf32> to vector<32x256xf32>
    %c1_i32_44 = arith.constant 1 : i32
    %88 = tpu.dynamic_rotate %87 by %c1_i32_44 dim 1 : vector<32x256xf32>, i32 -> vector<32x256xf32>
    %cst_45 = arith.constant 0.000000e+00 : f32
    %89 = vector.broadcast %cst_45 : f32 to vector<32x256xf32>
    %90 = arith.select %27, %89, %88 : vector<32x256xi1>, vector<32x256xf32>
    %91 = vector.extract_strided_slice %86 {offsets = [32, 0], sizes = [32, 256], strides = [1, 1]} : vector<64x256xf32> to vector<32x256xf32>
    %92 = arith.addf %90, %91 : vector<32x256xf32>
    %c2_46 = arith.constant 2 : index
    %c0_47 = arith.constant 0 : index
    %c0_48 = arith.constant 0 : index
    %93 = vector.load %arg5[%c2_46, %c0_47, %c0_48] : memref<6x64x32xf32, #tpu.memory_space<vmem>>, vector<1x64x32xf32>
    %94 = vector.shape_cast %93 : vector<1x64x32xf32> to vector<64x32xf32>
    %cst_49 = arith.constant dense<0.000000e+00> : vector<64x256xf32>
    %95 = tpu.matmul %94, %92, %cst_49 {dimension_numbers = #tpu.dot_dimension_numbers<[1], [0], [0], [1], [0, 0, 1, 1], [], []>} : vector<64x32xf32>, vector<32x256xf32>, vector<64x256xf32> -> vector<64x256xf32>
    %96 = vector.extract_strided_slice %8 {offsets = [128, 0], sizes = [64, 256], strides = [1, 1]} : vector<384x256xf32> to vector<64x256xf32>
    %97 = arith.addf %95, %96 : vector<64x256xf32>
    %98 = vector.extract_strided_slice %97 {offsets = [0, 0], sizes = [32, 256], strides = [1, 1]} : vector<64x256xf32> to vector<32x256xf32>
    %99 = math.tanh %98 : vector<32x256xf32>
    %100 = vector.extract_strided_slice %97 {offsets = [32, 0], sizes = [32, 256], strides = [1, 1]} : vector<64x256xf32> to vector<32x256xf32>
    %101 = arith.negf %100 : vector<32x256xf32>
    %102 = math.exp %101 : vector<32x256xf32>
    %cst_50 = arith.constant 1.000000e+00 : f32
    %103 = vector.broadcast %cst_50 : f32 to vector<32x256xf32>
    %104 = arith.addf %103, %102 : vector<32x256xf32>
    %105 = arith.divf %103, %104 : vector<32x256xf32>
    %106 = arith.mulf %99, %105 : vector<32x256xf32>
    %c2_51 = arith.constant 2 : index
    %c0_52 = arith.constant 0 : index
    %c0_53 = arith.constant 0 : index
    %107 = vector.load %arg7[%c2_51, %c0_52, %c0_53] : memref<6x32x32xf32, #tpu.memory_space<vmem>>, vector<1x32x32xf32>
    %108 = vector.shape_cast %107 : vector<1x32x32xf32> to vector<32x32xf32>
    %cst_54 = arith.constant dense<0.000000e+00> : vector<32x256xf32>
    %109 = tpu.matmul %108, %106, %cst_54 {dimension_numbers = #tpu.dot_dimension_numbers<[1], [0], [0], [1], [0, 0, 1, 1], [], []>} : vector<32x32xf32>, vector<32x256xf32>, vector<32x256xf32> -> vector<32x256xf32>
    %110 = arith.addf %82, %109 : vector<32x256xf32>
    %111 = arith.addf %83, %109 : vector<32x256xf32>
    %c3 = arith.constant 3 : index
    %c0_55 = arith.constant 0 : index
    %c0_56 = arith.constant 0 : index
    %112 = vector.load %arg4[%c3, %c0_55, %c0_56] : memref<6x64x32xf32, #tpu.memory_space<vmem>>, vector<1x64x32xf32>
    %113 = vector.shape_cast %112 : vector<1x64x32xf32> to vector<64x32xf32>
    %cst_57 = arith.constant dense<0.000000e+00> : vector<64x256xf32>
    %114 = tpu.matmul %113, %110, %cst_57 {dimension_numbers = #tpu.dot_dimension_numbers<[1], [0], [0], [1], [0, 0, 1, 1], [], []>} : vector<64x32xf32>, vector<32x256xf32>, vector<64x256xf32> -> vector<64x256xf32>
    %115 = vector.extract_strided_slice %114 {offsets = [0, 0], sizes = [32, 256], strides = [1, 1]} : vector<64x256xf32> to vector<32x256xf32>
    %c1_i32_58 = arith.constant 1 : i32
    %116 = tpu.dynamic_rotate %115 by %c1_i32_58 dim 1 : vector<32x256xf32>, i32 -> vector<32x256xf32>
    %cst_59 = arith.constant 0.000000e+00 : f32
    %117 = vector.broadcast %cst_59 : f32 to vector<32x256xf32>
    %118 = arith.select %27, %117, %116 : vector<32x256xi1>, vector<32x256xf32>
    %119 = vector.extract_strided_slice %114 {offsets = [32, 0], sizes = [32, 256], strides = [1, 1]} : vector<64x256xf32> to vector<32x256xf32>
    %120 = arith.addf %118, %119 : vector<32x256xf32>
    %c3_60 = arith.constant 3 : index
    %c0_61 = arith.constant 0 : index
    %c0_62 = arith.constant 0 : index
    %121 = vector.load %arg5[%c3_60, %c0_61, %c0_62] : memref<6x64x32xf32, #tpu.memory_space<vmem>>, vector<1x64x32xf32>
    %122 = vector.shape_cast %121 : vector<1x64x32xf32> to vector<64x32xf32>
    %cst_63 = arith.constant dense<0.000000e+00> : vector<64x256xf32>
    %123 = tpu.matmul %122, %120, %cst_63 {dimension_numbers = #tpu.dot_dimension_numbers<[1], [0], [0], [1], [0, 0, 1, 1], [], []>} : vector<64x32xf32>, vector<32x256xf32>, vector<64x256xf32> -> vector<64x256xf32>
    %124 = vector.extract_strided_slice %8 {offsets = [192, 0], sizes = [64, 256], strides = [1, 1]} : vector<384x256xf32> to vector<64x256xf32>
    %125 = arith.addf %123, %124 : vector<64x256xf32>
    %126 = vector.extract_strided_slice %125 {offsets = [0, 0], sizes = [32, 256], strides = [1, 1]} : vector<64x256xf32> to vector<32x256xf32>
    %127 = math.tanh %126 : vector<32x256xf32>
    %128 = vector.extract_strided_slice %125 {offsets = [32, 0], sizes = [32, 256], strides = [1, 1]} : vector<64x256xf32> to vector<32x256xf32>
    %129 = arith.negf %128 : vector<32x256xf32>
    %130 = math.exp %129 : vector<32x256xf32>
    %cst_64 = arith.constant 1.000000e+00 : f32
    %131 = vector.broadcast %cst_64 : f32 to vector<32x256xf32>
    %132 = arith.addf %131, %130 : vector<32x256xf32>
    %133 = arith.divf %131, %132 : vector<32x256xf32>
    %134 = arith.mulf %127, %133 : vector<32x256xf32>
    %c3_65 = arith.constant 3 : index
    %c0_66 = arith.constant 0 : index
    %c0_67 = arith.constant 0 : index
    %135 = vector.load %arg7[%c3_65, %c0_66, %c0_67] : memref<6x32x32xf32, #tpu.memory_space<vmem>>, vector<1x32x32xf32>
    %136 = vector.shape_cast %135 : vector<1x32x32xf32> to vector<32x32xf32>
    %cst_68 = arith.constant dense<0.000000e+00> : vector<32x256xf32>
    %137 = tpu.matmul %136, %134, %cst_68 {dimension_numbers = #tpu.dot_dimension_numbers<[1], [0], [0], [1], [0, 0, 1, 1], [], []>} : vector<32x32xf32>, vector<32x256xf32>, vector<32x256xf32> -> vector<32x256xf32>
    %138 = arith.addf %110, %137 : vector<32x256xf32>
    %139 = arith.addf %111, %137 : vector<32x256xf32>
    %c4 = arith.constant 4 : index
    %c0_69 = arith.constant 0 : index
    %c0_70 = arith.constant 0 : index
    %140 = vector.load %arg4[%c4, %c0_69, %c0_70] : memref<6x64x32xf32, #tpu.memory_space<vmem>>, vector<1x64x32xf32>
    %141 = vector.shape_cast %140 : vector<1x64x32xf32> to vector<64x32xf32>
    %cst_71 = arith.constant dense<0.000000e+00> : vector<64x256xf32>
    %142 = tpu.matmul %141, %138, %cst_71 {dimension_numbers = #tpu.dot_dimension_numbers<[1], [0], [0], [1], [0, 0, 1, 1], [], []>} : vector<64x32xf32>, vector<32x256xf32>, vector<64x256xf32> -> vector<64x256xf32>
    %143 = vector.extract_strided_slice %142 {offsets = [0, 0], sizes = [32, 256], strides = [1, 1]} : vector<64x256xf32> to vector<32x256xf32>
    %c1_i32_72 = arith.constant 1 : i32
    %144 = tpu.dynamic_rotate %143 by %c1_i32_72 dim 1 : vector<32x256xf32>, i32 -> vector<32x256xf32>
    %cst_73 = arith.constant 0.000000e+00 : f32
    %145 = vector.broadcast %cst_73 : f32 to vector<32x256xf32>
    %146 = arith.select %27, %145, %144 : vector<32x256xi1>, vector<32x256xf32>
    %147 = vector.extract_strided_slice %142 {offsets = [32, 0], sizes = [32, 256], strides = [1, 1]} : vector<64x256xf32> to vector<32x256xf32>
    %148 = arith.addf %146, %147 : vector<32x256xf32>
    %c4_74 = arith.constant 4 : index
    %c0_75 = arith.constant 0 : index
    %c0_76 = arith.constant 0 : index
    %149 = vector.load %arg5[%c4_74, %c0_75, %c0_76] : memref<6x64x32xf32, #tpu.memory_space<vmem>>, vector<1x64x32xf32>
    %150 = vector.shape_cast %149 : vector<1x64x32xf32> to vector<64x32xf32>
    %cst_77 = arith.constant dense<0.000000e+00> : vector<64x256xf32>
    %151 = tpu.matmul %150, %148, %cst_77 {dimension_numbers = #tpu.dot_dimension_numbers<[1], [0], [0], [1], [0, 0, 1, 1], [], []>} : vector<64x32xf32>, vector<32x256xf32>, vector<64x256xf32> -> vector<64x256xf32>
    %152 = vector.extract_strided_slice %8 {offsets = [256, 0], sizes = [64, 256], strides = [1, 1]} : vector<384x256xf32> to vector<64x256xf32>
    %153 = arith.addf %151, %152 : vector<64x256xf32>
    %154 = vector.extract_strided_slice %153 {offsets = [0, 0], sizes = [32, 256], strides = [1, 1]} : vector<64x256xf32> to vector<32x256xf32>
    %155 = math.tanh %154 : vector<32x256xf32>
    %156 = vector.extract_strided_slice %153 {offsets = [32, 0], sizes = [32, 256], strides = [1, 1]} : vector<64x256xf32> to vector<32x256xf32>
    %157 = arith.negf %156 : vector<32x256xf32>
    %158 = math.exp %157 : vector<32x256xf32>
    %cst_78 = arith.constant 1.000000e+00 : f32
    %159 = vector.broadcast %cst_78 : f32 to vector<32x256xf32>
    %160 = arith.addf %159, %158 : vector<32x256xf32>
    %161 = arith.divf %159, %160 : vector<32x256xf32>
    %162 = arith.mulf %155, %161 : vector<32x256xf32>
    %c4_79 = arith.constant 4 : index
    %c0_80 = arith.constant 0 : index
    %c0_81 = arith.constant 0 : index
    %163 = vector.load %arg7[%c4_79, %c0_80, %c0_81] : memref<6x32x32xf32, #tpu.memory_space<vmem>>, vector<1x32x32xf32>
    %164 = vector.shape_cast %163 : vector<1x32x32xf32> to vector<32x32xf32>
    %cst_82 = arith.constant dense<0.000000e+00> : vector<32x256xf32>
    %165 = tpu.matmul %164, %162, %cst_82 {dimension_numbers = #tpu.dot_dimension_numbers<[1], [0], [0], [1], [0, 0, 1, 1], [], []>} : vector<32x32xf32>, vector<32x256xf32>, vector<32x256xf32> -> vector<32x256xf32>
    %166 = arith.addf %138, %165 : vector<32x256xf32>
    %167 = arith.addf %139, %165 : vector<32x256xf32>
    %c5 = arith.constant 5 : index
    %c0_83 = arith.constant 0 : index
    %c0_84 = arith.constant 0 : index
    %168 = vector.load %arg4[%c5, %c0_83, %c0_84] : memref<6x64x32xf32, #tpu.memory_space<vmem>>, vector<1x64x32xf32>
    %169 = vector.shape_cast %168 : vector<1x64x32xf32> to vector<64x32xf32>
    %cst_85 = arith.constant dense<0.000000e+00> : vector<64x256xf32>
    %170 = tpu.matmul %169, %166, %cst_85 {dimension_numbers = #tpu.dot_dimension_numbers<[1], [0], [0], [1], [0, 0, 1, 1], [], []>} : vector<64x32xf32>, vector<32x256xf32>, vector<64x256xf32> -> vector<64x256xf32>
    %171 = vector.extract_strided_slice %170 {offsets = [0, 0], sizes = [32, 256], strides = [1, 1]} : vector<64x256xf32> to vector<32x256xf32>
    %c1_i32_86 = arith.constant 1 : i32
    %172 = tpu.dynamic_rotate %171 by %c1_i32_86 dim 1 : vector<32x256xf32>, i32 -> vector<32x256xf32>
    %cst_87 = arith.constant 0.000000e+00 : f32
    %173 = vector.broadcast %cst_87 : f32 to vector<32x256xf32>
    %174 = arith.select %27, %173, %172 : vector<32x256xi1>, vector<32x256xf32>
    %175 = vector.extract_strided_slice %170 {offsets = [32, 0], sizes = [32, 256], strides = [1, 1]} : vector<64x256xf32> to vector<32x256xf32>
    %176 = arith.addf %174, %175 : vector<32x256xf32>
    %c5_88 = arith.constant 5 : index
    %c0_89 = arith.constant 0 : index
    %c0_90 = arith.constant 0 : index
    %177 = vector.load %arg5[%c5_88, %c0_89, %c0_90] : memref<6x64x32xf32, #tpu.memory_space<vmem>>, vector<1x64x32xf32>
    %178 = vector.shape_cast %177 : vector<1x64x32xf32> to vector<64x32xf32>
    %cst_91 = arith.constant dense<0.000000e+00> : vector<64x256xf32>
    %179 = tpu.matmul %178, %176, %cst_91 {dimension_numbers = #tpu.dot_dimension_numbers<[1], [0], [0], [1], [0, 0, 1, 1], [], []>} : vector<64x32xf32>, vector<32x256xf32>, vector<64x256xf32> -> vector<64x256xf32>
    %180 = vector.extract_strided_slice %8 {offsets = [320, 0], sizes = [64, 256], strides = [1, 1]} : vector<384x256xf32> to vector<64x256xf32>
    %181 = arith.addf %179, %180 : vector<64x256xf32>
    %182 = vector.extract_strided_slice %181 {offsets = [0, 0], sizes = [32, 256], strides = [1, 1]} : vector<64x256xf32> to vector<32x256xf32>
    %183 = math.tanh %182 : vector<32x256xf32>
    %184 = vector.extract_strided_slice %181 {offsets = [32, 0], sizes = [32, 256], strides = [1, 1]} : vector<64x256xf32> to vector<32x256xf32>
    %185 = arith.negf %184 : vector<32x256xf32>
    %186 = math.exp %185 : vector<32x256xf32>
    %cst_92 = arith.constant 1.000000e+00 : f32
    %187 = vector.broadcast %cst_92 : f32 to vector<32x256xf32>
    %188 = arith.addf %187, %186 : vector<32x256xf32>
    %189 = arith.divf %187, %188 : vector<32x256xf32>
    %190 = arith.mulf %183, %189 : vector<32x256xf32>
    %c5_93 = arith.constant 5 : index
    %c0_94 = arith.constant 0 : index
    %c0_95 = arith.constant 0 : index
    %191 = vector.load %arg7[%c5_93, %c0_94, %c0_95] : memref<6x32x32xf32, #tpu.memory_space<vmem>>, vector<1x32x32xf32>
    %192 = vector.shape_cast %191 : vector<1x32x32xf32> to vector<32x32xf32>
    %cst_96 = arith.constant dense<0.000000e+00> : vector<32x256xf32>
    %193 = tpu.matmul %192, %190, %cst_96 {dimension_numbers = #tpu.dot_dimension_numbers<[1], [0], [0], [1], [0, 0, 1, 1], [], []>} : vector<32x32xf32>, vector<32x256xf32>, vector<32x256xf32> -> vector<32x256xf32>
    %194 = arith.addf %167, %193 : vector<32x256xf32>
    %c0_97 = arith.constant 0 : index
    %c0_98 = arith.constant 0 : index
    %195 = vector.load %arg8[%c0_97, %c0_98] : memref<64x32xf32, #tpu.memory_space<vmem>>, vector<64x32xf32>
    %cst_99 = arith.constant 0.000000e+00 : f32
    %196 = vector.broadcast %cst_99 : f32 to vector<32x256xf32>
    %197 = arith.maximumf %194, %196 : vector<32x256xf32>
    %cst_100 = arith.constant dense<0.000000e+00> : vector<64x256xf32>
    %198 = tpu.matmul %195, %197, %cst_100 {dimension_numbers = #tpu.dot_dimension_numbers<[1], [0], [0], [1], [0, 0, 1, 1], [], []>} : vector<64x32xf32>, vector<32x256xf32>, vector<64x256xf32> -> vector<64x256xf32>
    %c0_101 = arith.constant 0 : index
    %c0_102 = arith.constant 0 : index
    %199 = vector.load %arg9[%c0_101, %c0_102] : memref<64x64xf32, #tpu.memory_space<vmem>>, vector<64x64xf32>
    %cst_103 = arith.constant 0.000000e+00 : f32
    %200 = vector.broadcast %cst_103 : f32 to vector<64x256xf32>
    %201 = arith.maximumf %198, %200 : vector<64x256xf32>
    %cst_104 = arith.constant dense<0.000000e+00> : vector<64x256xf32>
    %202 = tpu.matmul %199, %201, %cst_104 {dimension_numbers = #tpu.dot_dimension_numbers<[1], [0], [0], [1], [0, 0, 1, 1], [], []>} : vector<64x64xf32>, vector<64x256xf32>, vector<64x256xf32> -> vector<64x256xf32>
    %c0_105 = arith.constant 0 : index
    %c0_106 = arith.constant 0 : index
    %203 = vector.load %arg10[%c0_105, %c0_106] : memref<64x256xf32, #tpu.memory_space<vmem>>, vector<64x256xf32>
    tpu.vector_store %arg10[%c0_105, %c0_106], %202 {strides = array<i32>} : memref<64x256xf32, #tpu.memory_space<vmem>>, vector<64x256xf32>,
    return
  }
  func.func @transform_0(%arg0: i32) -> (i32, i32) {
    %c0_i32 = arith.constant 0 : i32
    %c0_i32_0 = arith.constant 0 : i32
    %c0_i32_1 = arith.constant 0 : i32
    return %c0_i32, %c0_i32_0 : i32, i32
  }
  func.func @transform_1(%arg0: i32) -> (i32, i32) {
    %c0_i32 = arith.constant 0 : i32
    %c0_i32_0 = arith.constant 0 : i32
    %c0_i32_1 = arith.constant 0 : i32
    return %c0_i32, %c0_i32_0 : i32, i32
  }
  func.func @transform_2(%arg0: i32) -> (i32, i32) {
    %c0_i32 = arith.constant 0 : i32
    %c0_i32_0 = arith.constant 0 : i32
    %c0_i32_1 = arith.constant 0 : i32
    return %c0_i32, %c0_i32_0 : i32, i32
  }
  func.func @transform_3(%arg0: i32) -> (i32, i32, i32) {
    %c0_i32 = arith.constant 0 : i32
    %c0_i32_0 = arith.constant 0 : i32
    %c0_i32_1 = arith.constant 0 : i32
    %c0_i32_2 = arith.constant 0 : i32
    return %c0_i32, %c0_i32_0, %c0_i32_1 : i32, i32, i32
  }
  func.func @transform_4(%arg0: i32) -> (i32, i32, i32) {
    %c0_i32 = arith.constant 0 : i32
    %c0_i32_0 = arith.constant 0 : i32
    %c0_i32_1 = arith.constant 0 : i32
    %c0_i32_2 = arith.constant 0 : i32
    return %c0_i32, %c0_i32_0, %c0_i32_1 : i32, i32, i32
  }
  func.func @transform_5(%arg0: i32) -> (i32, i32) {
    %c0_i32 = arith.constant 0 : i32
    %c0_i32_0 = arith.constant 0 : i32
    %c0_i32_1 = arith.constant 0 : i32
    return %c0_i32, %c0_i32_0 : i32, i32
  }
  func.func @transform_6(%arg0: i32) -> (i32, i32, i32) {
    %c0_i32 = arith.constant 0 : i32
    %c0_i32_0 = arith.constant 0 : i32
    %c0_i32_1 = arith.constant 0 : i32
    %c0_i32_2 = arith.constant 0 : i32
    return %c0_i32, %c0_i32_0, %c0_i32_1 : i32, i32, i32
  }
  func.func @transform_7(%arg0: i32) -> (i32, i32) {
    %c0_i32 = arith.constant 0 : i32
    %c0_i32_0 = arith.constant 0 : i32
    %c0_i32_1 = arith.constant 0 : i32
    return %c0_i32, %c0_i32_0 : i32, i32
  }
  func.func @transform_8(%arg0: i32) -> (i32, i32) {
    %c0_i32 = arith.constant 0 : i32
    %c0_i32_0 = arith.constant 0 : i32
    %c0_i32_1 = arith.constant 0 : i32
    return %c0_i32, %c0_i32_0 : i32, i32
  }
  func.func @transform_9(%arg0: i32) -> (i32, i32) {
    %c0_i32 = arith.constant 0 : i32
    %c0_i32_0 = arith.constant 0 : i32
    %c0_i32_1 = arith.constant 0 : i32
    return %c0_i32, %c0_i32_0 : i32, i32
  }
}

</mosaic_0001>

<bundles_post_ra>
// kernel: wavenet_forward.1
= control target key start
LH: loop header
LB: loop body
LE: loop exit
PB: predicated region body
PF: predicated region fallthrough
CT: control target
= control target key end

     0   :  { %v4714_v0 = vmov 0   ;;  %v6562_v5 = vmov 0.0   ;;  %v62_v6 = vlaneseq  ;;  %vm663_vm0 = vcmask 261120   ;;  %s4716_s12 = smov 1   ;;  %s6552_s2 = inlined_call_operand.vmem [shape: f32[32,1], index: 2, kind: input, shape index: {}]   ;;  %s6553_s0 = inlined_call_operand.vmem [shape: f32[1,256], index: 0, kind: input, shape index: {}]   ;;  %s6554_s3 = inlined_call_operand.vmem [shape: f32[6,64,32], index: 3, kind: input, shape index: {}]   ;;  %s6555_s1 = inlined_call_operand.vmem [shape: f32[16,256], index: 1, kind: input, shape index: {}]   ;;  %s6556_s5 = inlined_call_operand.vmem [shape: f32[384,16], index: 5, kind: input, shape index: {}]   ;;  %s6557_s4 = inlined_call_operand.vmem [shape: f32[6,64,32], index: 4, kind: input, shape index: {}]   ;;  %s6558_s6 = inlined_call_operand.vmem [shape: f32[6,32,32], index: 6, kind: input, shape index: {}]   ;;  %s6559_s7 = inlined_call_operand.vmem [shape: f32[64,32], index: 7, kind: input, shape index: {}]   ;;  %s6560_s8 = inlined_call_operand.vmem [shape: f32[64,64], index: 8, kind: input, shape index: {}]   ;;  %s6561_s9 = inlined_call_operand.vmem [shape: f32[64,256], index: 9, kind: output, shape index: {}]  }
   0x1   :  { %4425 = vset.pattern.permute.xlu1 %v4714_v0  ;;  %4424 = vset.pattern.permute.xlu0 %v4714_v0  ;;  %v40_v1 = vld [vmem:[%s6552_s2 + $0x18] sm:$0xff]  ;;  %v38_v2 = vld [vmem:[%s6552_s2 + $0x8] sm:$0xff]  ;;  %v39_v3 = vld [vmem:[%s6552_s2 + $0x10] sm:$0xff]  ;;  %vm128_vm1 = vcmask 130048   ;;  %vm3931_vm5 = vcmask 523264  }
   0x2   :  { %58 = vperm.xlu0 %4424, %v40_v1   ;;  %48 = vperm.xlu1 %4425, %v38_v2   ;;  %v37_v4 = vld [vmem:[%s6552_s2] sm:$0xff]  ;;  %v63_v7 = vshrl.u32 %v62_v6, 7  ;;  %v656_v26 = vld [vmem:[%s6554_s3 + $0x8] sm:$0xff]  ;;  %v657_v27 = vld [vmem:[%s6554_s3 + $0x10] sm:$0xff]  ;;  %v4910_v57 = vand.u32 127, %v62_v6  ;;  %v6568_v2 = vmov 0 }
   0x3   :  { %752 = vmatprep.mubr.f32.mxu1 %v6562_v5  ;;  %337 = vmatprep.mubr.f32.mxu0 %v6562_v5  ;;  %v32_v10 = vld [vmem:[%s6553_s0] sm:$0x3]  ;;  %v658_v28 = vld [vmem:[%s6554_s3 + $0x18] sm:$0xff]  ;;  %v660_v30 = vld [vmem:[%s6554_s3 + $0x28] sm:$0xff] }
   0x4   :  { %v64_v8 = vsub.s32 0, %v63_v7  ;;  %v68_v9 = vsub.s32 1, %v63_v7  ;;  %v655_v25 = vld [vmem:[%s6554_s3] sm:$0xff]  ;;  %v661_v31 = vld [vmem:[%s6554_s3 + $0x30] sm:$0xff]  ;;  %v662_v32 = vld [vmem:[%s6554_s3 + $0x38] sm:$0xff]  ;;  %v628_v59 = vadd.s32 128, %v4910_v57 }
   0x5   :  { %v659_v29 = vld [vmem:[%s6554_s3 + $0x20] sm:$0xff]  ;;  %v36_v38 = vld [vmem:[%s6555_s1 + $0x18] sm:$0xff]  ;;  %v35_v40 = vld [vmem:[%s6555_s1 + $0x10] sm:$0xff]  ;;  %vm817_vm2 = vcmp.lt.s32.totalorder %v4910_v57, 1  ;;  %vm653_vm4 = vcmp.eq.s32.totalorder %v4910_v57, 0 }
   0x6   :  { %53 = vperm.xlu0 %4424, %v39_v3   ;;  %43 = vperm.xlu1 %4425, %v37_v4   ;;  %v65_v11 = vrot.slane %v32_v10, %v64_v8  ;;  %v69_v12 = vrot.slane %v32_v10, %v68_v9  ;;  %v34_v41 = vld [vmem:[%s6555_s1 + $0x8] sm:$0xff]  ;;  %v33_v43 = vld [vmem:[%s6555_s1] sm:$0xff]  ;;  %v82_v47 = vld [vmem:[%s6556_s5 + $0x10] sm:$0xff]  ;;  %v640_v62 = vand.u32 127, %v628_v59 }
   0x7   :  { %301 = vmatprep.subr.mxu0 %v36_v38  ;;  %v80_v44 = vld [vmem:[%s6556_s5] sm:$0xff]  ;;  %v81_v46 = vld [vmem:[%s6556_s5 + $0x8] sm:$0xff]  ;;  %v83_v48 = vld [vmem:[%s6556_s5 + $0x18] sm:$0xff] }
   0x8   :  { %302 = vmatpush1.msra.mxu0 %v35_v40  ;;  %v84_v49 = vld [vmem:[%s6556_s5 + $0x20] sm:$0xff]  ;;  %v85_v50 = vld [vmem:[%s6556_s5 + $0x28] sm:$0xff]  ;;  %v86_v51 = vld [vmem:[%s6556_s5 + $0x30] sm:$0xff]  ;;  %vm4914_vm3 = vcmp.eq.s32.totalorder %v640_v62, 0 }
   0x9   :  { %303 = vmatprep.subr.mxu0 %v34_v41  ;;  %v87_v52 = vld [vmem:[%s6556_s5 + $0x38] sm:$0xff]  ;;  %v6569_v2 = vsel %vm4914_vm3, 4294967295, %v6568_v2  ;;  %v4374_v57 = vld [vmem:[%s6557_s4 + $0x148] sm:$0xff] }
   0xa   :  { %304 = vmatpush1.msra.mxu0 %v33_v43  ;;  %6570 = vst [vmem:[#allocation2_spill] sm:$0xff] %v6569_v2  ;;  %v843_v43 = vld [vmem:[%s6557_s4 + $0x8] sm:$0xff] }
   0xb   :  { %4089 = vmatmul.mubr.msk.f32.vlgmr.msra.gmra.mxu0 %vm128_vm1, %v80_v44  ;;  %v844_v44 = vld [vmem:[%s6557_s4 + $0x10] sm:$0xff] }
   0xc   :  { %343 = vmatprep.mubr.f32.mxu0 %v6562_v5 }
   0xf   :  { %4090 = vmatmul.mubr.msk.f32.gmra.mxu0 %vm128_vm1, %v81_v46  ;;  %v846_v46 = vld [vmem:[%s6557_s4 + $0x20] sm:$0xff] }
  0x10   :  { %349 = vmatprep.mubr.f32.mxu0 %v6562_v5 }
  0x13   :  { %4091 = vmatmul.mubr.msk.f32.gmra.mxu0 %vm128_vm1, %v82_v47  ;;  %v847_v47 = vld [vmem:[%s6557_s4 + $0x28] sm:$0xff] }
  0x14   :  { %355 = vmatprep.mubr.f32.mxu0 %v6562_v5 }
  0x17   :  { %4092 = vmatmul.mubr.msk.f32.gmra.mxu0 %vm128_vm1, %v83_v48  ;;  %v848_v48 = vld [vmem:[%s6557_s4 + $0x30] sm:$0xff] }
  0x18   :  { %361 = vmatprep.mubr.f32.mxu0 %v6562_v5 }
  0x1b   :  { %4093 = vmatmul.mubr.msk.f32.gmra.mxu0 %vm128_vm1, %v84_v49  ;;  %v849_v49 = vld [vmem:[%s6557_s4 + $0x38] sm:$0xff] }
  0x1c   :  { %367 = vmatprep.mubr.f32.mxu0 %v6562_v5 }
  0x1f   :  { %4094 = vmatmul.mubr.msk.f32.gmra.mxu0 %vm128_vm1, %v85_v50 }
  0x20   :  { %373 = vmatprep.mubr.f32.mxu0 %v6562_v5 }
  0x23   :  { %4095 = vmatmul.mubr.msk.f32.gmra.mxu0 %vm128_vm1, %v86_v51 }
  0x24   :  { %379 = vmatprep.mubr.f32.mxu0 %v6562_v5 }
  0x27   :  { %4096 = vmatmul.mubr.msk.f32.gmra.mxu0 %vm128_vm1, %v87_v52 }
  0x28   :  { %385 = vmatprep.mubr.f32.mxu0 %v6562_v5 }
  0x7d   :  { %v59_v13 = vpop.permute.xlu0 %58  ;;  %v49_v14 = vpop.permute.xlu1 %48 }
  0x7e   :  { %v4785_v15 = vmul.f32 %v69_v12, %v59_v13  ;;  %v4787_v16 = vmul.f32 %v65_v11, %v59_v13  ;;  %v4795_v21 = vmul.f32 %v69_v12, %v49_v14  ;;  %v4798_v22 = vmul.f32 %v65_v11, %v49_v14 }
  0x80   :  { %712 = vmatprep.subr.mxu1 %v4785_v15 }
  0x81   :  { %v54_v17 = vpop.permute.xlu0 %53  ;;  %713 = vmatpush1.msra.mxu1 %v4787_v16  ;;  %v44_v20 = vpop.permute.xlu1 %43 }
  0x82   :  { %v4791_v18 = vmul.f32 %v65_v11, %v54_v17  ;;  %v4793_v19 = vmul.f32 %v69_v12, %v54_v17  ;;  %v4801_v23 = vmul.f32 %v69_v12, %v44_v20  ;;  %v4804_v24 = vmul.f32 %v65_v11, %v44_v20 }
  0x84   :  { %714 = vmatprep.subr.mxu1 %v4793_v19 }
  0x85   :  { %715 = vmatpush1.msra.mxu1 %v4791_v18 }
  0x86   :  { %716 = vmatprep.subr.mxu1 %v4795_v21 }
  0x87   :  { %717 = vmatpush1.msra.mxu1 %v4798_v22 }
  0x88   :  { %718 = vmatprep.subr.mxu1 %v4801_v23 }
  0x89   :  { %719 = vmatpush1.msra.mxu1 %v4804_v24 }
  0x8a   :  { %4137 = vmatmul.mubr.msk.f32.vlgmr.msra.gmra.mxu1 %vm663_vm0, %v655_v25 }
  0x8b   :  { %758 = vmatprep.mubr.f32.mxu1 %v6562_v5 }
  0x8e   :  { %4138 = vmatmul.mubr.msk.f32.gmra.mxu1 %vm663_vm0, %v656_v26 }
  0x8f   :  { %764 = vmatprep.mubr.f32.mxu1 %v6562_v5 }
  0x92   :  { %4139 = vmatmul.mubr.msk.f32.gmra.mxu1 %vm663_vm0, %v657_v27 }
  0x93   :  { %770 = vmatprep.mubr.f32.mxu1 %v6562_v5 }
  0x96   :  { %4140 = vmatmul.mubr.msk.f32.gmra.mxu1 %vm663_vm0, %v658_v28 }
  0x97   :  { %776 = vmatprep.mubr.f32.mxu1 %v6562_v5 }
  0x9a   :  { %4141 = vmatmul.mubr.msk.f32.gmra.mxu1 %vm663_vm0, %v659_v29 }
  0x9b   :  { %782 = vmatprep.mubr.f32.mxu1 %v6562_v5 }
  0x9e   :  { %4142 = vmatmul.mubr.msk.f32.gmra.mxu1 %vm663_vm0, %v660_v30 }
  0x9f   :  { %788 = vmatprep.mubr.f32.mxu1 %v6562_v5 }
  0xa2   :  { %4143 = vmatmul.mubr.msk.f32.gmra.mxu1 %vm663_vm0, %v661_v31 }
  0xa3   :  { %794 = vmatprep.mubr.f32.mxu1 %v6562_v5 }
  0xa6   :  { %4144 = vmatmul.mubr.msk.f32.gmra.mxu1 %vm663_vm0, %v662_v32 }
  0xa7   :  { %938 = vmatprep.mubr.f32.mxu1 %v6562_v5 }
  0xcb   :  { %v4991_v50 = vpop.f32.mrf.mxu0 }
  0xcd   :  { %v4993_v51 = vpop.f32.mrf.mxu0 }
  0xcf   :  { %v345_v52 = vpop.f32.mrf.mxu0 }
 0x14a   :  { %v754_v33 = vpop.f32.mrf.mxu1 }
 0x14c   :  { %v756_v34 = vpop.f32.mrf.mxu1 }
 0x14e   :  { %v760_v35 = vpop.f32.mrf.mxu1 }
 0x150   :  { %v762_v36 = vpop.f32.mrf.mxu1 }
 0x152   :  { %v766_v37 = vpop.f32.mrf.mxu1 }
 0x153   :  { %805 = vrot.lane.b32.xlu0 %v766_v37, %s4716_s12 }
 0x154   :  { %v768_v39 = vpop.f32.mrf.mxu1 }
 0x155   :  { %813 = vrot.lane.b32.xlu1 %v768_v39, %s4716_s12 }
 0x156   :  { %v772_v42 = vpop.f32.mrf.mxu1 }
 0x157   :  { %807 = vrot.lane.b32.xlu0 %v772_v42, %s4716_s12  ;;  %v842_v42 = vld [vmem:[%s6557_s4] sm:$0xff] }
 0x158   :  { %v774_v45 = vpop.f32.mrf.mxu1 }
 0x159   :  { %815 = vrot.lane.b32.xlu1 %v774_v45, %s4716_s12  ;;  %v845_v45 = vld [vmem:[%s6557_s4 + $0x18] sm:$0xff] }
 0x15a   :  { %v778_v53 = vpop.f32.mrf.mxu1 }
 0x15b   :  { %803 = vrot.lane.b32.xlu0 %v760_v35, %s4716_s12 }
 0x15c   :  { %v780_v54 = vpop.f32.mrf.mxu1 }
 0x15d   :  { %811 = vrot.lane.b32.xlu1 %v762_v36, %s4716_s12 }
 0x15e   :  { %v784_v55 = vpop.f32.mrf.mxu1 }
 0x15f   :  { %801 = vrot.lane.b32.xlu0 %v754_v33, %s4716_s12 }
 0x160   :  { %v786_v56 = vpop.f32.mrf.mxu1 }
 0x161   :  { %809 = vrot.lane.b32.xlu1 %v756_v34, %s4716_s12 }
 0x162   :  { %v790_v58 = vpop.f32.mrf.mxu1 }
 0x164   :  { %v792_v60 = vpop.f32.mrf.mxu1 }
 0x166   :  { %v796_v0 = vpop.f32.mrf.mxu1 }
 0x168   :  { %v798_v7 = vpop.f32.mrf.mxu1 }
 0x1c5   :  { %v806_v61 = vpop.permute.xlu0 %805 }
 0x1c7   :  { %v814_v63 = vpop.permute.xlu1 %813 }
 0x1c8   :  { %v820_v3 = vsel %vm817_vm2, %v806_v61, %v814_v63  ;;  %v824_v4 = vsel %vm817_vm2, %v814_v63, %v806_v61 }
 0x1c9   :  { %v808_v1 = vpop.permute.xlu0 %807  ;;  %v831_v10 = vsel %vm4914_vm3, 0.0, %v820_v3  ;;  %v830_v14 = vsel %vm653_vm4, 0.0, %v824_v4 }
 0x1ca   :  { %v839_v26 = vadd.f32 %v831_v10, %v792_v60  ;;  %v838_v29 = vadd.f32 %v830_v14, %v790_v58 }
 0x1cb   :  { %v816_v6 = vpop.permute.xlu1 %815 }
 0x1cc   :  { %v821_v8 = vsel %vm817_vm2, %v808_v1, %v816_v6  ;;  %v825_v9 = vsel %vm817_vm2, %v816_v6, %v808_v1 }
 0x1cd   :  { %v832_v11 = vsel %vm653_vm4, 0.0, %v825_v9  ;;  %v804_v12 = vpop.permute.xlu0 %803  ;;  %v833_v13 = vsel %vm4914_vm3, 0.0, %v821_v8 }
 0x1ce   :  { %v840_v17 = vadd.f32 %v832_v11, %v796_v0  ;;  %v841_v20 = vadd.f32 %v833_v13, %v798_v7 }
 0x1cf   :  { %v812_v25 = vpop.permute.xlu1 %811 }
 0x1d0   :  { %v819_v27 = vsel %vm817_vm2, %v804_v12, %v812_v25  ;;  %v823_v28 = vsel %vm817_vm2, %v812_v25, %v804_v12  ;;  %898 = vmatprep.subr.mxu1 %v841_v20 }
 0x1d1   :  { %v828_v30 = vsel %vm653_vm4, 0.0, %v823_v28  ;;  %v829_v31 = vsel %vm4914_vm3, 0.0, %v819_v27  ;;  %899 = vmatpush1.msra.mxu1 %v840_v17  ;;  %v802_v34 = vpop.permute.xlu0 %801 }
 0x1d2   :  { %v836_v32 = vadd.f32 %v828_v30, %v784_v55  ;;  %v837_v33 = vadd.f32 %v829_v31, %v786_v56  ;;  %900 = vmatprep.subr.mxu1 %v839_v26 }
 0x1d3   :  { %v810_v35 = vpop.permute.xlu1 %809  ;;  %901 = vmatpush1.msra.mxu1 %v838_v29 }
 0x1d4   :  { %v818_v36 = vsel %vm817_vm2, %v802_v34, %v810_v35  ;;  %v822_v37 = vsel %vm817_vm2, %v810_v35, %v802_v34  ;;  %902 = vmatprep.subr.mxu1 %v837_v33 }
 0x1d5   :  { %v826_v38 = vsel %vm653_vm4, 0.0, %v822_v37  ;;  %v827_v39 = vsel %vm4914_vm3, 0.0, %v818_v36  ;;  %903 = vmatpush1.msra.mxu1 %v836_v32 }
 0x1d6   :  { %v834_v40 = vadd.f32 %v826_v38, %v778_v53  ;;  %v835_v41 = vadd.f32 %v827_v39, %v780_v54  ;;  %v347_v53 = vpop.f32.mrf.mxu0 }
 0x1d8   :  { %904 = vmatprep.subr.mxu1 %v835_v41  ;;  %v351_v54 = vpop.f32.mrf.mxu0 }
 0x1d9   :  { %905 = vmatpush1.msra.mxu1 %v834_v40 }
 0x1da   :  { %4145 = vmatmul.mubr.msk.f32.vlgmr.msra.gmra.mxu1 %vm663_vm0, %v842_v42  ;;  %v353_v55 = vpop.f32.mrf.mxu0 }
 0x1db   :  { %944 = vmatprep.mubr.f32.mxu1 %v6562_v5 }
 0x1dc   :  { %v357_v56 = vpop.f32.mrf.mxu0 }
 0x1de   :  { %4146 = vmatmul.mubr.msk.f32.gmra.mxu1 %vm663_vm0, %v843_v43  ;;  %v359_v58 = vpop.f32.mrf.mxu0 }
 0x1df   :  { %950 = vmatprep.mubr.f32.mxu1 %v6562_v5 }
 0x1e0   :  { %v363_v61 = vpop.f32.mrf.mxu0 }
 0x1e2   :  { %4147 = vmatmul.mubr.msk.f32.gmra.mxu1 %vm663_vm0, %v844_v44  ;;  %v365_v0 = vpop.f32.mrf.mxu0 }
 0x1e3   :  { %956 = vmatprep.mubr.f32.mxu1 %v6562_v5 }
 0x1e4   :  { %v369_v4 = vpop.f32.mrf.mxu0 }
 0x1e6   :  { %4148 = vmatmul.mubr.msk.f32.gmra.mxu1 %vm663_vm0, %v845_v45  ;;  %v371_v8 = vpop.f32.mrf.mxu0 }
 0x1e7   :  { %962 = vmatprep.mubr.f32.mxu1 %v6562_v5 }
 0x1e8   :  { %v375_v11 = vpop.f32.mrf.mxu0 }
 0x1ea   :  { %4149 = vmatmul.mubr.msk.f32.gmra.mxu1 %vm663_vm0, %v846_v46  ;;  %v377_v17 = vpop.f32.mrf.mxu0 }
 0x1eb   :  { %968 = vmatprep.mubr.f32.mxu1 %v6562_v5 }
 0x1ec   :  { %v381_v30 = vpop.f32.mrf.mxu0 }
 0x1ee   :  { %4150 = vmatmul.mubr.msk.f32.gmra.mxu1 %vm663_vm0, %v847_v47  ;;  %v383_v39 = vpop.f32.mrf.mxu0 }
 0x1ef   :  { %974 = vmatprep.mubr.f32.mxu1 %v6562_v5 }
 0x1f2   :  { %4151 = vmatmul.mubr.msk.f32.gmra.mxu1 %vm663_vm0, %v848_v48 }
 0x1f3   :  { %980 = vmatprep.mubr.f32.mxu1 %v6562_v5 }
 0x1f6   :  { %4152 = vmatmul.mubr.msk.f32.gmra.mxu1 %vm663_vm0, %v849_v49 }
 0x1f7   :  { %1131 = vmatprep.mubr.f32.mxu1 %v6562_v5 }
 0x29a   :  { %v4995_v59 = vpop.f32.mrf.mxu1 }
 0x29c   :  { %v4997_v60 = vpop.f32.mrf.mxu1 }
 0x29e   :  { %v946_v62 = vpop.f32.mrf.mxu1 }
 0x29f   :  { %v947_v45 = vadd.f32 %v946_v62, %v345_v52 }
 0x2a0   :  { %v948_v63 = vpop.f32.mrf.mxu1 }
 0x2a1   :  { %v949_v46 = vadd.f32 %v948_v63, %v347_v53  ;;  %v943_v63 = vadd.f32 %v4997_v60, %v4993_v51 }
 0x2a2   :  { %v952_v1 = vpop.f32.mrf.mxu1 }
 0x2a3   :  { %v953_v47 = vadd.f32 %v952_v1, %v351_v54  ;;  %v941_v1 = vadd.f32 %v4995_v59, %v4991_v50 }
 0x2a4   :  { %v954_v3 = vpop.f32.mrf.mxu1 }
 0x2a5   :  { %v955_v49 = vadd.f32 %v954_v3, %v353_v55 }
 0x2a6   :  { %v958_v6 = vpop.f32.mrf.mxu1 }
 0x2a8   :  { %v960_v7 = vpop.f32.mrf.mxu1 }
 0x2aa   :  { %v964_v9 = vpop.f32.mrf.mxu1 }
 0x2ab   :  { %v965_v33 = vadd.f32 %v964_v9, %v363_v61 }
 0x2ac   :  { %v966_v10 = vpop.f32.mrf.mxu1 }
 0x2ad   :  { %v967_v13 = vadd.f32 %v966_v10, %v365_v0  ;;  %v4153_v43 = vmul.f32 -1.442695, %v965_v33  ;;  %v959_v0 = vadd.f32 %v958_v6, %v357_v56 }
 0x2ae   :  { %v970_v12 = vpop.f32.mrf.mxu1 }
 0x2af   :  { %v4154_v26 = vmul.f32 -1.442695, %v967_v13  ;;  %v971_v28 = vadd.f32 %v970_v12, %v369_v4 }
 0x2b0   :  { %v972_v14 = vpop.f32.mrf.mxu1 }
 0x2b1   :  { %v973_v20 = vadd.f32 %v972_v14, %v371_v8  ;;  %4426 = vpow2.f32 %v4154_v26  ;;  %v4155_v38 = vmul.f32 -1.442695, %v971_v28  ;;  %v961_v8 = vadd.f32 %v960_v7, %v359_v58 }
 0x2b2   :  { %v976_v25 = vpop.f32.mrf.mxu1 }
 0x2b3   :  { %v977_v27 = vadd.f32 %v976_v25, %v375_v11  ;;  %v4156_v29 = vmul.f32 -1.442695, %v973_v20 }
 0x2b4   :  { %v978_v31 = vpop.f32.mrf.mxu1 }
 0x2b5   :  { %v979_v32 = vadd.f32 %v978_v31, %v377_v17  ;;  %v4157_v34 = vmul.f32 -1.442695, %v977_v27  ;;  %4428 = vpow2.f32 %v4156_v29 }
 0x2b6   :  { %v982_v35 = vpop.f32.mrf.mxu1 }
 0x2b7   :  { %v4158_v36 = vmul.f32 -1.442695, %v979_v32  ;;  %v983_v37 = vadd.f32 %v982_v35, %v381_v30 }
 0x2b8   :  { %v984_v40 = vpop.f32.mrf.mxu1 }
 0x2b9   :  { %4430 = vpow2.f32 %v4158_v36  ;;  %v4159_v41 = vmul.f32 -1.442695, %v983_v37  ;;  %v985_v42 = vadd.f32 %v984_v40, %v383_v39  ;;  %v1051_v40 = vld [vmem:[%s6558_s6] sm:$0xff] }
 0x2ba   :  { %4432 = vpow2.f32 %v4157_v34 }
 0x2bb   :  { %4434 = vpow2.f32 %v4159_v41  ;;  %v4160_v44 = vmul.f32 -1.442695, %v985_v42  ;;  %v1052_v41 = vld [vmem:[%s6558_s6 + $0x8] sm:$0xff]  ;;  %v1053_v42 = vld [vmem:[%s6558_s6 + $0x10] sm:$0xff] }
 0x2bc   :  { %4436 = vpow2.f32 %v4155_v38 }
 0x2bd   :  { %4438 = vpow2.f32 %v4160_v44 }
 0x2be   :  { %4440 = vpow2.f32 %v4153_v43  ;;  %v4427_v48 = vpop.eup %4426  ;;  %v1054_v43 = vld [vmem:[%s6558_s6 + $0x18] sm:$0xff] }
 0x2bf   :  { %4442 = vtanh.f32 %v947_v45  ;;  %v1020_v56 = vadd.f32 1.0, %v4427_v48 }
 0x2c0   :  { %4444 = vtanh.f32 %v949_v46 }
 0x2c1   :  { %4446 = vtanh.f32 %v953_v47 }
 0x2c2   :  { %v4429_v61 = vpop.eup %4428  ;;  %4448 = vtanh.f32 %v955_v49 }
 0x2c3   :  { %4450 = vtanh.f32 %v959_v0  ;;  %v1022_v54 = vadd.f32 1.0, %v4429_v61 }
 0x2c4   :  { %4452 = vtanh.f32 %v961_v8 }
 0x2c6   :  { %v4431_v4 = vpop.eup %4430 }
 0x2c7   :  { %v4433_v9 = vpop.eup %4432  ;;  %v1024_v10 = vadd.f32 1.0, %v4431_v4 }
 0x2c8   :  { %v4435_v11 = vpop.eup %4434  ;;  %v1023_v52 = vadd.f32 1.0, %v4433_v9 }
 0x2c9   :  { %v4437_v12 = vpop.eup %4436  ;;  %v1025_v13 = vadd.f32 1.0, %v4435_v11  ;;  %4454 = vrcp.f32 %v1024_v10  ;;  %v4169_v11 = vld [vmem:[%s6554_s3 + $0x60] sm:$0xff] }
 0x2ca   :  { %v4439_v14 = vpop.eup %4438  ;;  %v1021_v62 = vadd.f32 1.0, %v4437_v12  ;;  %v4170_v12 = vld [vmem:[%s6554_s3 + $0x68] sm:$0xff] }
 0x2cb   :  { %v4441_v53 = vpop.eup %4440  ;;  %v1026_v55 = vadd.f32 1.0, %v4439_v14  ;;  %4456 = vrcp.f32 %v1025_v13  ;;  %v4171_v13 = vld [vmem:[%s6554_s3 + $0x70] sm:$0xff]  ;;  %v4172_v14 = vld [vmem:[%s6554_s3 + $0x78] sm:$0xff] }
 0x2cc   :  { %v1019_v58 = vadd.f32 1.0, %v4441_v53  ;;  %v4443_v3 = vpop.eup %4442 }
 0x2cd   :  { %4458 = vrcp.f32 %v1026_v55  ;;  %v4445_v6 = vpop.eup %4444 }
 0x2ce   :  { %4460 = vrcp.f32 %v1023_v52  ;;  %v4447_v7 = vpop.eup %4446 }
 0x2cf   :  { %4462 = vrcp.f32 %v1022_v54  ;;  %v4449_v17 = vpop.eup %4448 }
 0x2d0   :  { %4464 = vrcp.f32 %v1021_v62  ;;  %v4451_v20 = vpop.eup %4450 }
 0x2d1   :  { %4466 = vrcp.f32 %v1020_v56  ;;  %v4453_v25 = vpop.eup %4452 }
 0x2d2   :  { %4468 = vrcp.f32 %v1019_v58 }
 0x2d3   :  { %4470 = vtanh.f32 %v943_v63  ;;  %v88_v63 = vld [vmem:[%s6556_s5 + $0x40] sm:$0xff] }
 0x2d4   :  { %4472 = vtanh.f32 %v941_v1  ;;  %4097 = vmatmul.mubr.msk.f32.gmra.mxu0 %vm128_vm1, %v88_v63 }
 0x2d5   :  { %391 = vmatprep.mubr.f32.mxu0 %v6562_v5 }
 0x2d6   :  { %v4455_v26 = vpop.eup %4454 }
 0x2d7   :  { %v1048_v50 = vmul.f32 %v4455_v26, %v4449_v17  ;;  %v92_v17 = vld [vmem:[%s6556_s5 + $0x60] sm:$0xff]  ;;  %v95_v26 = vld [vmem:[%s6556_s5 + $0x78] sm:$0xff] }
 0x2d8   :  { %v4457_v27 = vpop.eup %4456 }
 0x2d9   :  { %v1049_v30 = vmul.f32 %v4457_v27, %v4451_v20  ;;  %v93_v20 = vld [vmem:[%s6556_s5 + $0x68] sm:$0xff] }
 0x2da   :  { %v4459_v28 = vpop.eup %4458 }
 0x2db   :  { %v4461_v29 = vpop.eup %4460  ;;  %v1050_v51 = vmul.f32 %v4459_v28, %v4453_v25  ;;  %v94_v25 = vld [vmem:[%s6556_s5 + $0x70] sm:$0xff] }
 0x2dc   :  { %v4463_v60 = vpop.eup %4462  ;;  %v1047_v32 = vmul.f32 %v4461_v29, %v4447_v7  ;;  %v91_v7 = vld [vmem:[%s6556_s5 + $0x58] sm:$0xff] }
 0x2dd   :  { %v4465_v31 = vpop.eup %4464  ;;  %1091 = vmatprep.subr.mxu1 %v1050_v51  ;;  %v1046_v34 = vmul.f32 %v4463_v60, %v4445_v6  ;;  %v90_v6 = vld [vmem:[%s6556_s5 + $0x50] sm:$0xff] }
 0x2de   :  { %v4467_v59 = vpop.eup %4466  ;;  %1092 = vmatpush1.msra.mxu1 %v1049_v30  ;;  %v1045_v36 = vmul.f32 %v4465_v31, %v4443_v3  ;;  %v89_v3 = vld [vmem:[%s6556_s5 + $0x48] sm:$0xff] }
 0x2df   :  { %v4469_v33 = vpop.eup %4468  ;;  %1093 = vmatprep.subr.mxu1 %v1048_v50  ;;  %4098 = vmatmul.mubr.msk.f32.gmra.mxu0 %vm128_vm1, %v89_v3 }
 0x2e0   :  { %v4471_v35 = vpop.eup %4470  ;;  %1094 = vmatpush1.msra.mxu1 %v1047_v32  ;;  %397 = vmatprep.mubr.f32.mxu0 %v6562_v5 }
 0x2e1   :  { %v4473_v37 = vpop.eup %4472  ;;  %1095 = vmatprep.subr.mxu1 %v1046_v34  ;;  %v1044_v38 = vmul.f32 %v4471_v35, %v4467_v59 }
 0x2e2   :  { %1096 = vmatpush1.msra.mxu1 %v1045_v36  ;;  %v1043_v39 = vmul.f32 %v4473_v37, %v4469_v33 }
 0x2e3   :  { %1097 = vmatprep.subr.mxu1 %v1044_v38  ;;  %4099 = vmatmul.mubr.msk.f32.gmra.mxu0 %vm128_vm1, %v90_v6 }
 0x2e4   :  { %1098 = vmatpush1.msra.mxu1 %v1043_v39  ;;  %403 = vmatprep.mubr.f32.mxu0 %v6562_v5 }
 0x2e5   :  { %4161 = vmatmul.mubr.msk.f32.vlgmr.msra.gmra.mxu1 %vm663_vm0, %v1051_v40 }
 0x2e6   :  { %1137 = vmatprep.mubr.f32.mxu1 %v6562_v5 }
 0x2e7   :  { %4100 = vmatmul.mubr.msk.f32.gmra.mxu0 %vm128_vm1, %v91_v7  ;;  %v4181_v7 = vld [vmem:[%s6557_s4 + $0x40] sm:$0xff] }
 0x2e8   :  { %409 = vmatprep.mubr.f32.mxu0 %v6562_v5 }
 0x2e9   :  { %4162 = vmatmul.mubr.msk.f32.gmra.mxu1 %vm663_vm0, %v1052_v41 }
 0x2ea   :  { %1143 = vmatprep.mubr.f32.mxu1 %v6562_v5 }
 0x2eb   :  { %4101 = vmatmul.mubr.msk.f32.gmra.mxu0 %vm128_vm1, %v92_v17  ;;  %v4182_v17 = vld [vmem:[%s6557_s4 + $0x48] sm:$0xff] }
 0x2ec   :  { %415 = vmatprep.mubr.f32.mxu0 %v6562_v5 }
 0x2ed   :  { %4163 = vmatmul.mubr.msk.f32.gmra.mxu1 %vm663_vm0, %v1053_v42 }
 0x2ee   :  { %1149 = vmatprep.mubr.f32.mxu1 %v6562_v5 }
 0x2ef   :  { %4102 = vmatmul.mubr.msk.f32.gmra.mxu0 %vm128_vm1, %v93_v20  ;;  %v4183_v20 = vld [vmem:[%s6557_s4 + $0x50] sm:$0xff] }
 0x2f0   :  { %421 = vmatprep.mubr.f32.mxu0 %v6562_v5 }
 0x2f1   :  { %4164 = vmatmul.mubr.msk.f32.gmra.mxu1 %vm663_vm0, %v1054_v43 }
 0x2f2   :  { %1269 = vmatprep.mubr.f32.mxu1 %v6562_v5 }
 0x2f3   :  { %4103 = vmatmul.mubr.msk.f32.gmra.mxu0 %vm128_vm1, %v94_v25  ;;  %v4184_v25 = vld [vmem:[%s6557_s4 + $0x58] sm:$0xff] }
 0x2f4   :  { %427 = vmatprep.mubr.f32.mxu0 %v6562_v5 }
 0x2f7   :  { %4104 = vmatmul.mubr.msk.f32.gmra.mxu0 %vm128_vm1, %v95_v26  ;;  %v4185_v26 = vld [vmem:[%s6557_s4 + $0x60] sm:$0xff] }
 0x2f8   :  { %433 = vmatprep.mubr.f32.mxu0 %v6562_v5 }
 0x3a5   :  { %v5023_v44 = vpop.f32.mrf.mxu1 }
 0x3a7   :  { %v5025_v45 = vpop.f32.mrf.mxu1 }
 0x3a9   :  { %v5027_v46 = vpop.f32.mrf.mxu1 }
 0x3ab   :  { %v5029_v47 = vpop.f32.mrf.mxu1 }
 0x3ad   :  { %v5031_v48 = vpop.f32.mrf.mxu1 }
 0x3ae   :  { %v5054_v10 = vadd.f32 %v5031_v48, %v4791_v18  ;;  %v5074_v18 = vadd.f32 %v5023_v44, %v4804_v24  ;;  %v4168_v24 = vld [vmem:[%s6554_s3 + $0x58] sm:$0xff] }
 0x3af   :  { %v5033_v49 = vpop.f32.mrf.mxu1 }
 0x3b0   :  { %v5049_v9 = vadd.f32 %v5033_v49, %v4793_v19  ;;  %v5069_v19 = vadd.f32 %v5025_v45, %v4801_v23  ;;  %v4167_v23 = vld [vmem:[%s6554_s3 + $0x50] sm:$0xff] }
 0x3b1   :  { %v5035_v61 = vpop.f32.mrf.mxu1 }
 0x3b2   :  { %v5045_v8 = vadd.f32 %v5035_v61, %v4787_v16  ;;  %v5064_v16 = vadd.f32 %v5027_v46, %v4798_v22  ;;  %v4166_v22 = vld [vmem:[%s6554_s3 + $0x48] sm:$0xff] }
 0x3b3   :  { %v5037_v0 = vpop.f32.mrf.mxu1 }
 0x3b4   :  { %6571 = vst [vmem:[#allocation3_spill] sm:$0xff] %v5037_v0  ;;  %v5041_v4 = vadd.f32 %v5037_v0, %v4785_v15  ;;  %v5059_v15 = vadd.f32 %v5029_v47, %v4795_v21  ;;  %v4165_v21 = vld [vmem:[%s6554_s3 + $0x40] sm:$0xff] }
 0x3b6   :  { %1229 = vmatprep.subr.mxu1 %v5041_v4 }
 0x3b7   :  { %1230 = vmatpush1.msra.mxu1 %v5045_v8 }
 0x3b8   :  { %1231 = vmatprep.subr.mxu1 %v5049_v9 }
 0x3b9   :  { %1232 = vmatpush1.msra.mxu1 %v5054_v10 }
 0x3ba   :  { %1233 = vmatprep.subr.mxu1 %v5059_v15 }
 0x3bb   :  { %1234 = vmatpush1.msra.mxu1 %v5064_v16 }
 0x3bc   :  { %1235 = vmatprep.subr.mxu1 %v5069_v19 }
 0x3bd   :  { %1236 = vmatpush1.msra.mxu1 %v5074_v18 }
 0x3be   :  { %4173 = vmatmul.mubr.msk.f32.vlgmr.msra.gmra.mxu1 %vm663_vm0, %v4165_v21 }
 0x3bf   :  { %1275 = vmatprep.mubr.f32.mxu1 %v6562_v5 }
 0x3c2   :  { %4174 = vmatmul.mubr.msk.f32.gmra.mxu1 %vm663_vm0, %v4166_v22 }
 0x3c3   :  { %1281 = vmatprep.mubr.f32.mxu1 %v6562_v5 }
 0x3c6   :  { %4175 = vmatmul.mubr.msk.f32.gmra.mxu1 %vm663_vm0, %v4167_v23 }
 0x3c7   :  { %1287 = vmatprep.mubr.f32.mxu1 %v6562_v5 }
 0x3ca   :  { %4176 = vmatmul.mubr.msk.f32.gmra.mxu1 %vm663_vm0, %v4168_v24 }
 0x3cb   :  { %1293 = vmatprep.mubr.f32.mxu1 %v6562_v5 }
 0x3ce   :  { %4177 = vmatmul.mubr.msk.f32.gmra.mxu1 %vm663_vm0, %v4169_v11 }
 0x3cf   :  { %1299 = vmatprep.mubr.f32.mxu1 %v6562_v5 }
 0x3d2   :  { %4178 = vmatmul.mubr.msk.f32.gmra.mxu1 %vm663_vm0, %v4170_v12 }
 0x3d3   :  { %1305 = vmatprep.mubr.f32.mxu1 %v6562_v5 }
 0x3d6   :  { %4179 = vmatmul.mubr.msk.f32.gmra.mxu1 %vm663_vm0, %v4171_v13 }
 0x3d7   :  { %1311 = vmatprep.mubr.f32.mxu1 %v6562_v5 }
 0x3da   :  { %4180 = vmatmul.mubr.msk.f32.gmra.mxu1 %vm663_vm0, %v4172_v14 }
 0x3db   :  { %1455 = vmatprep.mubr.f32.mxu1 %v6562_v5 }
 0x47e   :  { %v1271_v52 = vpop.f32.mrf.mxu1 }
 0x480   :  { %v1273_v53 = vpop.f32.mrf.mxu1 }
 0x482   :  { %v1277_v54 = vpop.f32.mrf.mxu1 }
 0x484   :  { %v1279_v55 = vpop.f32.mrf.mxu1 }
 0x486   :  { %v1283_v62 = vpop.f32.mrf.mxu1 }
 0x487   :  { %1322 = vrot.lane.b32.xlu0 %v1283_v62, %s4716_s12 }
 0x488   :  { %v1285_v56 = vpop.f32.mrf.mxu1 }
 0x489   :  { %1330 = vrot.lane.b32.xlu1 %v1285_v56, %s4716_s12 }
 0x48a   :  { %v1289_v58 = vpop.f32.mrf.mxu1 }
 0x48b   :  { %1324 = vrot.lane.b32.xlu0 %v1289_v58, %s4716_s12 }
 0x48c   :  { %v1291_v1 = vpop.f32.mrf.mxu1 }
 0x48d   :  { %1332 = vrot.lane.b32.xlu1 %v1291_v1, %s4716_s12 }
 0x48e   :  { %v1295_v27 = vpop.f32.mrf.mxu1 }
 0x48f   :  { %1320 = vrot.lane.b32.xlu0 %v1277_v54, %s4716_s12 }
 0x490   :  { %v1297_v28 = vpop.f32.mrf.mxu1 }
 0x491   :  { %1328 = vrot.lane.b32.xlu1 %v1279_v55, %s4716_s12 }
 0x492   :  { %v1301_v29 = vpop.f32.mrf.mxu1 }
 0x493   :  { %1318 = vrot.lane.b32.xlu0 %v1271_v52, %s4716_s12 }
 0x494   :  { %v1303_v51 = vpop.f32.mrf.mxu1 }
 0x495   :  { %1326 = vrot.lane.b32.xlu1 %v1273_v53, %s4716_s12 }
 0x496   :  { %v1307_v60 = vpop.f32.mrf.mxu1 }
 0x498   :  { %v1309_v30 = vpop.f32.mrf.mxu1 }
 0x49a   :  { %v1313_v59 = vpop.f32.mrf.mxu1 }
 0x49c   :  { %v1315_v36 = vpop.f32.mrf.mxu1 }
 0x4f9   :  { %v1323_v31 = vpop.permute.xlu0 %1322 }
 0x4fb   :  { %v1331_v50 = vpop.permute.xlu1 %1330 }
 0x4fc   :  { %v1336_v33 = vsel %vm817_vm2, %v1323_v31, %v1331_v50  ;;  %v1340_v34 = vsel %vm817_vm2, %v1331_v50, %v1323_v31 }
 0x4fd   :  { %v1325_v32 = vpop.permute.xlu0 %1324  ;;  %v1347_v39 = vsel %vm4914_vm3, 0.0, %v1336_v33  ;;  %v1346_v43 = vsel %vm653_vm4, 0.0, %v1340_v34 }
 0x4fe   :  { %v1355_v24 = vadd.f32 %v1347_v39, %v1309_v30  ;;  %v1354_v13 = vadd.f32 %v1346_v43, %v1307_v60 }
 0x4ff   :  { %v1333_v35 = vpop.permute.xlu1 %1332 }
 0x500   :  { %v1337_v37 = vsel %vm817_vm2, %v1325_v32, %v1333_v35  ;;  %v1341_v38 = vsel %vm817_vm2, %v1333_v35, %v1325_v32 }
 0x501   :  { %v1348_v40 = vsel %vm653_vm4, 0.0, %v1341_v38  ;;  %v1321_v41 = vpop.permute.xlu0 %1320  ;;  %v1349_v42 = vsel %vm4914_vm3, 0.0, %v1337_v37 }
 0x502   :  { %v1356_v21 = vadd.f32 %v1348_v40, %v1313_v59  ;;  %v1357_v22 = vadd.f32 %v1349_v42, %v1315_v36 }
 0x503   :  { %v1329_v23 = vpop.permute.xlu1 %1328 }
 0x504   :  { %v1335_v11 = vsel %vm817_vm2, %v1321_v41, %v1329_v23  ;;  %v1339_v12 = vsel %vm817_vm2, %v1329_v23, %v1321_v41  ;;  %1415 = vmatprep.subr.mxu1 %v1357_v22 }
 0x505   :  { %v1344_v14 = vsel %vm653_vm4, 0.0, %v1339_v12  ;;  %v1345_v52 = vsel %vm4914_vm3, 0.0, %v1335_v11  ;;  %1416 = vmatpush1.msra.mxu1 %v1356_v21  ;;  %v1319_v55 = vpop.permute.xlu0 %1318 }
 0x506   :  { %v1352_v53 = vadd.f32 %v1344_v14, %v1301_v29  ;;  %v1353_v54 = vadd.f32 %v1345_v52, %v1303_v51  ;;  %1417 = vmatprep.subr.mxu1 %v1355_v24  ;;  %v4188_v29 = vld [vmem:[%s6557_s4 + $0x78] sm:$0xff]  ;;  %v5239_v51 = vpop.f32.mrf.mxu0 }
 0x507   :  { %v1327_v62 = vpop.permute.xlu1 %1326  ;;  %1418 = vmatpush1.msra.mxu1 %v1354_v13 }
 0x508   :  { %v1334_v56 = vsel %vm817_vm2, %v1319_v55, %v1327_v62  ;;  %v1338_v58 = vsel %vm817_vm2, %v1327_v62, %v1319_v55  ;;  %1419 = vmatprep.subr.mxu1 %v1353_v54  ;;  %v5241_v60 = vpop.f32.mrf.mxu0 }
 0x509   :  { %v1342_v63 = vsel %vm653_vm4, 0.0, %v1338_v58  ;;  %v1343_v1 = vsel %vm4914_vm3, 0.0, %v1334_v56  ;;  %1420 = vmatpush1.msra.mxu1 %v1352_v53 }
 0x50a   :  { %v1350_v3 = vadd.f32 %v1342_v63, %v1295_v27  ;;  %v1351_v6 = vadd.f32 %v1343_v1, %v1297_v28  ;;  %v4186_v27 = vld [vmem:[%s6557_s4 + $0x68] sm:$0xff]  ;;  %v4187_v28 = vld [vmem:[%s6557_s4 + $0x70] sm:$0xff]  ;;  %v393_v30 = vpop.f32.mrf.mxu0 }
 0x50c   :  { %1421 = vmatprep.subr.mxu1 %v1351_v6  ;;  %v395_v31 = vpop.f32.mrf.mxu0 }
 0x50d   :  { %1422 = vmatpush1.msra.mxu1 %v1350_v3 }
 0x50e   :  { %4189 = vmatmul.mubr.msk.f32.vlgmr.msra.gmra.mxu1 %vm663_vm0, %v4181_v7  ;;  %v399_v50 = vpop.f32.mrf.mxu0 }
 0x50f   :  { %1461 = vmatprep.mubr.f32.mxu1 %v6562_v5 }
 0x510   :  { %v401_v59 = vpop.f32.mrf.mxu0 }
 0x512   :  { %4190 = vmatmul.mubr.msk.f32.gmra.mxu1 %vm663_vm0, %v4182_v17  ;;  %v405_v32 = vpop.f32.mrf.mxu0 }
 0x513   :  { %1467 = vmatprep.mubr.f32.mxu1 %v6562_v5 }
 0x514   :  { %v407_v33 = vpop.f32.mrf.mxu0 }
 0x516   :  { %4191 = vmatmul.mubr.msk.f32.gmra.mxu1 %vm663_vm0, %v4183_v20  ;;  %v411_v36 = vpop.f32.mrf.mxu0 }
 0x517   :  { %1473 = vmatprep.mubr.f32.mxu1 %v6562_v5 }
 0x518   :  { %v413_v39 = vpop.f32.mrf.mxu0 }
 0x51a   :  { %4192 = vmatmul.mubr.msk.f32.gmra.mxu1 %vm663_vm0, %v4184_v25  ;;  %v417_v42 = vpop.f32.mrf.mxu0 }
 0x51b   :  { %1479 = vmatprep.mubr.f32.mxu1 %v6562_v5 }
 0x51c   :  { %v419_v22 = vpop.f32.mrf.mxu0 }
 0x51e   :  { %4193 = vmatmul.mubr.msk.f32.gmra.mxu1 %vm663_vm0, %v4185_v26  ;;  %v423_v11 = vpop.f32.mrf.mxu0 }
 0x51f   :  { %1485 = vmatprep.mubr.f32.mxu1 %v6562_v5 }
 0x520   :  { %v425_v52 = vpop.f32.mrf.mxu0 }
 0x522   :  { %4194 = vmatmul.mubr.msk.f32.gmra.mxu1 %vm663_vm0, %v4186_v27  ;;  %v429_v63 = vpop.f32.mrf.mxu0 }
 0x523   :  { %1491 = vmatprep.mubr.f32.mxu1 %v6562_v5 }
 0x524   :  { %v431_v27 = vpop.f32.mrf.mxu0 }
 0x526   :  { %4195 = vmatmul.mubr.msk.f32.gmra.mxu1 %vm663_vm0, %v4187_v28 }
 0x527   :  { %1497 = vmatprep.mubr.f32.mxu1 %v6562_v5 }
 0x52a   :  { %4196 = vmatmul.mubr.msk.f32.gmra.mxu1 %vm663_vm0, %v4188_v29 }
 0x52b   :  { %1649 = vmatprep.mubr.f32.mxu1 %v6562_v5 }
 0x5ce   :  { %v5243_v34 = vpop.f32.mrf.mxu1 }
 0x5d0   :  { %v5245_v35 = vpop.f32.mrf.mxu1 }
 0x5d2   :  { %v1463_v37 = vpop.f32.mrf.mxu1 }
 0x5d4   :  { %v1465_v38 = vpop.f32.mrf.mxu1 }
 0x5d6   :  { %v1469_v40 = vpop.f32.mrf.mxu1 }
 0x5d8   :  { %v1471_v41 = vpop.f32.mrf.mxu1 }
 0x5da   :  { %v1475_v43 = vpop.f32.mrf.mxu1 }
 0x5dc   :  { %v1477_v21 = vpop.f32.mrf.mxu1 }
 0x5de   :  { %v1481_v23 = vpop.f32.mrf.mxu1 }
 0x5df   :  { %v1482_v6 = vadd.f32 %v1481_v23, %v411_v36  ;;  %v1464_v36 = vadd.f32 %v1463_v37, %v393_v30  ;;  %v1466_v23 = vadd.f32 %v1465_v38, %v395_v31  ;;  %v1460_v38 = vadd.f32 %v5245_v35, %v5241_v60 }
 0x5e0   :  { %v1483_v24 = vpop.f32.mrf.mxu1 }
 0x5e1   :  { %v1484_v13 = vadd.f32 %v1483_v24, %v413_v39  ;;  %v1470_v24 = vadd.f32 %v1469_v40, %v399_v50  ;;  %v1458_v40 = vadd.f32 %v5243_v34, %v5239_v51 }
 0x5e2   :  { %v1487_v12 = vpop.f32.mrf.mxu1 }
 0x5e3   :  { %v4198_v55 = vmul.f32 -1.442695, %v1484_v13  ;;  %v1488_v56 = vadd.f32 %v1487_v12, %v417_v42  ;;  %v1472_v12 = vadd.f32 %v1471_v41, %v401_v59 }
 0x5e4   :  { %v1489_v14 = vpop.f32.mrf.mxu1 }
 0x5e5   :  { %v1490_v53 = vadd.f32 %v1489_v14, %v419_v22  ;;  %4474 = vpow2.f32 %v4198_v55  ;;  %v4199_v26 = vmul.f32 -1.442695, %v1488_v56  ;;  %v4197_v22 = vmul.f32 -1.442695, %v1482_v6 }
 0x5e6   :  { %v1493_v54 = vpop.f32.mrf.mxu1  ;;  %v1476_v14 = vadd.f32 %v1475_v43, %v405_v32 }
 0x5e7   :  { %v1494_v62 = vadd.f32 %v1493_v54, %v423_v11  ;;  %v4200_v58 = vmul.f32 -1.442695, %v1490_v53  ;;  %v1478_v53 = vadd.f32 %v1477_v21, %v407_v33 }
 0x5e8   :  { %v1495_v1 = vpop.f32.mrf.mxu1 }
 0x5e9   :  { %v1496_v3 = vadd.f32 %v1495_v1, %v425_v52  ;;  %v4201_v7 = vmul.f32 -1.442695, %v1494_v62  ;;  %4476 = vpow2.f32 %v4200_v58 }
 0x5ea   :  { %v1499_v17 = vpop.f32.mrf.mxu1 }
 0x5eb   :  { %v4202_v20 = vmul.f32 -1.442695, %v1496_v3  ;;  %v1500_v25 = vadd.f32 %v1499_v17, %v429_v63 }
 0x5ec   :  { %v1501_v28 = vpop.f32.mrf.mxu1 }
 0x5ed   :  { %4478 = vpow2.f32 %v4202_v20  ;;  %v4203_v29 = vmul.f32 -1.442695, %v1500_v25  ;;  %v1502_v39 = vadd.f32 %v1501_v28, %v431_v27 }
 0x5ee   :  { %4480 = vpow2.f32 %v4201_v7 }
 0x5ef   :  { %4482 = vpow2.f32 %v4203_v29  ;;  %v4204_v42 = vmul.f32 -1.442695, %v1502_v39 }
 0x5f0   :  { %4484 = vpow2.f32 %v4199_v26 }
 0x5f1   :  { %4486 = vpow2.f32 %v4204_v42 }
 0x5f2   :  { %4488 = vpow2.f32 %v4197_v22  ;;  %v4475_v11 = vpop.eup %4474 }
 0x5f3   :  { %4490 = vtanh.f32 %v1464_v36  ;;  %v1537_v32 = vadd.f32 1.0, %v4475_v11  ;;  %v4205_v11 = vld [vmem:[%s6558_s6 + $0x20] sm:$0xff] }
 0x5f4   :  { %4492 = vtanh.f32 %v1466_v23 }
 0x5f5   :  { %4494 = vtanh.f32 %v1470_v24 }
 0x5f6   :  { %v4477_v13 = vpop.eup %4476  ;;  %4496 = vtanh.f32 %v1472_v12  ;;  %v4206_v12 = vld [vmem:[%s6558_s6 + $0x28] sm:$0xff] }
 0x5f7   :  { %4498 = vtanh.f32 %v1476_v14  ;;  %v1539_v50 = vadd.f32 1.0, %v4477_v13  ;;  %v4207_v13 = vld [vmem:[%s6558_s6 + $0x30] sm:$0xff]  ;;  %v4208_v14 = vld [vmem:[%s6558_s6 + $0x38] sm:$0xff] }
 0x5f8   :  { %4500 = vtanh.f32 %v1478_v53 }
 0x5fa   :  { %v4479_v52 = vpop.eup %4478 }
 0x5fb   :  { %v4481_v54 = vpop.eup %4480  ;;  %v1541_v55 = vadd.f32 1.0, %v4479_v52 }
 0x5fc   :  { %v4483_v62 = vpop.eup %4482  ;;  %v1540_v30 = vadd.f32 1.0, %v4481_v54 }
 0x5fd   :  { %v4485_v56 = vpop.eup %4484  ;;  %v1542_v58 = vadd.f32 1.0, %v4483_v62  ;;  %4502 = vrcp.f32 %v1541_v55 }
 0x5fe   :  { %v4487_v63 = vpop.eup %4486  ;;  %v1538_v37 = vadd.f32 1.0, %v4485_v56 }
 0x5ff   :  { %v4489_v31 = vpop.eup %4488  ;;  %v1543_v59 = vadd.f32 1.0, %v4487_v63  ;;  %4504 = vrcp.f32 %v1542_v58 }
 0x600   :  { %v1536_v33 = vadd.f32 1.0, %v4489_v31  ;;  %v4491_v41 = vpop.eup %4490 }
 0x601   :  { %4506 = vrcp.f32 %v1543_v59  ;;  %v4493_v43 = vpop.eup %4492 }
 0x602   :  { %4508 = vrcp.f32 %v1540_v30  ;;  %v4495_v21 = vpop.eup %4494 }
 0x603   :  { %4510 = vrcp.f32 %v1539_v50  ;;  %v4497_v1 = vpop.eup %4496 }
 0x604   :  { %4512 = vrcp.f32 %v1538_v37  ;;  %v4499_v3 = vpop.eup %4498  ;;  %v4217_v37 = vld [vmem:[%s6554_s3 + $0xa0] sm:$0xff] }
 0x605   :  { %4514 = vrcp.f32 %v1537_v32  ;;  %v4501_v6 = vpop.eup %4500  ;;  %v4218_v32 = vld [vmem:[%s6554_s3 + $0xa8] sm:$0xff] }
 0x606   :  { %4516 = vrcp.f32 %v1536_v33  ;;  %v4219_v33 = vld [vmem:[%s6554_s3 + $0xb0] sm:$0xff] }
 0x607   :  { %4518 = vtanh.f32 %v1460_v38  ;;  %v4220_v38 = vld [vmem:[%s6554_s3 + $0xb8] sm:$0xff] }
 0x608   :  { %4520 = vtanh.f32 %v1458_v40  ;;  %v96_v40 = vld [vmem:[%s6556_s5 + $0x80] sm:$0xff] }
 0x609   :  { %4105 = vmatmul.mubr.msk.f32.gmra.mxu0 %vm128_vm1, %v96_v40 }
 0x60a   :  { %v4503_v7 = vpop.eup %4502  ;;  %439 = vmatprep.mubr.f32.mxu0 %v6562_v5 }
 0x60b   :  { %v1565_v51 = vmul.f32 %v4503_v7, %v4497_v1  ;;  %v100_v1 = vld [vmem:[%s6556_s5 + $0xa0] sm:$0xff]  ;;  %v103_v7 = vld [vmem:[%s6556_s5 + $0xb8] sm:$0xff] }
 0x60c   :  { %v4505_v17 = vpop.eup %4504 }
 0x60d   :  { %v1566_v26 = vmul.f32 %v4505_v17, %v4499_v3  ;;  %v101_v3 = vld [vmem:[%s6556_s5 + $0xa8] sm:$0xff]  ;;  %v104_v17 = vld [vmem:[%s6556_s5 + $0xc0] sm:$0xff] }
 0x60e   :  { %v4507_v20 = vpop.eup %4506 }
 0x60f   :  { %v4509_v25 = vpop.eup %4508  ;;  %v1567_v60 = vmul.f32 %v4507_v20, %v4501_v6  ;;  %v102_v6 = vld [vmem:[%s6556_s5 + $0xb0] sm:$0xff]  ;;  %v105_v20 = vld [vmem:[%s6556_s5 + $0xc8] sm:$0xff] }
 0x610   :  { %v4511_v35 = vpop.eup %4510  ;;  %v1564_v28 = vmul.f32 %v4509_v25, %v4495_v21  ;;  %v99_v21 = vld [vmem:[%s6556_s5 + $0x98] sm:$0xff]  ;;  %v106_v25 = vld [vmem:[%s6556_s5 + $0xd0] sm:$0xff] }
 0x611   :  { %v4513_v27 = vpop.eup %4512  ;;  %1609 = vmatprep.subr.mxu1 %v1567_v60  ;;  %v1563_v39 = vmul.f32 %v4511_v35, %v4493_v43  ;;  %v98_v43 = vld [vmem:[%s6556_s5 + $0x90] sm:$0xff]  ;;  %v107_v60 = vld [vmem:[%s6556_s5 + $0xd8] sm:$0xff]  ;;  %v108_v35 = vld [vmem:[%s6556_s5 + $0xe0] sm:$0xff] }
 0x612   :  { %v4515_v34 = vpop.eup %4514  ;;  %1610 = vmatpush1.msra.mxu1 %v1566_v26  ;;  %v1562_v42 = vmul.f32 %v4513_v27, %v4491_v41  ;;  %v97_v41 = vld [vmem:[%s6556_s5 + $0x88] sm:$0xff]  ;;  %v110_v27 = vld [vmem:[%s6556_s5 + $0xf0] sm:$0xff] }
 0x613   :  { %v4517_v29 = vpop.eup %4516  ;;  %1611 = vmatprep.subr.mxu1 %v1565_v51  ;;  %4106 = vmatmul.mubr.msk.f32.gmra.mxu0 %vm128_vm1, %v97_v41  ;;  %v109_v26 = vld [vmem:[%s6556_s5 + $0xe8] sm:$0xff]  ;;  %v111_v51 = vld [vmem:[%s6556_s5 + $0xf8] sm:$0xff] }
 0x614   :  { %v4519_v22 = vpop.eup %4518  ;;  %1612 = vmatpush1.msra.mxu1 %v1564_v28  ;;  %445 = vmatprep.mubr.f32.mxu0 %v6562_v5  ;;  %v113_v28 = vld [vmem:[%s6556_s5 + $0x108] sm:$0xff] }
 0x615   :  { %v4521_v36 = vpop.eup %4520  ;;  %1613 = vmatprep.subr.mxu1 %v1563_v39  ;;  %v1561_v23 = vmul.f32 %v4519_v22, %v4515_v34  ;;  %v112_v34 = vld [vmem:[%s6556_s5 + $0x100] sm:$0xff]  ;;  %v115_v39 = vld [vmem:[%s6556_s5 + $0x118] sm:$0xff] }
 0x616   :  { %1614 = vmatpush1.msra.mxu1 %v1562_v42  ;;  %v1560_v24 = vmul.f32 %v4521_v36, %v4517_v29  ;;  %v114_v29 = vld [vmem:[%s6556_s5 + $0x110] sm:$0xff]  ;;  %v116_v22 = vld [vmem:[%s6556_s5 + $0x120] sm:$0xff]  ;;  %v117_v42 = vld [vmem:[%s6556_s5 + $0x128] sm:$0xff] }
 0x617   :  { %1615 = vmatprep.subr.mxu1 %v1561_v23  ;;  %4107 = vmatmul.mubr.msk.f32.gmra.mxu0 %vm128_vm1, %v98_v43  ;;  %v118_v36 = vld [vmem:[%s6556_s5 + $0x130] sm:$0xff]  ;;  %v119_v23 = vld [vmem:[%s6556_s5 + $0x138] sm:$0xff] }
 0x618   :  { %1616 = vmatpush1.msra.mxu1 %v1560_v24  ;;  %451 = vmatprep.mubr.f32.mxu0 %v6562_v5  ;;  %v120_v24 = vld [vmem:[%s6556_s5 + $0x140] sm:$0xff] }
 0x619   :  { %4209 = vmatmul.mubr.msk.f32.vlgmr.msra.gmra.mxu1 %vm663_vm0, %v4205_v11  ;;  %v121_v11 = vld [vmem:[%s6556_s5 + $0x148] sm:$0xff] }
 0x61a   :  { %1655 = vmatprep.mubr.f32.mxu1 %v6562_v5 }
 0x61b   :  { %4108 = vmatmul.mubr.msk.f32.gmra.mxu0 %vm128_vm1, %v99_v21 }
 0x61c   :  { %457 = vmatprep.mubr.f32.mxu0 %v6562_v5 }
 0x61d   :  { %4210 = vmatmul.mubr.msk.f32.gmra.mxu1 %vm663_vm0, %v4206_v12  ;;  %v122_v12 = vld [vmem:[%s6556_s5 + $0x150] sm:$0xff] }
 0x61e   :  { %1661 = vmatprep.mubr.f32.mxu1 %v6562_v5 }
 0x61f   :  { %4109 = vmatmul.mubr.msk.f32.gmra.mxu0 %vm128_vm1, %v100_v1 }
 0x620   :  { %463 = vmatprep.mubr.f32.mxu0 %v6562_v5 }
 0x621   :  { %4211 = vmatmul.mubr.msk.f32.gmra.mxu1 %vm663_vm0, %v4207_v13  ;;  %v123_v13 = vld [vmem:[%s6556_s5 + $0x158] sm:$0xff] }
 0x622   :  { %1667 = vmatprep.mubr.f32.mxu1 %v6562_v5 }
 0x623   :  { %4110 = vmatmul.mubr.msk.f32.gmra.mxu0 %vm128_vm1, %v101_v3 }
 0x624   :  { %469 = vmatprep.mubr.f32.mxu0 %v6562_v5 }
 0x625   :  { %4212 = vmatmul.mubr.msk.f32.gmra.mxu1 %vm663_vm0, %v4208_v14  ;;  %v124_v14 = vld [vmem:[%s6556_s5 + $0x160] sm:$0xff] }
 0x626   :  { %1787 = vmatprep.mubr.f32.mxu1 %v6562_v5 }
 0x627   :  { %4111 = vmatmul.mubr.msk.f32.gmra.mxu0 %vm128_vm1, %v102_v6 }
 0x628   :  { %475 = vmatprep.mubr.f32.mxu0 %v6562_v5 }
 0x62b   :  { %4112 = vmatmul.mubr.msk.f32.gmra.mxu0 %vm128_vm1, %v103_v7 }
 0x62c   :  { %481 = vmatprep.mubr.f32.mxu0 %v6562_v5 }
 0x62f   :  { %4113 = vmatmul.mubr.msk.f32.gmra.mxu0 %vm128_vm1, %v104_v17 }
 0x630   :  { %487 = vmatprep.mubr.f32.mxu0 %v6562_v5 }
 0x633   :  { %4114 = vmatmul.mubr.msk.f32.gmra.mxu0 %vm128_vm1, %v105_v20 }
 0x634   :  { %493 = vmatprep.mubr.f32.mxu0 %v6562_v5 }
 0x637   :  { %4115 = vmatmul.mubr.msk.f32.gmra.mxu0 %vm128_vm1, %v106_v25 }
 0x638   :  { %499 = vmatprep.mubr.f32.mxu0 %v6562_v5 }
 0x63b   :  { %4116 = vmatmul.mubr.msk.f32.gmra.mxu0 %vm128_vm1, %v107_v60 }
 0x63c   :  { %505 = vmatprep.mubr.f32.mxu0 %v6562_v5 }
 0x63f   :  { %4117 = vmatmul.mubr.msk.f32.gmra.mxu0 %vm128_vm1, %v108_v35 }
 0x640   :  { %511 = vmatprep.mubr.f32.mxu0 %v6562_v5 }
 0x643   :  { %4118 = vmatmul.mubr.msk.f32.gmra.mxu0 %vm128_vm1, %v109_v26 }
 0x644   :  { %517 = vmatprep.mubr.f32.mxu0 %v6562_v5 }
 0x647   :  { %4119 = vmatmul.mubr.msk.f32.gmra.mxu0 %vm128_vm1, %v110_v27 }
 0x648   :  { %523 = vmatprep.mubr.f32.mxu0 %v6562_v5 }
 0x64b   :  { %4120 = vmatmul.mubr.msk.f32.gmra.mxu0 %vm128_vm1, %v111_v51 }
 0x64c   :  { %529 = vmatprep.mubr.f32.mxu0 %v6562_v5 }
 0x64f   :  { %4121 = vmatmul.mubr.msk.f32.gmra.mxu0 %vm128_vm1, %v112_v34 }
 0x650   :  { %535 = vmatprep.mubr.f32.mxu0 %v6562_v5 }
 0x653   :  { %4122 = vmatmul.mubr.msk.f32.gmra.mxu0 %vm128_vm1, %v113_v28 }
 0x654   :  { %541 = vmatprep.mubr.f32.mxu0 %v6562_v5 }
 0x657   :  { %4123 = vmatmul.mubr.msk.f32.gmra.mxu0 %vm128_vm1, %v114_v29 }
 0x658   :  { %547 = vmatprep.mubr.f32.mxu0 %v6562_v5 }
 0x65b   :  { %4124 = vmatmul.mubr.msk.f32.gmra.mxu0 %vm128_vm1, %v115_v39 }
 0x65c   :  { %553 = vmatprep.mubr.f32.mxu0 %v6562_v5 }
 0x65f   :  { %4125 = vmatmul.mubr.msk.f32.gmra.mxu0 %vm128_vm1, %v116_v22 }
 0x660   :  { %559 = vmatprep.mubr.f32.mxu0 %v6562_v5 }
 0x663   :  { %4126 = vmatmul.mubr.msk.f32.gmra.mxu0 %vm128_vm1, %v117_v42 }
 0x664   :  { %565 = vmatprep.mubr.f32.mxu0 %v6562_v5 }
 0x667   :  { %4127 = vmatmul.mubr.msk.f32.gmra.mxu0 %vm128_vm1, %v118_v36 }
 0x668   :  { %571 = vmatprep.mubr.f32.mxu0 %v6562_v5 }
 0x66b   :  { %4128 = vmatmul.mubr.msk.f32.gmra.mxu0 %vm128_vm1, %v119_v23 }
 0x66c   :  { %577 = vmatprep.mubr.f32.mxu0 %v6562_v5 }
 0x66f   :  { %4129 = vmatmul.mubr.msk.f32.gmra.mxu0 %vm128_vm1, %v120_v24 }
 0x670   :  { %583 = vmatprep.mubr.f32.mxu0 %v6562_v5 }
 0x673   :  { %4130 = vmatmul.mubr.msk.f32.gmra.mxu0 %vm128_vm1, %v121_v11 }
 0x674   :  { %589 = vmatprep.mubr.f32.mxu0 %v6562_v5 }
 0x677   :  { %4131 = vmatmul.mubr.msk.f32.gmra.mxu0 %vm128_vm1, %v122_v12 }
 0x678   :  { %595 = vmatprep.mubr.f32.mxu0 %v6562_v5 }
 0x67b   :  { %4132 = vmatmul.mubr.msk.f32.gmra.mxu0 %vm128_vm1, %v123_v13 }
 0x67c   :  { %601 = vmatprep.mubr.f32.mxu0 %v6562_v5 }
 0x67f   :  { %4133 = vmatmul.mubr.msk.f32.gmra.mxu0 %vm128_vm1, %v124_v14 }
 0x680   :  { %607 = vmatprep.mubr.f32.mxu0 %v6562_v5 }
 0x6c9   :  { %v5535_v21 = vpop.f32.mrf.mxu0 }
 0x6cb   :  { %v5537_v1 = vpop.f32.mrf.mxu0 }
 0x6d3   :  { %v5539_v3 = vpop.f32.mrf.mxu0 }
 0x6d5   :  { %v5541_v6 = vpop.f32.mrf.mxu0 }
 0x6d7   :  { %v5543_v7 = vpop.f32.mrf.mxu0 }
 0x6d9   :  { %v5271_v52 = vpop.f32.mrf.mxu1  ;;  %v5545_v20 = vpop.f32.mrf.mxu0 }
 0x6db   :  { %v5273_v53 = vpop.f32.mrf.mxu1  ;;  %v5547_v60 = vpop.f32.mrf.mxu0 }
 0x6dd   :  { %v5275_v54 = vpop.f32.mrf.mxu1  ;;  %v5549_v26 = vpop.f32.mrf.mxu0 }
 0x6df   :  { %v5277_v55 = vpop.f32.mrf.mxu1  ;;  %v5551_v51 = vpop.f32.mrf.mxu0 }
 0x6e1   :  { %v5279_v62 = vpop.f32.mrf.mxu1  ;;  %v5553_v28 = vpop.f32.mrf.mxu0 }
 0x6e2   :  { %v5302_v59 = vadd.f32 %v5279_v62, %v5054_v10  ;;  %v5322_v10 = vadd.f32 %v5271_v52, %v5074_v18  ;;  %v4216_v18 = vld [vmem:[%s6554_s3 + $0x98] sm:$0xff] }
 0x6e3   :  { %v5281_v56 = vpop.f32.mrf.mxu1  ;;  %v5555_v39 = vpop.f32.mrf.mxu0 }
 0x6e4   :  { %v5297_v50 = vadd.f32 %v5281_v56, %v5049_v9  ;;  %v5317_v9 = vadd.f32 %v5273_v53, %v5069_v19  ;;  %v4215_v19 = vld [vmem:[%s6554_s3 + $0x90] sm:$0xff] }
 0x6e5   :  { %v5283_v58 = vpop.f32.mrf.mxu1  ;;  %v5557_v23 = vpop.f32.mrf.mxu0 }
 0x6e6   :  { %v5293_v31 = vadd.f32 %v5283_v58, %v5045_v8  ;;  %v5312_v8 = vadd.f32 %v5275_v54, %v5064_v16  ;;  %v4214_v16 = vld [vmem:[%s6554_s3 + $0x88] sm:$0xff] }
 0x6e7   :  { %v5285_v63 = vpop.f32.mrf.mxu1 }
 0x6e8   :  { %6572 = vst [vmem:[#allocation4_spill] sm:$0xff] %v5285_v63  ;;  %v5289_v30 = vadd.f32 %v5285_v63, %v5041_v4  ;;  %v5307_v4 = vadd.f32 %v5277_v55, %v5059_v15  ;;  %v4213_v15 = vld [vmem:[%s6554_s3 + $0x80] sm:$0xff] }
 0x6ea   :  { %1747 = vmatprep.subr.mxu1 %v5289_v30 }
 0x6eb   :  { %1748 = vmatpush1.msra.mxu1 %v5293_v31 }
 0x6ec   :  { %1749 = vmatprep.subr.mxu1 %v5297_v50 }
 0x6ed   :  { %1750 = vmatpush1.msra.mxu1 %v5302_v59 }
 0x6ee   :  { %1751 = vmatprep.subr.mxu1 %v5307_v4 }
 0x6ef   :  { %1752 = vmatpush1.msra.mxu1 %v5312_v8 }
 0x6f0   :  { %1753 = vmatprep.subr.mxu1 %v5317_v9 }
 0x6f1   :  { %1754 = vmatpush1.msra.mxu1 %v5322_v10 }
 0x6f2   :  { %4221 = vmatmul.mubr.msk.f32.vlgmr.msra.gmra.mxu1 %vm663_vm0, %v4213_v15 }
 0x6f3   :  { %1793 = vmatprep.mubr.f32.mxu1 %v6562_v5 }
 0x6f6   :  { %4222 = vmatmul.mubr.msk.f32.gmra.mxu1 %vm663_vm0, %v4214_v16  ;;  %v125_v16 = vld [vmem:[%s6556_s5 + $0x168] sm:$0xff] }
 0x6f7   :  { %1799 = vmatprep.mubr.f32.mxu1 %v6562_v5  ;;  %4134 = vmatmul.mubr.msk.f32.gmra.mxu0 %vm128_vm1, %v125_v16 }
 0x6f8   :  { %613 = vmatprep.mubr.f32.mxu0 %v6562_v5 }
 0x6fa   :  { %4223 = vmatmul.mubr.msk.f32.gmra.mxu1 %vm663_vm0, %v4215_v19 }
 0x6fb   :  { %1805 = vmatprep.mubr.f32.mxu1 %v6562_v5 }
 0x6fe   :  { %4224 = vmatmul.mubr.msk.f32.gmra.mxu1 %vm663_vm0, %v4216_v18 }
 0x6ff   :  { %1811 = vmatprep.mubr.f32.mxu1 %v6562_v5 }
 0x702   :  { %4225 = vmatmul.mubr.msk.f32.gmra.mxu1 %vm663_vm0, %v4217_v37  ;;  %v126_v37 = vld [vmem:[%s6556_s5 + $0x170] sm:$0xff] }
 0x703   :  { %1817 = vmatprep.mubr.f32.mxu1 %v6562_v5  ;;  %4135 = vmatmul.mubr.msk.f32.gmra.mxu0 %vm128_vm1, %v126_v37 }
 0x704   :  { %619 = vmatprep.mubr.f32.mxu0 %v6562_v5 }
 0x706   :  { %4226 = vmatmul.mubr.msk.f32.gmra.mxu1 %vm663_vm0, %v4218_v32 }
 0x707   :  { %1823 = vmatprep.mubr.f32.mxu1 %v6562_v5 }
 0x70a   :  { %4227 = vmatmul.mubr.msk.f32.gmra.mxu1 %vm663_vm0, %v4219_v33 }
 0x70b   :  { %1829 = vmatprep.mubr.f32.mxu1 %v6562_v5 }
 0x70e   :  { %4228 = vmatmul.mubr.msk.f32.gmra.mxu1 %vm663_vm0, %v4220_v38  ;;  %v127_v38 = vld [vmem:[%s6556_s5 + $0x178] sm:$0xff] }
 0x70f   :  { %2167 = vmatprep.mubr.f32.mxu1 %v6562_v5  ;;  %4136 = vmatmul.mubr.msk.f32.gmra.mxu0 %vm128_vm1, %v127_v38 }
 0x710   :  { %1973 = vmatprep.mubr.f32.mxu0 %v6562_v5 }
 0x7b2   :  { %v1789_v15 = vpop.f32.mrf.mxu1 }
 0x7b4   :  { %v1791_v19 = vpop.f32.mrf.mxu1 }
 0x7b6   :  { %v1795_v18 = vpop.f32.mrf.mxu1 }
 0x7b8   :  { %v1797_v32 = vpop.f32.mrf.mxu1 }
 0x7ba   :  { %v1801_v33 = vpop.f32.mrf.mxu1 }
 0x7bb   :  { %1840 = vrot.lane.b32.xlu0 %v1801_v33, %s4716_s12 }
 0x7bc   :  { %v1803_v40 = vpop.f32.mrf.mxu1 }
 0x7bd   :  { %1848 = vrot.lane.b32.xlu1 %v1803_v40, %s4716_s12 }
 0x7be   :  { %v1807_v41 = vpop.f32.mrf.mxu1 }
 0x7bf   :  { %1842 = vrot.lane.b32.xlu0 %v1807_v41, %s4716_s12 }
 0x7c0   :  { %v1809_v43 = vpop.f32.mrf.mxu1 }
 0x7c1   :  { %1850 = vrot.lane.b32.xlu1 %v1809_v43, %s4716_s12 }
 0x7c2   :  { %v1813_v17 = vpop.f32.mrf.mxu1 }
 0x7c3   :  { %1838 = vrot.lane.b32.xlu0 %v1795_v18, %s4716_s12 }
 0x7c4   :  { %v1815_v25 = vpop.f32.mrf.mxu1 }
 0x7c5   :  { %1846 = vrot.lane.b32.xlu1 %v1797_v32, %s4716_s12 }
 0x7c6   :  { %v1819_v35 = vpop.f32.mrf.mxu1 }
 0x7c7   :  { %1836 = vrot.lane.b32.xlu0 %v1789_v15, %s4716_s12 }
 0x7c8   :  { %v1821_v27 = vpop.f32.mrf.mxu1 }
 0x7c9   :  { %1844 = vrot.lane.b32.xlu1 %v1791_v19, %s4716_s12  ;;  %v5567_v19 = vpop.f32.mrf.mxu0 }
 0x7ca   :  { %v1825_v34 = vpop.f32.mrf.mxu1 }
 0x7cc   :  { %v1827_v29 = vpop.f32.mrf.mxu1 }
 0x7ce   :  { %v1831_v36 = vpop.f32.mrf.mxu1 }
 0x7d0   :  { %v1833_v14 = vpop.f32.mrf.mxu1 }
 0x82d   :  { %v1841_v22 = vpop.permute.xlu0 %1840 }
 0x82f   :  { %v1849_v42 = vpop.permute.xlu1 %1848 }
 0x830   :  { %v1854_v11 = vsel %vm817_vm2, %v1841_v22, %v1849_v42  ;;  %v1858_v12 = vsel %vm817_vm2, %v1849_v42, %v1841_v22 }
 0x831   :  { %v1843_v24 = vpop.permute.xlu0 %1842  ;;  %v1865_v18 = vsel %vm4914_vm3, 0.0, %v1854_v11  ;;  %v1864_v38 = vsel %vm653_vm4, 0.0, %v1858_v12  ;;  %v5581_v11 = vpop.f32.mrf.mxu0 }
 0x832   :  { %v1873_v22 = vadd.f32 %v1865_v18, %v1827_v29 }
 0x833   :  { %v1851_v13 = vpop.permute.xlu1 %1850 }
 0x834   :  { %v1855_v15 = vsel %vm817_vm2, %v1843_v24, %v1851_v13  ;;  %v1859_v16 = vsel %vm817_vm2, %v1851_v13, %v1843_v24  ;;  %v1872_v13 = vadd.f32 %v1864_v38, %v1825_v34  ;;  %v5591_v34 = vpop.f32.mrf.mxu0  ;;  %v4229_v38 = vld [vmem:[%s6557_s4 + $0x80] sm:$0xff] }
 0x835   :  { %v1866_v37 = vsel %vm653_vm4, 0.0, %v1859_v16  ;;  %v1867_v32 = vsel %vm4914_vm3, 0.0, %v1855_v15  ;;  %v1839_v33 = vpop.permute.xlu0 %1838 }
 0x836   :  { %v1874_v40 = vadd.f32 %v1866_v37, %v1831_v36  ;;  %v1875_v41 = vadd.f32 %v1867_v32, %v1833_v14 }
 0x837   :  { %v1847_v43 = vpop.permute.xlu1 %1846 }
 0x838   :  { %v1853_v42 = vsel %vm817_vm2, %v1839_v33, %v1847_v43  ;;  %v1857_v24 = vsel %vm817_vm2, %v1847_v43, %v1839_v33  ;;  %1933 = vmatprep.subr.mxu0 %v1875_v41  ;;  %v4230_v41 = vld [vmem:[%s6557_s4 + $0x88] sm:$0xff] }
 0x839   :  { %v1862_v15 = vsel %vm653_vm4, 0.0, %v1857_v24  ;;  %v1863_v12 = vsel %vm4914_vm3, 0.0, %v1853_v42  ;;  %1934 = vmatpush1.msra.mxu0 %v1874_v40  ;;  %v1837_v29 = vpop.permute.xlu0 %1836  ;;  %v5600_v40 = vpop.f32.mrf.mxu0  ;;  %v4233_v24 = vld [vmem:[%s6557_s4 + $0xa0] sm:$0xff] }
 0x83a   :  { %v1870_v36 = vadd.f32 %v1862_v15, %v1819_v35  ;;  %v1871_v14 = vadd.f32 %v1863_v12, %v1821_v27  ;;  %1935 = vmatprep.subr.mxu0 %v1873_v22  ;;  %v4232_v22 = vld [vmem:[%s6557_s4 + $0x98] sm:$0xff]  ;;  %v4234_v15 = vld [vmem:[%s6557_s4 + $0xa8] sm:$0xff] }
 0x83b   :  { %v1845_v16 = vpop.permute.xlu1 %1844  ;;  %1936 = vmatpush1.msra.mxu0 %v1872_v13  ;;  %v5607_v43 = vpop.f32.mrf.mxu0 }
 0x83c   :  { %v1852_v18 = vsel %vm817_vm2, %v1837_v29, %v1845_v16  ;;  %v1856_v37 = vsel %vm817_vm2, %v1845_v16, %v1837_v29  ;;  %1937 = vmatprep.subr.mxu0 %v1871_v14  ;;  %6573 = vst [vmem:[#allocation5_spill] sm:$0xff] %v5607_v43  ;;  %v4236_v29 = vld [vmem:[%s6557_s4 + $0xb8] sm:$0xff] }
 0x83d   :  { %v1860_v32 = vsel %vm653_vm4, 0.0, %v1856_v37  ;;  %v1861_v35 = vsel %vm4914_vm3, 0.0, %v1852_v18  ;;  %1938 = vmatpush1.msra.mxu0 %v1870_v36  ;;  %v4235_v36 = vld [vmem:[%s6557_s4 + $0xb0] sm:$0xff] }
 0x83e   :  { %v1868_v27 = vadd.f32 %v1860_v32, %v1813_v17  ;;  %v1869_v33 = vadd.f32 %v1861_v35, %v1815_v25  ;;  %v4231_v17 = vld [vmem:[%s6557_s4 + $0x90] sm:$0xff]  ;;  %v5614_v25 = vpop.f32.mrf.mxu0 }
 0x83f   :  { %6574 = vst [vmem:[#allocation6_spill] sm:$0xff] %v5614_v25 }
 0x840   :  { %1939 = vmatprep.subr.mxu0 %v1869_v33  ;;  %v5621_v42 = vpop.f32.mrf.mxu0 }
 0x841   :  { %1940 = vmatpush1.msra.mxu0 %v1868_v27  ;;  %6575 = vst [vmem:[#allocation7_spill] sm:$0xff] %v5621_v42 }
 0x842   :  { %4237 = vmatmul.mubr.msk.f32.vlgmr.msra.gmra.mxu0 %vm663_vm0, %v4229_v38  ;;  %v5628_v13 = vpop.f32.mrf.mxu0 }
 0x843   :  { %1979 = vmatprep.mubr.f32.mxu0 %v6562_v5  ;;  %6576 = vst [vmem:[#allocation8_spill] sm:$0xff] %v5628_v13 }
 0x844   :  { %v5635_v12 = vpop.f32.mrf.mxu0 }
 0x845   :  { %6577 = vst [vmem:[#allocation9_spill] sm:$0xff] %v5635_v12 }
 0x846   :  { %4238 = vmatmul.mubr.msk.f32.gmra.mxu0 %vm663_vm0, %v4230_v41  ;;  %v5642_v14 = vpop.f32.mrf.mxu0 }
 0x847   :  { %1985 = vmatprep.mubr.f32.mxu0 %v6562_v5  ;;  %6578 = vst [vmem:[#allocation10_spill] sm:$0xff] %v5642_v14 }
 0x848   :  { %v5649_v16 = vpop.f32.mrf.mxu0 }
 0x849   :  { %6579 = vst [vmem:[#allocation11_spill] sm:$0xff] %v5649_v16 }
 0x84a   :  { %4239 = vmatmul.mubr.msk.f32.gmra.mxu0 %vm663_vm0, %v4231_v17  ;;  %v5653_v18 = vpop.f32.mrf.mxu0 }
 0x84b   :  { %1991 = vmatprep.mubr.f32.mxu0 %v6562_v5  ;;  %6580 = vst [vmem:[#allocation12_spill] sm:$0xff] %v5653_v18 }
 0x84c   :  { %v5655_v37 = vpop.f32.mrf.mxu0 }
 0x84d   :  { %6581 = vst [vmem:[#allocation13_spill] sm:$0xff] %v5655_v37 }
 0x84e   :  { %4240 = vmatmul.mubr.msk.f32.gmra.mxu0 %vm663_vm0, %v4232_v22  ;;  %v5657_v32 = vpop.f32.mrf.mxu0 }
 0x84f   :  { %1997 = vmatprep.mubr.f32.mxu0 %v6562_v5  ;;  %6582 = vst [vmem:[#allocation14_spill] sm:$0xff] %v5657_v32 }
 0x850   :  { %v5659_v35 = vpop.f32.mrf.mxu0 }
 0x851   :  { %6583 = vst [vmem:[#allocation15_spill] sm:$0xff] %v5659_v35 }
 0x852   :  { %4241 = vmatmul.mubr.msk.f32.gmra.mxu0 %vm663_vm0, %v4233_v24  ;;  %v5661_v27 = vpop.f32.mrf.mxu0 }
 0x853   :  { %2003 = vmatprep.mubr.f32.mxu0 %v6562_v5  ;;  %6584 = vst [vmem:[#allocation16_spill] sm:$0xff] %v5661_v27 }
 0x854   :  { %v5663_v33 = vpop.f32.mrf.mxu0 }
 0x855   :  { %6585 = vst [vmem:[#allocation17_spill] sm:$0xff] %v5663_v33 }
 0x856   :  { %4242 = vmatmul.mubr.msk.f32.gmra.mxu0 %vm663_vm0, %v4234_v15  ;;  %v5665_v38 = vpop.f32.mrf.mxu0 }
 0x857   :  { %2009 = vmatprep.mubr.f32.mxu0 %v6562_v5  ;;  %6586 = vst [vmem:[#allocation18_spill] sm:$0xff] %v5665_v38 }
 0x858   :  { %v5667_v41 = vpop.f32.mrf.mxu0 }
 0x859   :  { %6587 = vst [vmem:[#allocation19_spill] sm:$0xff] %v5667_v41 }
 0x85a   :  { %4243 = vmatmul.mubr.msk.f32.gmra.mxu0 %vm663_vm0, %v4235_v36  ;;  %v5669_v17 = vpop.f32.mrf.mxu0 }
 0x85b   :  { %2015 = vmatprep.mubr.f32.mxu0 %v6562_v5  ;;  %6588 = vst [vmem:[#allocation20_spill] sm:$0xff] %v5669_v17 }
 0x85c   :  { %v5671_v22 = vpop.f32.mrf.mxu0 }
 0x85d   :  { %6589 = vst [vmem:[#allocation21_spill] sm:$0xff] %v5671_v22 }
 0x85e   :  { %4244 = vmatmul.mubr.msk.f32.gmra.mxu0 %vm663_vm0, %v4236_v29  ;;  %v5673_v24 = vpop.f32.mrf.mxu0 }
 0x85f   :  { %2491 = vmatprep.mubr.f32.mxu0 %v6562_v5  ;;  %6590 = vst [vmem:[#allocation22_spill] sm:$0xff] %v5673_v24 }
 0x860   :  { %v5675_v15 = vpop.f32.mrf.mxu0 }
 0x861   :  { %6591 = vst [vmem:[#allocation23_spill] sm:$0xff] %v5675_v15 }
 0x862   :  { %v5677_v36 = vpop.f32.mrf.mxu0 }
 0x863   :  { %6592 = vst [vmem:[#allocation24_spill] sm:$0xff] %v5677_v36 }
 0x864   :  { %v5679_v29 = vpop.f32.mrf.mxu0 }
 0x865   :  { %6593 = vst [vmem:[#allocation25_spill] sm:$0xff] %v5679_v29 }
 0x866   :  { %v5681_v5 = vpop.f32.mrf.mxu0 }
 0x867   :  { %6594 = vst [vmem:[#allocation26_spill] sm:$0xff] %v5681_v5 }
 0x868   :  { %v5683_v63 = vpop.f32.mrf.mxu0 }
 0x869   :  { %6595 = vst [vmem:[#allocation27_spill] sm:$0xff] %v5683_v63 }
 0x86a   :  { %v5685_v0 = vpop.f32.mrf.mxu0 }
 0x86b   :  { %6596 = vst [vmem:[#allocation28_spill] sm:$0xff] %v5685_v0 }
 0x86c   :  { %v5687_v43 = vpop.f32.mrf.mxu0 }
 0x86d   :  { %6597 = vst [vmem:[#allocation29_spill] sm:$0xff] %v5687_v43 }
 0x86e   :  { %v5689_v25 = vpop.f32.mrf.mxu0 }
 0x86f   :  { %6598 = vst [vmem:[#allocation30_spill] sm:$0xff] %v5689_v25 }
 0x870   :  { %v5691_v18 = vpop.f32.mrf.mxu0 }
 0x871   :  { %6599 = vst [vmem:[#allocation31_spill] sm:$0xff] %v5691_v18 }
 0x872   :  { %v5693_v22 = vpop.f32.mrf.mxu0 }
 0x873   :  { %6600 = vst [vmem:[#allocation32_spill] sm:$0xff] %v5693_v22 }
 0x874   :  { %v5695_v24 = vpop.f32.mrf.mxu0 }
 0x875   :  { %6601 = vst [vmem:[#allocation33_spill] sm:$0xff] %v5695_v24 }
 0x876   :  { %v5697_v15 = vpop.f32.mrf.mxu0 }
 0x877   :  { %6602 = vst [vmem:[#allocation34_spill] sm:$0xff] %v5697_v15 }
 0x878   :  { %v5699_v36 = vpop.f32.mrf.mxu0 }
 0x879   :  { %6603 = vst [vmem:[#allocation35_spill] sm:$0xff] %v5699_v36 }
 0x87a   :  { %v5701_v29 = vpop.f32.mrf.mxu0 }
 0x87b   :  { %6604 = vst [vmem:[#allocation36_spill] sm:$0xff] %v5701_v29 }
 0x87c   :  { %v5703_v5 = vpop.f32.mrf.mxu0 }
 0x87d   :  { %6605 = vst [vmem:[#allocation37_spill] sm:$0xff] %v5703_v5 }
 0x87e   :  { %v5705_v63 = vpop.f32.mrf.mxu0 }
 0x87f   :  { %6606 = vst [vmem:[#allocation38_spill] sm:$0xff] %v5705_v63 }
 0x880   :  { %v5707_v0 = vpop.f32.mrf.mxu0 }
 0x881   :  { %6607 = vst [vmem:[#allocation39_spill] sm:$0xff] %v5707_v0 }
 0x882   :  { %v5709_v43 = vpop.f32.mrf.mxu0 }
 0x883   :  { %6608 = vst [vmem:[#allocation40_spill] sm:$0xff] %v5709_v43 }
 0x884   :  { %v5711_v25 = vpop.f32.mrf.mxu0 }
 0x885   :  { %6609 = vst [vmem:[#allocation41_spill] sm:$0xff] %v5711_v25 }
 0x886   :  { %v5713_v18 = vpop.f32.mrf.mxu0 }
 0x887   :  { %6610 = vst [vmem:[#allocation42_spill] sm:$0xff] %v5713_v18 }
 0x888   :  { %v5715_v22 = vpop.f32.mrf.mxu0 }
 0x889   :  { %6611 = vst [vmem:[#allocation43_spill] sm:$0xff] %v5715_v22 }
 0x88a   :  { %v5717_v24 = vpop.f32.mrf.mxu0 }
 0x88b   :  { %6612 = vst [vmem:[#allocation44_spill] sm:$0xff] %v5717_v24 }
 0x88c   :  { %v5719_v15 = vpop.f32.mrf.mxu0 }
 0x88d   :  { %6613 = vst [vmem:[#allocation45_spill] sm:$0xff] %v5719_v15 }
 0x88e   :  { %v5721_v36 = vpop.f32.mrf.mxu0 }
 0x88f   :  { %6614 = vst [vmem:[#allocation46_spill] sm:$0xff] %v5721_v36 }
 0x890   :  { %v5723_v29 = vpop.f32.mrf.mxu0 }
 0x891   :  { %6615 = vst [vmem:[#allocation47_spill] sm:$0xff] %v5723_v29 }
 0x892   :  { %v5725_v5 = vpop.f32.mrf.mxu0 }
 0x893   :  { %6616 = vst [vmem:[#allocation48_spill] sm:$0xff] %v5725_v5 }
 0x894   :  { %v5727_v63 = vpop.f32.mrf.mxu0 }
 0x895   :  { %6617 = vst [vmem:[#allocation49_spill] sm:$0xff] %v5727_v63 }
 0x896   :  { %v5729_v0 = vpop.f32.mrf.mxu0 }
 0x897   :  { %6618 = vst [vmem:[#allocation50_spill] sm:$0xff] %v5729_v0 }
 0x898   :  { %v5731_v43 = vpop.f32.mrf.mxu0 }
 0x899   :  { %6619 = vst [vmem:[#allocation51_spill] sm:$0xff] %v5731_v43 }
 0x89a   :  { %v5733_v25 = vpop.f32.mrf.mxu0 }
 0x89b   :  { %6620 = vst [vmem:[#allocation52_spill] sm:$0xff] %v5733_v25 }
 0x902   :  { %v5735_v18 = vpop.f32.mrf.mxu0 }
 0x904   :  { %v5737_v22 = vpop.f32.mrf.mxu0 }
 0x906   :  { %v1981_v24 = vpop.f32.mrf.mxu0 }
 0x908   :  { %v1983_v15 = vpop.f32.mrf.mxu0 }
 0x90a   :  { %v1987_v16 = vpop.f32.mrf.mxu0 }
 0x90c   :  { %v1989_v36 = vpop.f32.mrf.mxu0 }
 0x90e   :  { %v1993_v14 = vpop.f32.mrf.mxu0 }
 0x910   :  { %v1995_v29 = vpop.f32.mrf.mxu0 }
 0x912   :  { %v1999_v12 = vpop.f32.mrf.mxu0 }
 0x913   :  { %v2000_v33 = vadd.f32 %v1999_v12, %v5551_v51  ;;  %v1982_v51 = vadd.f32 %v1981_v24, %v5539_v3 }
 0x914   :  { %v2001_v5 = vpop.f32.mrf.mxu0 }
 0x915   :  { %v2002_v63 = vadd.f32 %v2001_v5, %v5553_v28 }
 0x916   :  { %v2005_v13 = vpop.f32.mrf.mxu0 }
 0x917   :  { %v4246_v25 = vmul.f32 -1.442695, %v2002_v63  ;;  %v2006_v41 = vadd.f32 %v2005_v13, %v5555_v39  ;;  %v4245_v39 = vmul.f32 -1.442695, %v2000_v33  ;;  %v1996_v13 = vadd.f32 %v1995_v29, %v5549_v26 }
 0x918   :  { %v2007_v0 = vpop.f32.mrf.mxu0  ;;  %v1978_v33 = vadd.f32 %v5737_v22, %v5537_v1 }
 0x919   :  { %v2008_v43 = vadd.f32 %v2007_v0, %v5557_v23  ;;  %4522 = vpow2.f32 %v4246_v25  ;;  %v4247_v28 = vmul.f32 -1.442695, %v2006_v41  ;;  %v1990_v25 = vadd.f32 %v1989_v36, %v5545_v20 }
 0x91a   :  { %v2011_v42 = vpop.f32.mrf.mxu0 }
 0x91b   :  { %v2012_v17 = vadd.f32 %v2011_v42, %v5567_v19  ;;  %v4248_v37 = vmul.f32 -1.442695, %v2008_v43 }
 0x91c   :  { %v2013_v38 = vpop.f32.mrf.mxu0 }
 0x91d   :  { %v2014_v35 = vadd.f32 %v2013_v38, %v5581_v11  ;;  %v4249_v27 = vmul.f32 -1.442695, %v2012_v17  ;;  %4524 = vpow2.f32 %v4248_v37  ;;  %v1984_v11 = vadd.f32 %v1983_v15, %v5541_v6 }
 0x91e   :  { %v2017_v32 = vpop.f32.mrf.mxu0  ;;  %v1976_v38 = vadd.f32 %v5735_v18, %v5535_v21 }
 0x91f   :  { %v4250_v2 = vmul.f32 -1.442695, %v2014_v35  ;;  %v2018_v5 = vadd.f32 %v2017_v32, %v5591_v34  ;;  %v1988_v34 = vadd.f32 %v1987_v16, %v5543_v7 }
 0x920   :  { %v2019_v0 = vpop.f32.mrf.mxu0 }
 0x921   :  { %4526 = vpow2.f32 %v4250_v2  ;;  %v4251_v63 = vmul.f32 -1.442695, %v2018_v5  ;;  %v2020_v23 = vadd.f32 %v2019_v0, %v5600_v40  ;;  %v1994_v40 = vadd.f32 %v1993_v14, %v5547_v60 }
 0x922   :  { %4528 = vpow2.f32 %v4249_v27 }
 0x923   :  { %4530 = vpow2.f32 %v4251_v63  ;;  %v4252_v19 = vmul.f32 -1.442695, %v2020_v23 }
 0x924   :  { %4532 = vpow2.f32 %v4247_v28 }
 0x925   :  { %4534 = vpow2.f32 %v4252_v19 }
 0x926   :  { %4536 = vpow2.f32 %v4245_v39  ;;  %v4523_v43 = vpop.eup %4522 }
 0x927   :  { %4538 = vtanh.f32 %v1982_v51  ;;  %v2055_v14 = vadd.f32 1.0, %v4523_v43 }
 0x928   :  { %4540 = vtanh.f32 %v1984_v11 }
 0x929   :  { %4542 = vtanh.f32 %v1988_v34 }
 0x92a   :  { %v4525_v2 = vpop.eup %4524  ;;  %4544 = vtanh.f32 %v1990_v25 }
 0x92b   :  { %4546 = vtanh.f32 %v1994_v40  ;;  %v2057_v35 = vadd.f32 1.0, %v4525_v2 }
 0x92c   :  { %4548 = vtanh.f32 %v1996_v13  ;;  %v6621_v13 = vmov 0.0  }
 0x92e   :  { %v4527_v42 = vpop.eup %4526 }
 0x92f   :  { %v4529_v12 = vpop.eup %4528  ;;  %v2059_v37 = vadd.f32 1.0, %v4527_v42  ;;  %v4253_v42 = vld [vmem:[%s6558_s6 + $0x40] sm:$0xff] }
 0x930   :  { %v4531_v32 = vpop.eup %4530  ;;  %v2058_v16 = vadd.f32 1.0, %v4529_v12  ;;  %v4254_v12 = vld [vmem:[%s6558_s6 + $0x48] sm:$0xff] }
 0x931   :  { %v4533_v3 = vpop.eup %4532  ;;  %v2060_v6 = vadd.f32 1.0, %v4531_v32  ;;  %4550 = vrcp.f32 %v2059_v37  ;;  %v4255_v37 = vld [vmem:[%s6558_s6 + $0x50] sm:$0xff]  ;;  %v4256_v32 = vld [vmem:[%s6558_s6 + $0x58] sm:$0xff] }
 0x932   :  { %v4535_v7 = vpop.eup %4534  ;;  %v2056_v60 = vadd.f32 1.0, %v4533_v3  ;;  %v1682_v3 = vadd.f32 %v5271_v52, %v5023_v44  ;;  %v1686_v44 = vadd.f32 %v5279_v62, %v5031_v48 }
 0x933   :  { %v4537_v20 = vpop.eup %4536  ;;  %v2061_v27 = vadd.f32 1.0, %v4535_v7  ;;  %4552 = vrcp.f32 %v2060_v6  ;;  %v1683_v7 = vadd.f32 %v5273_v53, %v5025_v45  ;;  %v1687_v53 = vadd.f32 %v5281_v56, %v5033_v49 }
 0x934   :  { %v2054_v26 = vadd.f32 1.0, %v4537_v20  ;;  %v4539_v41 = vpop.eup %4538 }
 0x935   :  { %4554 = vrcp.f32 %v2061_v27  ;;  %v4541_v17 = vpop.eup %4540 }
 0x936   :  { %4556 = vrcp.f32 %v2058_v16  ;;  %v4543_v24 = vpop.eup %4542 }
 0x937   :  { %4558 = vrcp.f32 %v2057_v35  ;;  %v4545_v15 = vpop.eup %4544  ;;  %v1684_v35 = vadd.f32 %v5275_v54, %v5027_v46  ;;  %v1688_v54 = vadd.f32 %v5283_v58, %v5035_v61 }
 0x938   :  { %4560 = vrcp.f32 %v2056_v60  ;;  %v4547_v36 = vpop.eup %4546 }
 0x939   :  { %4562 = vrcp.f32 %v2055_v14  ;;  %v4549_v29 = vpop.eup %4548  ;;  %v1685_v14 = vadd.f32 %v5277_v55, %v5029_v47 }
 0x93a   :  { %4564 = vrcp.f32 %v2054_v26 }
 0x93b   :  { %4566 = vtanh.f32 %v1978_v33 }
 0x93c   :  { %4568 = vtanh.f32 %v1976_v38 }
 0x93e   :  { %v4551_v5 = vpop.eup %4550 }
 0x93f   :  { %v2083_v21 = vmul.f32 %v4551_v5, %v4545_v15  ;;  %v4268_v15 = vld [vmem:[%s6554_s3 + $0xf8] sm:$0xff] }
 0x940   :  { %v4553_v28 = vpop.eup %4552 }
 0x941   :  { %v2084_v23 = vmul.f32 %v4553_v28, %v4547_v36 }
 0x942   :  { %v4555_v0 = vpop.eup %4554 }
 0x943   :  { %v4557_v63 = vpop.eup %4556  ;;  %v2085_v1 = vmul.f32 %v4555_v0, %v4549_v29 }
 0x944   :  { %v4559_v22 = vpop.eup %4558  ;;  %v2082_v19 = vmul.f32 %v4557_v63, %v4543_v24  ;;  %v4267_v24 = vld [vmem:[%s6554_s3 + $0xf0] sm:$0xff] }
 0x945   :  { %v4561_v39 = vpop.eup %4560  ;;  %2127 = vmatprep.subr.mxu1 %v2085_v1  ;;  %v2081_v11 = vmul.f32 %v4559_v22, %v4541_v17 }
 0x946   :  { %v4563_v18 = vpop.eup %4562  ;;  %2128 = vmatpush1.msra.mxu1 %v2084_v23  ;;  %v2080_v43 = vmul.f32 %v4561_v39, %v4539_v41 }
 0x947   :  { %v4565_v51 = vpop.eup %4564  ;;  %2129 = vmatprep.subr.mxu1 %v2083_v21 }
 0x948   :  { %v4567_v34 = vpop.eup %4566  ;;  %2130 = vmatpush1.msra.mxu1 %v2082_v19 }
 0x949   :  { %v4569_v25 = vpop.eup %4568  ;;  %2131 = vmatprep.subr.mxu1 %v2081_v11  ;;  %v2079_v2 = vmul.f32 %v4567_v34, %v4563_v18 }
 0x94a   :  { %2132 = vmatpush1.msra.mxu1 %v2080_v43  ;;  %v2078_v40 = vmul.f32 %v4569_v25, %v4565_v51 }
 0x94b   :  { %2133 = vmatprep.subr.mxu1 %v2079_v2 }
 0x94c   :  { %2134 = vmatpush1.msra.mxu1 %v2078_v40 }
 0x94d   :  { %4257 = vmatmul.mubr.msk.f32.vlgmr.msra.gmra.mxu1 %vm663_vm0, %v4253_v42 }
 0x94e   :  { %2173 = vmatprep.mubr.f32.mxu1 %v6621_v13 }
 0x951   :  { %4258 = vmatmul.mubr.msk.f32.gmra.mxu1 %vm663_vm0, %v4254_v12 }
 0x952   :  { %2179 = vmatprep.mubr.f32.mxu1 %v6621_v13 }
 0x955   :  { %4259 = vmatmul.mubr.msk.f32.gmra.mxu1 %vm663_vm0, %v4255_v37 }
 0x956   :  { %2185 = vmatprep.mubr.f32.mxu1 %v6621_v13 }
 0x959   :  { %4260 = vmatmul.mubr.msk.f32.gmra.mxu1 %vm663_vm0, %v4256_v32 }
 0x95a   :  { %2305 = vmatprep.mubr.f32.mxu1 %v6621_v13 }
 0xa0d   :  { %v2169_v6 = vpop.f32.mrf.mxu1 }
 0xa0e   :  { %v5781_v16 = vadd.f32 %v2169_v6, %v1682_v3  ;;  %v4375_v3 = vld [vmem:[%s6557_s4 + $0x150] sm:$0xff] }
 0xa0f   :  { %v2171_v20 = vpop.f32.mrf.mxu1 }
 0xa10   :  { %v5785_v27 = vadd.f32 %v2171_v20, %v1683_v7 }
 0xa11   :  { %v2175_v60 = vpop.f32.mrf.mxu1 }
 0xa12   :  { %v5789_v26 = vadd.f32 %v2175_v60, %v1684_v35  ;;  %v5827_v58 = vadd.f32 %v2175_v60, %v5312_v8  ;;  %v4264_v8 = vld [vmem:[%s6554_s3 + $0xd8] sm:$0xff] }
 0xa13   :  { %v2177_v33 = vpop.f32.mrf.mxu1 }
 0xa14   :  { %v5793_v52 = vadd.f32 %v2177_v33, %v1685_v14  ;;  %v5823_v56 = vadd.f32 %v2177_v33, %v5307_v4  ;;  %v4263_v4 = vld [vmem:[%s6554_s3 + $0xd0] sm:$0xff] }
 0xa15   :  { %v2181_v45 = vpop.f32.mrf.mxu1 }
 0xa16   :  { %v5797_v38 = vadd.f32 %v2181_v45, %v1686_v44  ;;  %v5819_v61 = vadd.f32 %v2181_v45, %v5302_v59  ;;  %v4262_v59 = vld [vmem:[%s6554_s3 + $0xc8] sm:$0xff] }
 0xa17   :  { %v2183_v46 = vpop.f32.mrf.mxu1 }
 0xa18   :  { %v5801_v41 = vadd.f32 %v2183_v46, %v1687_v53  ;;  %v5815_v49 = vadd.f32 %v2183_v46, %v5297_v50  ;;  %v4261_v50 = vld [vmem:[%s6554_s3 + $0xc0] sm:$0xff] }
 0xa19   :  { %v2187_v47 = vpop.f32.mrf.mxu1 }
 0xa1a   :  { %v5803_v55 = vadd.f32 %v2187_v47, %v1688_v54  ;;  %v5812_v62 = vadd.f32 %v2187_v47, %v5293_v31  ;;  %v5835_v31 = vadd.f32 %v2169_v6, %v5322_v10  ;;  %v4266_v10 = vld [vmem:[%s6554_s3 + $0xe8] sm:$0xff] }
 0xa1b   :  { %v5805_v17 = vpop.f32.mrf.mxu1 }
 0xa1c   :  { %v5809_v48 = vadd.f32 %v5805_v17, %v5289_v30  ;;  %v5831_v30 = vadd.f32 %v2171_v20, %v5317_v9  ;;  %v4265_v9 = vld [vmem:[%s6554_s3 + $0xe0] sm:$0xff] }
 0xa1e   :  { %2265 = vmatprep.subr.mxu1 %v5809_v48 }
 0xa1f   :  { %2266 = vmatpush1.msra.mxu1 %v5812_v62 }
 0xa20   :  { %2267 = vmatprep.subr.mxu1 %v5815_v49 }
 0xa21   :  { %2268 = vmatpush1.msra.mxu1 %v5819_v61 }
 0xa22   :  { %2269 = vmatprep.subr.mxu1 %v5823_v56 }
 0xa23   :  { %2270 = vmatpush1.msra.mxu1 %v5827_v58 }
 0xa24   :  { %2271 = vmatprep.subr.mxu1 %v5831_v30 }
 0xa25   :  { %2272 = vmatpush1.msra.mxu1 %v5835_v31 }
 0xa26   :  { %4269 = vmatmul.mubr.msk.f32.vlgmr.msra.gmra.mxu1 %vm663_vm0, %v4261_v50 }
 0xa27   :  { %2311 = vmatprep.mubr.f32.mxu1 %v6621_v13 }
 0xa2a   :  { %4270 = vmatmul.mubr.msk.f32.gmra.mxu1 %vm663_vm0, %v4262_v59 }
 0xa2b   :  { %2317 = vmatprep.mubr.f32.mxu1 %v6621_v13 }
 0xa2e   :  { %4271 = vmatmul.mubr.msk.f32.gmra.mxu1 %vm663_vm0, %v4263_v4 }
 0xa2f   :  { %2323 = vmatprep.mubr.f32.mxu1 %v6621_v13 }
 0xa32   :  { %4272 = vmatmul.mubr.msk.f32.gmra.mxu1 %vm663_vm0, %v4264_v8 }
 0xa33   :  { %2329 = vmatprep.mubr.f32.mxu1 %v6621_v13 }
 0xa36   :  { %4273 = vmatmul.mubr.msk.f32.gmra.mxu1 %vm663_vm0, %v4265_v9 }
 0xa37   :  { %2335 = vmatprep.mubr.f32.mxu1 %v6621_v13 }
 0xa3a   :  { %4274 = vmatmul.mubr.msk.f32.gmra.mxu1 %vm663_vm0, %v4266_v10 }
 0xa3b   :  { %2341 = vmatprep.mubr.f32.mxu1 %v6621_v13 }
 0xa3e   :  { %4275 = vmatmul.mubr.msk.f32.gmra.mxu1 %vm663_vm0, %v4267_v24 }
 0xa3f   :  { %2347 = vmatprep.mubr.f32.mxu1 %v6621_v13 }
 0xa42   :  { %4276 = vmatmul.mubr.msk.f32.gmra.mxu1 %vm663_vm0, %v4268_v15 }
 0xa43   :  { %2685 = vmatprep.mubr.f32.mxu1 %v6621_v13 }
 0xae6   :  { %v2307_v36 = vpop.f32.mrf.mxu1 }
 0xae8   :  { %v2309_v29 = vpop.f32.mrf.mxu1 }
 0xaea   :  { %v2313_v5 = vpop.f32.mrf.mxu1 }
 0xaec   :  { %v2315_v28 = vpop.f32.mrf.mxu1 }
 0xaee   :  { %v2319_v0 = vpop.f32.mrf.mxu1 }
 0xaef   :  { %2358 = vrot.lane.b32.xlu0 %v2319_v0, %s4716_s12  ;;  %v4278_v0 = vld [vmem:[%s6557_s4 + $0xc8] sm:$0xff] }
 0xaf0   :  { %v2321_v63 = vpop.f32.mrf.mxu1 }
 0xaf1   :  { %2366 = vrot.lane.b32.xlu1 %v2321_v63, %s4716_s12  ;;  %v4279_v63 = vld [vmem:[%s6557_s4 + $0xd0] sm:$0xff] }
 0xaf2   :  { %v2325_v1 = vpop.f32.mrf.mxu1 }
 0xaf3   :  { %2360 = vrot.lane.b32.xlu0 %v2325_v1, %s4716_s12  ;;  %v4280_v1 = vld [vmem:[%s6557_s4 + $0xd8] sm:$0xff] }
 0xaf4   :  { %v2327_v22 = vpop.f32.mrf.mxu1 }
 0xaf5   :  { %2368 = vrot.lane.b32.xlu1 %v2327_v22, %s4716_s12  ;;  %v4281_v22 = vld [vmem:[%s6557_s4 + $0xe0] sm:$0xff] }
 0xaf6   :  { %v2331_v23 = vpop.f32.mrf.mxu1 }
 0xaf7   :  { %2356 = vrot.lane.b32.xlu0 %v2313_v5, %s4716_s12 }
 0xaf8   :  { %v2333_v39 = vpop.f32.mrf.mxu1 }
 0xaf9   :  { %2364 = vrot.lane.b32.xlu1 %v2315_v28, %s4716_s12  ;;  %v4277_v28 = vld [vmem:[%s6557_s4 + $0xc0] sm:$0xff] }
 0xafa   :  { %v2337_v21 = vpop.f32.mrf.mxu1 }
 0xafb   :  { %2354 = vrot.lane.b32.xlu0 %v2307_v36, %s4716_s12 }
 0xafc   :  { %v2339_v18 = vpop.f32.mrf.mxu1 }
 0xafd   :  { %2362 = vrot.lane.b32.xlu1 %v2309_v29, %s4716_s12 }
 0xafe   :  { %v2343_v19 = vpop.f32.mrf.mxu1 }
 0xb00   :  { %v2345_v51 = vpop.f32.mrf.mxu1 }
 0xb02   :  { %v2349_v43 = vpop.f32.mrf.mxu1 }
 0xb04   :  { %v2351_v12 = vpop.f32.mrf.mxu1 }
 0xb61   :  { %v2359_v11 = vpop.permute.xlu0 %2358 }
 0xb63   :  { %v2367_v34 = vpop.permute.xlu1 %2366 }
 0xb64   :  { %v2372_v2 = vsel %vm817_vm2, %v2359_v11, %v2367_v34  ;;  %v2376_v40 = vsel %vm817_vm2, %v2367_v34, %v2359_v11 }
 0xb65   :  { %v2361_v25 = vpop.permute.xlu0 %2360  ;;  %v2383_v6 = vsel %vm4914_vm3, 0.0, %v2372_v2  ;;  %v2382_v60 = vsel %vm653_vm4, 0.0, %v2376_v40 }
 0xb66   :  { %v2391_v45 = vadd.f32 %v2383_v6, %v2345_v51  ;;  %v2390_v54 = vadd.f32 %v2382_v60, %v2343_v19 }
 0xb67   :  { %v2369_v42 = vpop.permute.xlu1 %2368 }
 0xb68   :  { %v2373_v37 = vsel %vm817_vm2, %v2361_v25, %v2369_v42  ;;  %v2377_v32 = vsel %vm817_vm2, %v2369_v42, %v2361_v25 }
 0xb69   :  { %v2384_v7 = vsel %vm653_vm4, 0.0, %v2377_v32  ;;  %v2357_v20 = vpop.permute.xlu0 %2356  ;;  %v2385_v35 = vsel %vm4914_vm3, 0.0, %v2373_v37  ;;  %v6623_v37 = vld [vmem:[#allocation14_spill] sm:$0xff] }
 0xb6a   :  { %v2392_v14 = vadd.f32 %v2384_v7, %v2349_v43  ;;  %v2393_v33 = vadd.f32 %v2385_v35, %v2351_v12  ;;  %v6624_v7 = vld [vmem:[#allocation16_spill] sm:$0xff] }
 0xb6b   :  { %v2365_v44 = vpop.permute.xlu1 %2364 }
 0xb6c   :  { %v2371_v53 = vsel %vm817_vm2, %v2357_v20, %v2365_v44  ;;  %v2375_v46 = vsel %vm817_vm2, %v2365_v44, %v2357_v20  ;;  %2451 = vmatprep.subr.mxu0 %v2393_v33  ;;  %v6626_v44 = vld [vmem:[#allocation15_spill] sm:$0xff] }
 0xb6d   :  { %v2380_v47 = vsel %vm653_vm4, 0.0, %v2375_v46  ;;  %v2381_v50 = vsel %vm4914_vm3, 0.0, %v2371_v53  ;;  %2452 = vmatpush1.msra.mxu0 %v2392_v14  ;;  %v2355_v8 = vpop.permute.xlu0 %2354  ;;  %v6625_v14 = vld [vmem:[#allocation17_spill] sm:$0xff] }
 0xb6e   :  { %v2388_v59 = vadd.f32 %v2380_v47, %v2337_v21  ;;  %v2389_v4 = vadd.f32 %v2381_v50, %v2339_v18  ;;  %2453 = vmatprep.subr.mxu0 %v2391_v45  ;;  %v4284_v21 = vld [vmem:[%s6557_s4 + $0xf8] sm:$0xff] }
 0xb6f   :  { %v2363_v9 = vpop.permute.xlu1 %2362  ;;  %2454 = vmatpush1.msra.mxu0 %v2390_v54  ;;  %v6627_v54 = vld [vmem:[#allocation18_spill] sm:$0xff]  ;;  %v6628_v50 = vld [vmem:[#allocation13_spill] sm:$0xff] }
 0xb70   :  { %v2370_v10 = vsel %vm817_vm2, %v2355_v8, %v2363_v9  ;;  %v2374_v24 = vsel %vm817_vm2, %v2363_v9, %v2355_v8  ;;  %2455 = vmatprep.subr.mxu0 %v2389_v4 }
 0xb71   :  { %v2378_v15 = vsel %vm653_vm4, 0.0, %v2374_v24  ;;  %v2379_v36 = vsel %vm4914_vm3, 0.0, %v2370_v10  ;;  %2456 = vmatpush1.msra.mxu0 %v2388_v59  ;;  %v6629_v10 = vld [vmem:[#allocation19_spill] sm:$0xff] }
 0xb72   :  { %v2386_v29 = vadd.f32 %v2378_v15, %v2331_v23  ;;  %v2387_v5 = vadd.f32 %v2379_v36, %v2333_v39  ;;  %v4282_v23 = vld [vmem:[%s6557_s4 + $0xe8] sm:$0xff]  ;;  %v4283_v39 = vld [vmem:[%s6557_s4 + $0xf0] sm:$0xff] }
 0xb74   :  { %2457 = vmatprep.subr.mxu0 %v2387_v5  ;;  %v6630_v5 = vld [vmem:[#allocation20_spill] sm:$0xff] }
 0xb75   :  { %2458 = vmatpush1.msra.mxu0 %v2386_v29 }
 0xb76   :  { %4285 = vmatmul.mubr.msk.f32.vlgmr.msra.gmra.mxu0 %vm663_vm0, %v4277_v28 }
 0xb77   :  { %2497 = vmatprep.mubr.f32.mxu0 %v6621_v13 }
 0xb7a   :  { %4286 = vmatmul.mubr.msk.f32.gmra.mxu0 %vm663_vm0, %v4278_v0 }
 0xb7b   :  { %2503 = vmatprep.mubr.f32.mxu0 %v6621_v13 }
 0xb7e   :  { %4287 = vmatmul.mubr.msk.f32.gmra.mxu0 %vm663_vm0, %v4279_v63 }
 0xb7f   :  { %2509 = vmatprep.mubr.f32.mxu0 %v6621_v13 }
 0xb82   :  { %4288 = vmatmul.mubr.msk.f32.gmra.mxu0 %vm663_vm0, %v4280_v1  ;;  %v6631_v1 = vld [vmem:[#allocation7_spill] sm:$0xff] }
 0xb83   :  { %2515 = vmatprep.mubr.f32.mxu0 %v6621_v13 }
 0xb86   :  { %4289 = vmatmul.mubr.msk.f32.gmra.mxu0 %vm663_vm0, %v4281_v22 }
 0xb87   :  { %2521 = vmatprep.mubr.f32.mxu0 %v6621_v13 }
 0xb8a   :  { %4290 = vmatmul.mubr.msk.f32.gmra.mxu0 %vm663_vm0, %v4282_v23  ;;  %v6632_v23 = vld [vmem:[#allocation8_spill] sm:$0xff] }
 0xb8b   :  { %2527 = vmatprep.mubr.f32.mxu0 %v6621_v13 }
 0xb8e   :  { %4291 = vmatmul.mubr.msk.f32.gmra.mxu0 %vm663_vm0, %v4283_v39 }
 0xb8f   :  { %2533 = vmatprep.mubr.f32.mxu0 %v6621_v13 }
 0xb92   :  { %4292 = vmatmul.mubr.msk.f32.gmra.mxu0 %vm663_vm0, %v4284_v21  ;;  %v6633_v21 = vld [vmem:[#allocation9_spill] sm:$0xff] }
 0xb93   :  { %2823 = vmatprep.mubr.f32.mxu0 %v6621_v13 }
 0xc36   :  { %v5960_v18 = vpop.f32.mrf.mxu0 }
 0xc38   :  { %v5962_v19 = vpop.f32.mrf.mxu0 }
 0xc3a   :  { %v2499_v51 = vpop.f32.mrf.mxu0 }
 0xc3b   :  { %v2500_v22 = vadd.f32 %v2499_v51, %v6631_v1 }
 0xc3c   :  { %v2501_v11 = vpop.f32.mrf.mxu0 }
 0xc3d   :  { %v2502_v39 = vadd.f32 %v2501_v11, %v6632_v23 }
 0xc3e   :  { %v2505_v34 = vpop.f32.mrf.mxu0 }
 0xc40   :  { %v2507_v43 = vpop.f32.mrf.mxu0 }
 0xc42   :  { %v2511_v25 = vpop.f32.mrf.mxu0 }
 0xc44   :  { %v2513_v2 = vpop.f32.mrf.mxu0 }
 0xc46   :  { %v2517_v40 = vpop.f32.mrf.mxu0 }
 0xc47   :  { %v2518_v59 = vadd.f32 %v2517_v40, %v6628_v50  ;;  %v2506_v40 = vadd.f32 %v2505_v34, %v6633_v21 }
 0xc48   :  { %v2519_v42 = vpop.f32.mrf.mxu0 }
 0xc49   :  { %v2520_v32 = vadd.f32 %v2519_v42, %v6623_v37  ;;  %v4293_v0 = vmul.f32 -1.442695, %v2518_v59  ;;  %v6638_v59 = vld [vmem:[#allocation5_spill] sm:$0xff] }
 0xc4a   :  { %v2523_v12 = vpop.f32.mrf.mxu0 }
 0xc4b   :  { %v4294_v60 = vmul.f32 -1.442695, %v2520_v32  ;;  %v2524_v45 = vadd.f32 %v2523_v12, %v6626_v44  ;;  %v6634_v12 = vld [vmem:[#allocation10_spill] sm:$0xff] }
 0xc4c   :  { %v2525_v6 = vpop.f32.mrf.mxu0  ;;  %v2508_v37 = vadd.f32 %v2507_v43, %v6634_v12 }
 0xc4d   :  { %v2526_v20 = vadd.f32 %v2525_v6, %v6624_v7  ;;  %4570 = vpow2.f32 %v4294_v60  ;;  %v4295_v15 = vmul.f32 -1.442695, %v2524_v45  ;;  %v6635_v6 = vld [vmem:[#allocation11_spill] sm:$0xff] }
 0xc4e   :  { %v2529_v35 = vpop.f32.mrf.mxu0  ;;  %v2512_v7 = vadd.f32 %v2511_v25, %v6635_v6 }
 0xc4f   :  { %v2530_v33 = vadd.f32 %v2529_v35, %v6625_v14  ;;  %v4296_v53 = vmul.f32 -1.442695, %v2526_v20  ;;  %v6636_v35 = vld [vmem:[#allocation12_spill] sm:$0xff] }
 0xc50   :  { %v2531_v46 = vpop.f32.mrf.mxu0  ;;  %v2514_v60 = vadd.f32 %v2513_v2, %v6636_v35  ;;  %v4303_v35 = vld [vmem:[%s6558_s6 + $0x70] sm:$0xff] }
 0xc51   :  { %v2532_v47 = vadd.f32 %v2531_v46, %v6627_v54  ;;  %v4297_v4 = vmul.f32 -1.442695, %v2530_v33  ;;  %4572 = vpow2.f32 %v4296_v53 }
 0xc52   :  { %v2535_v8 = vpop.f32.mrf.mxu0 }
 0xc53   :  { %v4298_v9 = vmul.f32 -1.442695, %v2532_v47  ;;  %v2536_v24 = vadd.f32 %v2535_v8, %v6629_v10  ;;  %v6637_v47 = vld [vmem:[#allocation6_spill] sm:$0xff] }
 0xc54   :  { %v2537_v36 = vpop.f32.mrf.mxu0  ;;  %v2496_v50 = vadd.f32 %v5962_v19, %v6637_v47  ;;  %v4314_v47 = vld [vmem:[%s6554_s3 + $0x128] sm:$0xff] }
 0xc55   :  { %4574 = vpow2.f32 %v4298_v9  ;;  %v4299_v29 = vmul.f32 -1.442695, %v2536_v24  ;;  %v2538_v28 = vadd.f32 %v2537_v36, %v6630_v5 }
 0xc56   :  { %4576 = vpow2.f32 %v4297_v4  ;;  %v2494_v4 = vadd.f32 %v5960_v18, %v6638_v59  ;;  %v4316_v59 = vld [vmem:[%s6554_s3 + $0x138] sm:$0xff] }
 0xc57   :  { %4578 = vpow2.f32 %v4299_v29  ;;  %v4300_v63 = vmul.f32 -1.442695, %v2538_v28 }
 0xc58   :  { %4580 = vpow2.f32 %v4295_v15 }
 0xc59   :  { %4582 = vpow2.f32 %v4300_v63 }
 0xc5a   :  { %4584 = vpow2.f32 %v4293_v0  ;;  %v4571_v42 = vpop.eup %4570 }
 0xc5b   :  { %4586 = vtanh.f32 %v2500_v22  ;;  %v2573_v54 = vadd.f32 1.0, %v4571_v42 }
 0xc5c   :  { %4588 = vtanh.f32 %v2502_v39 }
 0xc5d   :  { %4590 = vtanh.f32 %v2506_v40 }
 0xc5e   :  { %v4573_v32 = vpop.eup %4572  ;;  %4592 = vtanh.f32 %v2508_v37 }
 0xc5f   :  { %4594 = vtanh.f32 %v2512_v7  ;;  %v2575_v53 = vadd.f32 1.0, %v4573_v32  ;;  %v4301_v7 = vld [vmem:[%s6558_s6 + $0x60] sm:$0xff] }
 0xc60   :  { %4596 = vtanh.f32 %v2514_v60  ;;  %v4304_v60 = vld [vmem:[%s6558_s6 + $0x78] sm:$0xff] }
 0xc62   :  { %v4575_v20 = vpop.eup %4574 }
 0xc63   :  { %v4577_v14 = vpop.eup %4576  ;;  %v2577_v33 = vadd.f32 1.0, %v4575_v20  ;;  %v4302_v20 = vld [vmem:[%s6558_s6 + $0x68] sm:$0xff] }
 0xc64   :  { %v4579_v44 = vpop.eup %4578  ;;  %v2576_v45 = vadd.f32 1.0, %v4577_v14 }
 0xc65   :  { %v4581_v51 = vpop.eup %4580  ;;  %v2578_v11 = vadd.f32 1.0, %v4579_v44  ;;  %4598 = vrcp.f32 %v2577_v33 }
 0xc66   :  { %v4583_v34 = vpop.eup %4582  ;;  %v2574_v25 = vadd.f32 1.0, %v4581_v51 }
 0xc67   :  { %v4585_v43 = vpop.eup %4584  ;;  %v2579_v46 = vadd.f32 1.0, %v4583_v34  ;;  %4600 = vrcp.f32 %v2578_v11 }
 0xc68   :  { %v2572_v2 = vadd.f32 1.0, %v4585_v43  ;;  %v4587_v8 = vpop.eup %4586 }
 0xc69   :  { %4602 = vrcp.f32 %v2579_v46  ;;  %v4589_v9 = vpop.eup %4588 }
 0xc6a   :  { %4604 = vrcp.f32 %v2576_v45  ;;  %v4591_v10 = vpop.eup %4590 }
 0xc6b   :  { %4606 = vrcp.f32 %v2575_v53  ;;  %v4593_v24 = vpop.eup %4592 }
 0xc6c   :  { %4608 = vrcp.f32 %v2574_v25  ;;  %v4595_v15 = vpop.eup %4594 }
 0xc6d   :  { %4610 = vrcp.f32 %v2573_v54  ;;  %v4597_v36 = vpop.eup %4596 }
 0xc6e   :  { %4612 = vrcp.f32 %v2572_v2 }
 0xc6f   :  { %4614 = vtanh.f32 %v2496_v50  ;;  %v4315_v50 = vld [vmem:[%s6554_s3 + $0x130] sm:$0xff] }
 0xc70   :  { %4616 = vtanh.f32 %v2494_v4 }
 0xc72   :  { %v4599_v29 = vpop.eup %4598 }
 0xc73   :  { %v2601_v18 = vmul.f32 %v4599_v29, %v4593_v24 }
 0xc74   :  { %v4601_v5 = vpop.eup %4600 }
 0xc75   :  { %v2602_v1 = vmul.f32 %v4601_v5, %v4595_v15 }
 0xc76   :  { %v4603_v28 = vpop.eup %4602 }
 0xc77   :  { %v4605_v0 = vpop.eup %4604  ;;  %v2603_v19 = vmul.f32 %v4603_v28, %v4597_v36 }
 0xc78   :  { %v4607_v63 = vpop.eup %4606  ;;  %v2600_v39 = vmul.f32 %v4605_v0, %v4591_v10 }
 0xc79   :  { %v4609_v22 = vpop.eup %4608  ;;  %2645 = vmatprep.subr.mxu1 %v2603_v19  ;;  %v2599_v40 = vmul.f32 %v4607_v63, %v4589_v9 }
 0xc7a   :  { %v4611_v23 = vpop.eup %4610  ;;  %2646 = vmatpush1.msra.mxu1 %v2602_v1  ;;  %v2598_v12 = vmul.f32 %v4609_v22, %v4587_v8 }
 0xc7b   :  { %v4613_v21 = vpop.eup %4612  ;;  %2647 = vmatprep.subr.mxu1 %v2601_v18 }
 0xc7c   :  { %v4615_v42 = vpop.eup %4614  ;;  %2648 = vmatpush1.msra.mxu1 %v2600_v39 }
 0xc7d   :  { %v4617_v37 = vpop.eup %4616  ;;  %2649 = vmatprep.subr.mxu1 %v2599_v40  ;;  %v2597_v32 = vmul.f32 %v4615_v42, %v4611_v23 }
 0xc7e   :  { %2650 = vmatpush1.msra.mxu1 %v2598_v12  ;;  %v2596_v6 = vmul.f32 %v4617_v37, %v4613_v21 }
 0xc7f   :  { %2651 = vmatprep.subr.mxu1 %v2597_v32 }
 0xc80   :  { %2652 = vmatpush1.msra.mxu1 %v2596_v6 }
 0xc81   :  { %4305 = vmatmul.mubr.msk.f32.vlgmr.msra.gmra.mxu1 %vm663_vm0, %v4301_v7 }
 0xc82   :  { %2691 = vmatprep.mubr.f32.mxu1 %v6621_v13 }
 0xc85   :  { %4306 = vmatmul.mubr.msk.f32.gmra.mxu1 %vm663_vm0, %v4302_v20 }
 0xc86   :  { %2697 = vmatprep.mubr.f32.mxu1 %v6621_v13 }
 0xc89   :  { %4307 = vmatmul.mubr.msk.f32.gmra.mxu1 %vm663_vm0, %v4303_v35 }
 0xc8a   :  { %2703 = vmatprep.mubr.f32.mxu1 %v6621_v13 }
 0xc8d   :  { %4308 = vmatmul.mubr.msk.f32.gmra.mxu1 %vm663_vm0, %v4304_v60 }
 0xc8e   :  { %3009 = vmatprep.mubr.f32.mxu1 %v6621_v13 }
 0xd41   :  { %v2687_v14 = vpop.f32.mrf.mxu1 }
 0xd42   :  { %v6003_v33 = vadd.f32 %v2687_v14, %v5781_v16 }
 0xd43   :  { %v2689_v44 = vpop.f32.mrf.mxu1 }
 0xd44   :  { %v6006_v51 = vadd.f32 %v2689_v44, %v5785_v27 }
 0xd45   :  { %v2693_v11 = vpop.f32.mrf.mxu1 }
 0xd46   :  { %v6009_v34 = vadd.f32 %v2693_v11, %v5789_v26 }
 0xd47   :  { %v2695_v45 = vpop.f32.mrf.mxu1 }
 0xd48   :  { %v6012_v43 = vadd.f32 %v2695_v45, %v5793_v52 }
 0xd49   :  { %v2699_v53 = vpop.f32.mrf.mxu1 }
 0xd4a   :  { %v6015_v46 = vadd.f32 %v2699_v53, %v5797_v38 }
 0xd4b   :  { %v2701_v25 = vpop.f32.mrf.mxu1 }
 0xd4c   :  { %v6018_v16 = vadd.f32 %v2701_v25, %v5801_v41  ;;  %v6033_v38 = vadd.f32 %v2701_v25, %v5815_v49  ;;  %v6037_v41 = vadd.f32 %v2699_v53, %v5819_v61  ;;  %v6053_v49 = vadd.f32 %v2687_v14, %v5835_v31  ;;  %v4309_v61 = vld [vmem:[%s6554_s3 + $0x100] sm:$0xff] }
 0xd4d   :  { %v2705_v54 = vpop.f32.mrf.mxu1  ;;  %v4313_v31 = vld [vmem:[%s6554_s3 + $0x120] sm:$0xff] }
 0xd4e   :  { %v6021_v27 = vadd.f32 %v2705_v54, %v5803_v55  ;;  %v6030_v52 = vadd.f32 %v2705_v54, %v5812_v62  ;;  %v6041_v55 = vadd.f32 %v2695_v45, %v5823_v56  ;;  %v6049_v62 = vadd.f32 %v2689_v44, %v5831_v30  ;;  %v4310_v56 = vld [vmem:[%s6554_s3 + $0x108] sm:$0xff]  ;;  %v4312_v30 = vld [vmem:[%s6554_s3 + $0x118] sm:$0xff] }
 0xd4f   :  { %v6023_v2 = vpop.f32.mrf.mxu1 }
 0xd50   :  { %v6027_v26 = vadd.f32 %v6023_v2, %v5809_v48  ;;  %v6045_v48 = vadd.f32 %v2693_v11, %v5827_v58  ;;  %v4311_v58 = vld [vmem:[%s6554_s3 + $0x110] sm:$0xff] }
 0xd52   :  { %2783 = vmatprep.subr.mxu0 %v6027_v26 }
 0xd53   :  { %2784 = vmatpush1.msra.mxu0 %v6030_v52 }
 0xd54   :  { %2785 = vmatprep.subr.mxu0 %v6033_v38 }
 0xd55   :  { %2786 = vmatpush1.msra.mxu0 %v6037_v41 }
 0xd56   :  { %2787 = vmatprep.subr.mxu0 %v6041_v55 }
 0xd57   :  { %2788 = vmatpush1.msra.mxu0 %v6045_v48 }
 0xd58   :  { %2789 = vmatprep.subr.mxu0 %v6049_v62 }
 0xd59   :  { %2790 = vmatpush1.msra.mxu0 %v6053_v49 }
 0xd5a   :  { %4317 = vmatmul.mubr.msk.f32.vlgmr.msra.gmra.mxu0 %vm663_vm0, %v4309_v61 }
 0xd5b   :  { %2829 = vmatprep.mubr.f32.mxu0 %v6621_v13 }
 0xd5e   :  { %4318 = vmatmul.mubr.msk.f32.gmra.mxu0 %vm663_vm0, %v4310_v56 }
 0xd5f   :  { %2835 = vmatprep.mubr.f32.mxu0 %v6621_v13 }
 0xd62   :  { %4319 = vmatmul.mubr.msk.f32.gmra.mxu0 %vm663_vm0, %v4311_v58 }
 0xd63   :  { %2841 = vmatprep.mubr.f32.mxu0 %v6621_v13 }
 0xd66   :  { %4320 = vmatmul.mubr.msk.f32.gmra.mxu0 %vm663_vm0, %v4312_v30 }
 0xd67   :  { %2847 = vmatprep.mubr.f32.mxu0 %v6621_v13 }
 0xd6a   :  { %4321 = vmatmul.mubr.msk.f32.gmra.mxu0 %vm663_vm0, %v4313_v31 }
 0xd6b   :  { %2853 = vmatprep.mubr.f32.mxu0 %v6621_v13 }
 0xd6e   :  { %4322 = vmatmul.mubr.msk.f32.gmra.mxu0 %vm663_vm0, %v4314_v47 }
 0xd6f   :  { %2859 = vmatprep.mubr.f32.mxu0 %v6621_v13 }
 0xd72   :  { %4323 = vmatmul.mubr.msk.f32.gmra.mxu0 %vm663_vm0, %v4315_v50 }
 0xd73   :  { %2865 = vmatprep.mubr.f32.mxu0 %v6621_v13 }
 0xd76   :  { %4324 = vmatmul.mubr.msk.f32.gmra.mxu0 %vm663_vm0, %v4316_v59 }
 0xd77   :  { %3203 = vmatprep.mubr.f32.mxu0 %v6621_v13 }
 0xe1a   :  { %v2825_v4 = vpop.f32.mrf.mxu0 }
 0xe1c   :  { %v2827_v8 = vpop.f32.mrf.mxu0 }
 0xe1e   :  { %v2831_v9 = vpop.f32.mrf.mxu0 }
 0xe20   :  { %v2833_v10 = vpop.f32.mrf.mxu0 }
 0xe22   :  { %v2837_v24 = vpop.f32.mrf.mxu0 }
 0xe23   :  { %2876 = vrot.lane.b32.xlu0 %v2837_v24, %s4716_s12  ;;  %v4325_v24 = vld [vmem:[%s6557_s4 + $0x100] sm:$0xff] }
 0xe24   :  { %v2839_v15 = vpop.f32.mrf.mxu0 }
 0xe25   :  { %2884 = vrot.lane.b32.xlu1 %v2839_v15, %s4716_s12  ;;  %v4326_v15 = vld [vmem:[%s6557_s4 + $0x108] sm:$0xff] }
 0xe26   :  { %v2843_v36 = vpop.f32.mrf.mxu0 }
 0xe27   :  { %2878 = vrot.lane.b32.xlu0 %v2843_v36, %s4716_s12  ;;  %v4327_v36 = vld [vmem:[%s6557_s4 + $0x110] sm:$0xff] }
 0xe28   :  { %v2845_v29 = vpop.f32.mrf.mxu0 }
 0xe29   :  { %2886 = vrot.lane.b32.xlu1 %v2845_v29, %s4716_s12  ;;  %v4328_v29 = vld [vmem:[%s6557_s4 + $0x118] sm:$0xff] }
 0xe2a   :  { %v2849_v5 = vpop.f32.mrf.mxu0 }
 0xe2b   :  { %2874 = vrot.lane.b32.xlu0 %v2831_v9, %s4716_s12 }
 0xe2c   :  { %v2851_v28 = vpop.f32.mrf.mxu0 }
 0xe2d   :  { %2882 = vrot.lane.b32.xlu1 %v2833_v10, %s4716_s12 }
 0xe2e   :  { %v2855_v0 = vpop.f32.mrf.mxu0 }
 0xe2f   :  { %2872 = vrot.lane.b32.xlu0 %v2825_v4, %s4716_s12 }
 0xe30   :  { %v2857_v19 = vpop.f32.mrf.mxu0 }
 0xe31   :  { %2880 = vrot.lane.b32.xlu1 %v2827_v8, %s4716_s12 }
 0xe32   :  { %v2861_v63 = vpop.f32.mrf.mxu0 }
 0xe34   :  { %v2863_v1 = vpop.f32.mrf.mxu0 }
 0xe36   :  { %v2867_v23 = vpop.f32.mrf.mxu0 }
 0xe38   :  { %v2869_v12 = vpop.f32.mrf.mxu0 }
 0xe95   :  { %v2877_v22 = vpop.permute.xlu0 %2876 }
 0xe97   :  { %v2885_v18 = vpop.permute.xlu1 %2884 }
 0xe98   :  { %v2890_v21 = vsel %vm817_vm2, %v2877_v22, %v2885_v18  ;;  %v2894_v40 = vsel %vm817_vm2, %v2885_v18, %v2877_v22 }
 0xe99   :  { %v2879_v39 = vpop.permute.xlu0 %2878  ;;  %v2901_v6 = vsel %vm4914_vm3, 0.0, %v2890_v21  ;;  %v2900_v60 = vsel %vm653_vm4, 0.0, %v2894_v40 }
 0xe9a   :  { %v2909_v45 = vadd.f32 %v2901_v6, %v2863_v1  ;;  %v2908_v54 = vadd.f32 %v2900_v60, %v2861_v63 }
 0xe9b   :  { %v2887_v42 = vpop.permute.xlu1 %2886 }
 0xe9c   :  { %v2891_v37 = vsel %vm817_vm2, %v2879_v39, %v2887_v42  ;;  %v2895_v32 = vsel %vm817_vm2, %v2887_v42, %v2879_v39 }
 0xe9d   :  { %v2902_v7 = vsel %vm653_vm4, 0.0, %v2895_v32  ;;  %v2875_v20 = vpop.permute.xlu0 %2874  ;;  %v2903_v35 = vsel %vm4914_vm3, 0.0, %v2891_v37  ;;  %v6639_v32 = vld [vmem:[#allocation30_spill] sm:$0xff] }
 0xe9e   :  { %v2910_v14 = vadd.f32 %v2902_v7, %v2867_v23  ;;  %v2911_v44 = vadd.f32 %v2903_v35, %v2869_v12 }
 0xe9f   :  { %v2883_v11 = vpop.permute.xlu1 %2882 }
 0xea0   :  { %v2889_v53 = vsel %vm817_vm2, %v2875_v20, %v2883_v11  ;;  %v2893_v25 = vsel %vm817_vm2, %v2883_v11, %v2875_v20  ;;  %2969 = vmatprep.subr.mxu1 %v2911_v44  ;;  %v6640_v20 = vld [vmem:[#allocation32_spill] sm:$0xff]  ;;  %v6641_v44 = vld [vmem:[#allocation33_spill] sm:$0xff] }
 0xea1   :  { %v2898_v61 = vsel %vm653_vm4, 0.0, %v2893_v25  ;;  %v2899_v56 = vsel %vm4914_vm3, 0.0, %v2889_v53  ;;  %2970 = vmatpush1.msra.mxu1 %v2910_v14  ;;  %v2873_v31 = vpop.permute.xlu0 %2872 }
 0xea2   :  { %v2906_v58 = vadd.f32 %v2898_v61, %v2855_v0  ;;  %v2907_v30 = vadd.f32 %v2899_v56, %v2857_v19  ;;  %2971 = vmatprep.subr.mxu1 %v2909_v45  ;;  %v4331_v0 = vld [vmem:[%s6557_s4 + $0x130] sm:$0xff]  ;;  %v4332_v19 = vld [vmem:[%s6557_s4 + $0x138] sm:$0xff]  ;;  %v6642_v45 = vld [vmem:[#allocation31_spill] sm:$0xff] }
 0xea3   :  { %v2881_v47 = vpop.permute.xlu1 %2880  ;;  %2972 = vmatpush1.msra.mxu1 %v2908_v54  ;;  %v6643_v61 = vld [vmem:[#allocation34_spill] sm:$0xff] }
 0xea4   :  { %v2888_v50 = vsel %vm817_vm2, %v2873_v31, %v2881_v47  ;;  %v2892_v59 = vsel %vm817_vm2, %v2881_v47, %v2873_v31  ;;  %2973 = vmatprep.subr.mxu1 %v2907_v30 }
 0xea5   :  { %v2896_v4 = vsel %vm653_vm4, 0.0, %v2892_v59  ;;  %v2897_v8 = vsel %vm4914_vm3, 0.0, %v2888_v50  ;;  %2974 = vmatpush1.msra.mxu1 %v2906_v58  ;;  %v6644_v58 = vld [vmem:[#allocation29_spill] sm:$0xff]  ;;  %v6645_v59 = vld [vmem:[#allocation35_spill] sm:$0xff] }
 0xea6   :  { %v2904_v9 = vadd.f32 %v2896_v4, %v2849_v5  ;;  %v2905_v10 = vadd.f32 %v2897_v8, %v2851_v28  ;;  %v4329_v5 = vld [vmem:[%s6557_s4 + $0x120] sm:$0xff]  ;;  %v4330_v28 = vld [vmem:[%s6557_s4 + $0x128] sm:$0xff] }
 0xea8   :  { %2975 = vmatprep.subr.mxu1 %v2905_v10 }
 0xea9   :  { %2976 = vmatpush1.msra.mxu1 %v2904_v9 }
 0xeaa   :  { %4333 = vmatmul.mubr.msk.f32.vlgmr.msra.gmra.mxu1 %vm663_vm0, %v4325_v24  ;;  %v6646_v24 = vld [vmem:[#allocation36_spill] sm:$0xff] }
 0xeab   :  { %3015 = vmatprep.mubr.f32.mxu1 %v6621_v13 }
 0xeae   :  { %4334 = vmatmul.mubr.msk.f32.gmra.mxu1 %vm663_vm0, %v4326_v15 }
 0xeaf   :  { %3021 = vmatprep.mubr.f32.mxu1 %v6621_v13 }
 0xeb2   :  { %4335 = vmatmul.mubr.msk.f32.gmra.mxu1 %vm663_vm0, %v4327_v36 }
 0xeb3   :  { %3027 = vmatprep.mubr.f32.mxu1 %v6621_v13 }
 0xeb6   :  { %4336 = vmatmul.mubr.msk.f32.gmra.mxu1 %vm663_vm0, %v4328_v29 }
 0xeb7   :  { %3033 = vmatprep.mubr.f32.mxu1 %v6621_v13 }
 0xeba   :  { %4337 = vmatmul.mubr.msk.f32.gmra.mxu1 %vm663_vm0, %v4329_v5  ;;  %v6647_v5 = vld [vmem:[#allocation23_spill] sm:$0xff] }
 0xebb   :  { %3039 = vmatprep.mubr.f32.mxu1 %v6621_v13 }
 0xebe   :  { %4338 = vmatmul.mubr.msk.f32.gmra.mxu1 %vm663_vm0, %v4330_v28 }
 0xebf   :  { %3045 = vmatprep.mubr.f32.mxu1 %v6621_v13 }
 0xec2   :  { %4339 = vmatmul.mubr.msk.f32.gmra.mxu1 %vm663_vm0, %v4331_v0  ;;  %v6648_v0 = vld [vmem:[#allocation24_spill] sm:$0xff] }
 0xec3   :  { %3051 = vmatprep.mubr.f32.mxu1 %v6621_v13 }
 0xec6   :  { %4340 = vmatmul.mubr.msk.f32.gmra.mxu1 %vm663_vm0, %v4332_v19 }
 0xec7   :  { %3341 = vmatprep.mubr.f32.mxu1 %v6621_v13 }
 0xf6a   :  { %v6178_v63 = vpop.f32.mrf.mxu1 }
 0xf6c   :  { %v6180_v1 = vpop.f32.mrf.mxu1 }
 0xf6e   :  { %v3017_v22 = vpop.f32.mrf.mxu1 }
 0xf6f   :  { %v3018_v28 = vadd.f32 %v3017_v22, %v6647_v5 }
 0xf70   :  { %v3019_v18 = vpop.f32.mrf.mxu1 }
 0xf71   :  { %v3020_v19 = vadd.f32 %v3019_v18, %v6648_v0 }
 0xf72   :  { %v3023_v23 = vpop.f32.mrf.mxu1 }
 0xf74   :  { %v3025_v39 = vpop.f32.mrf.mxu1 }
 0xf76   :  { %v3029_v21 = vpop.f32.mrf.mxu1 }
 0xf78   :  { %v3031_v40 = vpop.f32.mrf.mxu1 }
 0xf7a   :  { %v3035_v42 = vpop.f32.mrf.mxu1 }
 0xf7b   :  { %v3036_v30 = vadd.f32 %v3035_v42, %v6644_v58  ;;  %v6649_v42 = vld [vmem:[#allocation25_spill] sm:$0xff]  ;;  %v6653_v58 = vld [vmem:[#allocation22_spill] sm:$0xff] }
 0xf7c   :  { %v3037_v12 = vpop.f32.mrf.mxu1 }
 0xf7d   :  { %v3038_v6 = vadd.f32 %v3037_v12, %v6639_v32  ;;  %v4341_v36 = vmul.f32 -1.442695, %v3036_v30  ;;  %v3024_v12 = vadd.f32 %v3023_v23, %v6649_v42  ;;  %v6650_v32 = vld [vmem:[#allocation26_spill] sm:$0xff]  ;;  %v3014_v30 = vadd.f32 %v6180_v1, %v6653_v58 }
 0xf7e   :  { %v3041_v37 = vpop.f32.mrf.mxu1 }
 0xf7f   :  { %v4342_v14 = vmul.f32 -1.442695, %v3038_v6  ;;  %v3042_v53 = vadd.f32 %v3041_v37, %v6642_v45  ;;  %v3026_v6 = vadd.f32 %v3025_v39, %v6650_v32 }
 0xf80   :  { %v3043_v7 = vpop.f32.mrf.mxu1 }
 0xf81   :  { %v3044_v35 = vadd.f32 %v3043_v7, %v6640_v20  ;;  %4618 = vpow2.f32 %v4342_v14  ;;  %v4343_v8 = vmul.f32 -1.442695, %v3042_v53  ;;  %v6651_v20 = vld [vmem:[#allocation27_spill] sm:$0xff]  ;;  %v6652_v14 = vld [vmem:[#allocation28_spill] sm:$0xff] }
 0xf82   :  { %v3047_v60 = vpop.f32.mrf.mxu1 }
 0xf83   :  { %v3048_v11 = vadd.f32 %v3047_v60, %v6641_v44  ;;  %v4344_v25 = vmul.f32 -1.442695, %v3044_v35  ;;  %v3030_v35 = vadd.f32 %v3029_v21, %v6651_v20  ;;  %v3032_v44 = vadd.f32 %v3031_v40, %v6652_v14  ;;  %v4350_v14 = vld [vmem:[%s6558_s6 + $0x88] sm:$0xff] }
 0xf84   :  { %v3049_v54 = vpop.f32.mrf.mxu1 }
 0xf85   :  { %v3050_v56 = vadd.f32 %v3049_v54, %v6643_v61  ;;  %v4345_v31 = vmul.f32 -1.442695, %v3048_v11  ;;  %4620 = vpow2.f32 %v4344_v25 }
 0xf86   :  { %v3053_v47 = vpop.f32.mrf.mxu1 }
 0xf87   :  { %v4346_v50 = vmul.f32 -1.442695, %v3050_v56  ;;  %v3054_v4 = vadd.f32 %v3053_v47, %v6645_v59 }
 0xf88   :  { %v3055_v9 = vpop.f32.mrf.mxu1 }
 0xf89   :  { %4622 = vpow2.f32 %v4346_v50  ;;  %v4347_v10 = vmul.f32 -1.442695, %v3054_v4  ;;  %v3056_v15 = vadd.f32 %v3055_v9, %v6646_v24 }
 0xf8a   :  { %4624 = vpow2.f32 %v4345_v31  ;;  %v6654_v31 = vld [vmem:[#allocation21_spill] sm:$0xff] }
 0xf8b   :  { %4626 = vpow2.f32 %v4347_v10  ;;  %v4348_v29 = vmul.f32 -1.442695, %v3056_v15  ;;  %v3012_v47 = vadd.f32 %v6178_v63, %v6654_v31 }
 0xf8c   :  { %4628 = vpow2.f32 %v4343_v8 }
 0xf8d   :  { %4630 = vpow2.f32 %v4348_v29 }
 0xf8e   :  { %4632 = vpow2.f32 %v4341_v36  ;;  %v4619_v37 = vpop.eup %4618 }
 0xf8f   :  { %4634 = vtanh.f32 %v3018_v28  ;;  %v3091_v56 = vadd.f32 1.0, %v4619_v37 }
 0xf90   :  { %4636 = vtanh.f32 %v3020_v19 }
 0xf91   :  { %4638 = vtanh.f32 %v3024_v12 }
 0xf92   :  { %v4621_v7 = vpop.eup %4620  ;;  %4640 = vtanh.f32 %v3026_v6 }
 0xf93   :  { %4642 = vtanh.f32 %v3030_v35  ;;  %v3093_v54 = vadd.f32 1.0, %v4621_v7 }
 0xf94   :  { %4644 = vtanh.f32 %v3032_v44  ;;  %v4351_v44 = vld [vmem:[%s6558_s6 + $0x90] sm:$0xff] }
 0xf96   :  { %v4623_v60 = vpop.eup %4622 }
 0xf97   :  { %v4625_v11 = vpop.eup %4624  ;;  %v3095_v45 = vadd.f32 1.0, %v4623_v60  ;;  %v4349_v60 = vld [vmem:[%s6558_s6 + $0x80] sm:$0xff] }
 0xf98   :  { %v4627_v53 = vpop.eup %4626  ;;  %v3094_v25 = vadd.f32 1.0, %v4625_v11  ;;  %v4352_v11 = vld [vmem:[%s6558_s6 + $0x98] sm:$0xff] }
 0xf99   :  { %v4629_v22 = vpop.eup %4628  ;;  %v3096_v18 = vadd.f32 1.0, %v4627_v53  ;;  %4646 = vrcp.f32 %v3095_v45 }
 0xf9a   :  { %v4631_v23 = vpop.eup %4630  ;;  %v3092_v21 = vadd.f32 1.0, %v4629_v22 }
 0xf9b   :  { %v4633_v39 = vpop.eup %4632  ;;  %v3097_v61 = vadd.f32 1.0, %v4631_v23  ;;  %4648 = vrcp.f32 %v3096_v18 }
 0xf9c   :  { %v3090_v40 = vadd.f32 1.0, %v4633_v39  ;;  %v4635_v50 = vpop.eup %4634 }
 0xf9d   :  { %4650 = vrcp.f32 %v3097_v61  ;;  %v4637_v59 = vpop.eup %4636 }
 0xf9e   :  { %4652 = vrcp.f32 %v3094_v25  ;;  %v4639_v4 = vpop.eup %4638 }
 0xf9f   :  { %4654 = vrcp.f32 %v3093_v54  ;;  %v4641_v8 = vpop.eup %4640 }
 0xfa0   :  { %4656 = vrcp.f32 %v3092_v21  ;;  %v4643_v9 = vpop.eup %4642 }
 0xfa1   :  { %4658 = vrcp.f32 %v3091_v56  ;;  %v4645_v10 = vpop.eup %4644 }
 0xfa2   :  { %4660 = vrcp.f32 %v3090_v40 }
 0xfa3   :  { %4662 = vtanh.f32 %v3014_v30 }
 0xfa4   :  { %4664 = vtanh.f32 %v3012_v47 }
 0xfa6   :  { %v4647_v24 = vpop.eup %4646 }
 0xfa7   :  { %v3119_v63 = vmul.f32 %v4647_v24, %v4641_v8 }
 0xfa8   :  { %v4649_v15 = vpop.eup %4648 }
 0xfa9   :  { %v3120_v28 = vmul.f32 %v4649_v15, %v4643_v9 }
 0xfaa   :  { %v4651_v36 = vpop.eup %4650 }
 0xfab   :  { %v4653_v29 = vpop.eup %4652  ;;  %v3121_v1 = vmul.f32 %v4651_v36, %v4645_v10 }
 0xfac   :  { %v4655_v5 = vpop.eup %4654  ;;  %v3118_v42 = vmul.f32 %v4653_v29, %v4639_v4 }
 0xfad   :  { %v4657_v0 = vpop.eup %4656  ;;  %3163 = vmatprep.subr.mxu0 %v3121_v1  ;;  %v3117_v37 = vmul.f32 %v4655_v5, %v4637_v59 }
 0xfae   :  { %v4659_v19 = vpop.eup %4658  ;;  %3164 = vmatpush1.msra.mxu0 %v3120_v28  ;;  %v3116_v6 = vmul.f32 %v4657_v0, %v4635_v50 }
 0xfaf   :  { %v4661_v12 = vpop.eup %4660  ;;  %3165 = vmatprep.subr.mxu0 %v3119_v63 }
 0xfb0   :  { %v4663_v32 = vpop.eup %4662  ;;  %3166 = vmatpush1.msra.mxu0 %v3118_v42 }
 0xfb1   :  { %v4665_v7 = vpop.eup %4664  ;;  %3167 = vmatprep.subr.mxu0 %v3117_v37  ;;  %v3115_v20 = vmul.f32 %v4663_v32, %v4659_v19 }
 0xfb2   :  { %3168 = vmatpush1.msra.mxu0 %v3116_v6  ;;  %v3114_v35 = vmul.f32 %v4665_v7, %v4661_v12 }
 0xfb3   :  { %3169 = vmatprep.subr.mxu0 %v3115_v20 }
 0xfb4   :  { %3170 = vmatpush1.msra.mxu0 %v3114_v35 }
 0xfb5   :  { %4353 = vmatmul.mubr.msk.f32.vlgmr.msra.gmra.mxu0 %vm663_vm0, %v4349_v60 }
 0xfb6   :  { %3209 = vmatprep.mubr.f32.mxu0 %v6621_v13 }
 0xfb9   :  { %4354 = vmatmul.mubr.msk.f32.gmra.mxu0 %vm663_vm0, %v4350_v14 }
 0xfba   :  { %3215 = vmatprep.mubr.f32.mxu0 %v6621_v13 }
 0xfbd   :  { %4355 = vmatmul.mubr.msk.f32.gmra.mxu0 %vm663_vm0, %v4351_v44 }
 0xfbe   :  { %3221 = vmatprep.mubr.f32.mxu0 %v6621_v13 }
 0xfc1   :  { %4356 = vmatmul.mubr.msk.f32.gmra.mxu0 %vm663_vm0, %v4352_v11 }
 0xfc2   :  { %3527 = vmatprep.mubr.f32.mxu0 %v6621_v13 }
0x1075   :  { %v3205_v45 = vpop.f32.mrf.mxu0 }
0x1076   :  { %v6221_v53 = vadd.f32 %v3205_v45, %v6003_v33  ;;  %v3228_v47 = vadd.f32 %v3205_v45, %v6053_v49  ;;  %v4364_v49 = vld [vmem:[%s6554_s3 + $0x178] sm:$0xff] }
0x1077   :  { %v3207_v22 = vpop.f32.mrf.mxu0 }
0x1078   :  { %v6224_v18 = vadd.f32 %v3207_v22, %v6006_v51 }
0x1079   :  { %v3211_v23 = vpop.f32.mrf.mxu0 }
0x107a   :  { %v6227_v25 = vadd.f32 %v3211_v23, %v6009_v34  ;;  %v3230_v31 = vadd.f32 %v3211_v23, %v6045_v48  ;;  %v4362_v48 = vld [vmem:[%s6554_s3 + $0x168] sm:$0xff] }
0x107b   :  { %v3213_v39 = vpop.f32.mrf.mxu0 }
0x107c   :  { %v6230_v54 = vadd.f32 %v3213_v39, %v6012_v43 }
0x107d   :  { %v3217_v61 = vpop.f32.mrf.mxu0 }
0x107e   :  { %v6233_v21 = vadd.f32 %v3217_v61, %v6015_v46  ;;  %v3232_v46 = vadd.f32 %v3217_v61, %v6037_v41  ;;  %v4360_v41 = vld [vmem:[%s6554_s3 + $0x158] sm:$0xff] }
0x107f   :  { %v3219_v56 = vpop.f32.mrf.mxu0 }
0x1080   :  { %v6236_v33 = vadd.f32 %v3219_v56, %v6018_v16  ;;  %v3233_v30 = vadd.f32 %v3219_v56, %v6033_v38  ;;  %v3231_v16 = vadd.f32 %v3213_v39, %v6041_v55  ;;  %v4359_v38 = vld [vmem:[%s6554_s3 + $0x150] sm:$0xff]  ;;  %v4361_v55 = vld [vmem:[%s6554_s3 + $0x160] sm:$0xff] }
0x1081   :  { %v3223_v40 = vpop.f32.mrf.mxu0 }
0x1082   :  { %v6239_v51 = vadd.f32 %v3223_v40, %v6021_v27  ;;  %v3234_v43 = vadd.f32 %v3223_v40, %v6030_v52  ;;  %v3229_v27 = vadd.f32 %v3207_v22, %v6049_v62  ;;  %v4358_v52 = vld [vmem:[%s6554_s3 + $0x148] sm:$0xff]  ;;  %v4363_v62 = vld [vmem:[%s6554_s3 + $0x170] sm:$0xff] }
0x1083   :  { %v6241_v58 = vpop.f32.mrf.mxu0 }
0x1084   :  { %v3235_v34 = vadd.f32 %v6241_v58, %v6027_v26  ;;  %v4357_v26 = vld [vmem:[%s6554_s3 + $0x140] sm:$0xff] }
0x1086   :  { %3301 = vmatprep.subr.mxu1 %v3235_v34 }
0x1087   :  { %3302 = vmatpush1.msra.mxu1 %v3234_v43 }
0x1088   :  { %3303 = vmatprep.subr.mxu1 %v3233_v30 }
0x1089   :  { %3304 = vmatpush1.msra.mxu1 %v3232_v46 }
0x108a   :  { %3305 = vmatprep.subr.mxu1 %v3231_v16 }
0x108b   :  { %3306 = vmatpush1.msra.mxu1 %v3230_v31 }
0x108c   :  { %3307 = vmatprep.subr.mxu1 %v3229_v27 }
0x108d   :  { %3308 = vmatpush1.msra.mxu1 %v3228_v47 }
0x108e   :  { %4365 = vmatmul.mubr.msk.f32.vlgmr.msra.gmra.mxu1 %vm663_vm0, %v4357_v26 }
0x108f   :  { %3347 = vmatprep.mubr.f32.mxu1 %v6621_v13 }
0x1092   :  { %4366 = vmatmul.mubr.msk.f32.gmra.mxu1 %vm663_vm0, %v4358_v52 }
0x1093   :  { %3353 = vmatprep.mubr.f32.mxu1 %v6621_v13 }
0x1096   :  { %4367 = vmatmul.mubr.msk.f32.gmra.mxu1 %vm663_vm0, %v4359_v38 }
0x1097   :  { %3359 = vmatprep.mubr.f32.mxu1 %v6621_v13 }
0x109a   :  { %4368 = vmatmul.mubr.msk.f32.gmra.mxu1 %vm663_vm0, %v4360_v41 }
0x109b   :  { %3365 = vmatprep.mubr.f32.mxu1 %v6621_v13 }
0x109e   :  { %4369 = vmatmul.mubr.msk.f32.gmra.mxu1 %vm663_vm0, %v4361_v55 }
0x109f   :  { %3371 = vmatprep.mubr.f32.mxu1 %v6621_v13 }
0x10a2   :  { %4370 = vmatmul.mubr.msk.f32.gmra.mxu1 %vm663_vm0, %v4362_v48  ;;  %v4373_v48 = vld [vmem:[%s6557_s4 + $0x140] sm:$0xff] }
0x10a3   :  { %3377 = vmatprep.mubr.f32.mxu1 %v6621_v13 }
0x10a6   :  { %4371 = vmatmul.mubr.msk.f32.gmra.mxu1 %vm663_vm0, %v4363_v62  ;;  %v4376_v62 = vld [vmem:[%s6557_s4 + $0x158] sm:$0xff] }
0x10a7   :  { %3383 = vmatprep.mubr.f32.mxu1 %v6621_v13 }
0x10aa   :  { %4372 = vmatmul.mubr.msk.f32.gmra.mxu1 %vm663_vm0, %v4364_v49  ;;  %v4377_v49 = vld [vmem:[%s6557_s4 + $0x160] sm:$0xff] }
0x10ab   :  { %3721 = vmatprep.mubr.f32.mxu1 %v6621_v13 }
0x114e   :  { %v3343_v50 = vpop.f32.mrf.mxu1 }
0x1150   :  { %v3345_v59 = vpop.f32.mrf.mxu1 }
0x1152   :  { %v3349_v4 = vpop.f32.mrf.mxu1 }
0x1154   :  { %v3351_v8 = vpop.f32.mrf.mxu1 }
0x1156   :  { %v3355_v9 = vpop.f32.mrf.mxu1 }
0x1157   :  { %3394 = vrot.lane.b32.xlu0 %v3355_v9, %s4716_s12 }
0x1158   :  { %v3357_v10 = vpop.f32.mrf.mxu1 }
0x1159   :  { %3402 = vrot.lane.b32.xlu1 %v3357_v10, %s4716_s12 }
0x115a   :  { %v3361_v24 = vpop.f32.mrf.mxu1 }
0x115b   :  { %3396 = vrot.lane.b32.xlu0 %v3361_v24, %s4716_s12 }
0x115c   :  { %v3363_v15 = vpop.f32.mrf.mxu1 }
0x115d   :  { %3404 = vrot.lane.b32.xlu1 %v3363_v15, %s4716_s12 }
0x115e   :  { %v3367_v36 = vpop.f32.mrf.mxu1 }
0x115f   :  { %3392 = vrot.lane.b32.xlu0 %v3349_v4, %s4716_s12  ;;  %v4380_v4 = vld [vmem:[%s6557_s4 + $0x178] sm:$0xff] }
0x1160   :  { %v3369_v29 = vpop.f32.mrf.mxu1 }
0x1161   :  { %3400 = vrot.lane.b32.xlu1 %v3351_v8, %s4716_s12 }
0x1162   :  { %v3373_v1 = vpop.f32.mrf.mxu1 }
0x1163   :  { %3390 = vrot.lane.b32.xlu0 %v3343_v50, %s4716_s12  ;;  %v4378_v50 = vld [vmem:[%s6557_s4 + $0x168] sm:$0xff] }
0x1164   :  { %v3375_v5 = vpop.f32.mrf.mxu1 }
0x1165   :  { %3398 = vrot.lane.b32.xlu1 %v3345_v59, %s4716_s12  ;;  %v4379_v59 = vld [vmem:[%s6557_s4 + $0x170] sm:$0xff] }
0x1166   :  { %v3379_v28 = vpop.f32.mrf.mxu1 }
0x1168   :  { %v3381_v0 = vpop.f32.mrf.mxu1 }
0x116a   :  { %v3385_v42 = vpop.f32.mrf.mxu1 }
0x116c   :  { %v3387_v7 = vpop.f32.mrf.mxu1 }
0x11c9   :  { %v3395_v63 = vpop.permute.xlu0 %3394 }
0x11cb   :  { %v3403_v19 = vpop.permute.xlu1 %3402 }
0x11cc   :  { %v3408_v37 = vsel %vm817_vm2, %v3395_v63, %v3403_v19  ;;  %v3412_v32 = vsel %vm817_vm2, %v3403_v19, %v3395_v63  ;;  %v6655_v63 = vld [vmem:[#allocation46_spill] sm:$0xff] }
0x11cd   :  { %v3397_v12 = vpop.permute.xlu0 %3396  ;;  %v3419_v60 = vsel %vm4914_vm3, 0.0, %v3408_v37  ;;  %v3418_v45 = vsel %vm653_vm4, 0.0, %v3412_v32 }
0x11ce   :  { %v3427_v61 = vadd.f32 %v3419_v60, %v3381_v0  ;;  %v3426_v34 = vadd.f32 %v3418_v45, %v3379_v28 }
0x11cf   :  { %v3405_v6 = vpop.permute.xlu1 %3404 }
0x11d0   :  { %v3409_v20 = vsel %vm817_vm2, %v3397_v12, %v3405_v6  ;;  %v3413_v35 = vsel %vm817_vm2, %v3405_v6, %v3397_v12  ;;  %v6656_v12 = vld [vmem:[#allocation48_spill] sm:$0xff] }
0x11d1   :  { %v3420_v14 = vsel %vm653_vm4, 0.0, %v3413_v35  ;;  %v3393_v44 = vpop.permute.xlu0 %3392  ;;  %v3421_v11 = vsel %vm4914_vm3, 0.0, %v3409_v20  ;;  %v6658_v35 = vld [vmem:[#allocation47_spill] sm:$0xff] }
0x11d2   :  { %v3428_v22 = vadd.f32 %v3420_v14, %v3385_v42  ;;  %v3429_v23 = vadd.f32 %v3421_v11, %v3387_v7  ;;  %v6657_v7 = vld [vmem:[#allocation49_spill] sm:$0xff]  ;;  %v6659_v11 = vld [vmem:[#allocation50_spill] sm:$0xff] }
0x11d3   :  { %v3401_v39 = vpop.permute.xlu1 %3400 }
0x11d4   :  { %v3407_v56 = vsel %vm817_vm2, %v3393_v44, %v3401_v39  ;;  %v3411_v40 = vsel %vm817_vm2, %v3401_v39, %v3393_v44  ;;  %3487 = vmatprep.subr.mxu0 %v3429_v23 }
0x11d5   :  { %v3416_v43 = vsel %vm653_vm4, 0.0, %v3411_v40  ;;  %v3417_v30 = vsel %vm4914_vm3, 0.0, %v3407_v56  ;;  %3488 = vmatpush1.msra.mxu0 %v3428_v22  ;;  %v3391_v31 = vpop.permute.xlu0 %3390  ;;  %v6660_v22 = vld [vmem:[#allocation45_spill] sm:$0xff]  ;;  %v6661_v40 = vld [vmem:[#allocation51_spill] sm:$0xff] }
0x11d6   :  { %v3424_v46 = vadd.f32 %v3416_v43, %v3373_v1  ;;  %v3425_v16 = vadd.f32 %v3417_v30, %v3375_v5  ;;  %3489 = vmatprep.subr.mxu0 %v3427_v61 }
0x11d7   :  { %v3399_v27 = vpop.permute.xlu1 %3398  ;;  %3490 = vmatpush1.msra.mxu0 %v3426_v34 }
0x11d8   :  { %v3406_v47 = vsel %vm817_vm2, %v3391_v31, %v3399_v27  ;;  %v3410_v26 = vsel %vm817_vm2, %v3399_v27, %v3391_v31  ;;  %3491 = vmatprep.subr.mxu0 %v3425_v16  ;;  %v6662_v16 = vld [vmem:[#allocation52_spill] sm:$0xff] }
0x11d9   :  { %v3414_v52 = vsel %vm653_vm4, 0.0, %v3410_v26  ;;  %v3415_v38 = vsel %vm4914_vm3, 0.0, %v3406_v47  ;;  %3492 = vmatpush1.msra.mxu0 %v3424_v46  ;;  %v6663_v26 = vld [vmem:[#allocation39_spill] sm:$0xff] }
0x11da   :  { %v3422_v41 = vadd.f32 %v3414_v52, %v3367_v36  ;;  %v3423_v55 = vadd.f32 %v3415_v38, %v3369_v29  ;;  %v6664_v38 = vld [vmem:[#allocation40_spill] sm:$0xff] }
0x11dc   :  { %3493 = vmatprep.subr.mxu0 %v3423_v55  ;;  %v6665_v55 = vld [vmem:[#allocation41_spill] sm:$0xff] }
0x11dd   :  { %3494 = vmatpush1.msra.mxu0 %v3422_v41 }
0x11de   :  { %4381 = vmatmul.mubr.msk.f32.vlgmr.msra.gmra.mxu0 %vm663_vm0, %v4373_v48 }
0x11df   :  { %3533 = vmatprep.mubr.f32.mxu0 %v6621_v13 }
0x11e2   :  { %4382 = vmatmul.mubr.msk.f32.gmra.mxu0 %vm663_vm0, %v4374_v57 }
0x11e3   :  { %3539 = vmatprep.mubr.f32.mxu0 %v6621_v13 }
0x11e6   :  { %4383 = vmatmul.mubr.msk.f32.gmra.mxu0 %vm663_vm0, %v4375_v3  ;;  %v6666_v3 = vld [vmem:[#allocation42_spill] sm:$0xff] }
0x11e7   :  { %3545 = vmatprep.mubr.f32.mxu0 %v6621_v13 }
0x11ea   :  { %4384 = vmatmul.mubr.msk.f32.gmra.mxu0 %vm663_vm0, %v4376_v62 }
0x11eb   :  { %3551 = vmatprep.mubr.f32.mxu0 %v6621_v13 }
0x11ee   :  { %4385 = vmatmul.mubr.msk.f32.gmra.mxu0 %vm663_vm0, %v4377_v49 }
0x11ef   :  { %3557 = vmatprep.mubr.f32.mxu0 %v6621_v13 }
0x11f2   :  { %4386 = vmatmul.mubr.msk.f32.gmra.mxu0 %vm663_vm0, %v4378_v50  ;;  %v6667_v50 = vld [vmem:[#allocation43_spill] sm:$0xff] }
0x11f3   :  { %3563 = vmatprep.mubr.f32.mxu0 %v6621_v13 }
0x11f6   :  { %4387 = vmatmul.mubr.msk.f32.gmra.mxu0 %vm663_vm0, %v4379_v59 }
0x11f7   :  { %3569 = vmatprep.mubr.f32.mxu0 %v6621_v13 }
0x11fa   :  { %4388 = vmatmul.mubr.msk.f32.gmra.mxu0 %vm663_vm0, %v4380_v4 }
0x11fb   :  { %3858 = vmatprep.mubr.f32.mxu0 %v6621_v13 }
0x129e   :  { %v6372_v8 = vpop.f32.mrf.mxu0 }
0x12a0   :  { %v6374_v9 = vpop.f32.mrf.mxu0 }
0x12a2   :  { %v3535_v10 = vpop.f32.mrf.mxu0 }
0x12a3   :  { %v3536_v52 = vadd.f32 %v3535_v10, %v6663_v26 }
0x12a4   :  { %v3537_v24 = vpop.f32.mrf.mxu0 }
0x12a5   :  { %v3538_v41 = vadd.f32 %v3537_v24, %v6664_v38 }
0x12a6   :  { %v3541_v15 = vpop.f32.mrf.mxu0 }
0x12a7   :  { %v3542_v48 = vadd.f32 %v3541_v15, %v6665_v55  ;;  %v4398_v55 = vld [vmem:[%s6558_s6 + $0xa8] sm:$0xff] }
0x12a8   :  { %v3543_v36 = vpop.f32.mrf.mxu0 }
0x12a9   :  { %v3544_v62 = vadd.f32 %v3543_v36, %v6666_v3 }
0x12aa   :  { %v3547_v29 = vpop.f32.mrf.mxu0 }
0x12ab   :  { %v3548_v59 = vadd.f32 %v3547_v29, %v6667_v50 }
0x12ac   :  { %v3549_v1 = vpop.f32.mrf.mxu0 }
0x12ae   :  { %v3553_v5 = vpop.f32.mrf.mxu0 }
0x12af   :  { %v3554_v23 = vadd.f32 %v3553_v5, %v6660_v22  ;;  %v6668_v5 = vld [vmem:[#allocation44_spill] sm:$0xff] }
0x12b0   :  { %v3555_v28 = vpop.f32.mrf.mxu0 }
0x12b1   :  { %v3556_v19 = vadd.f32 %v3555_v28, %v6655_v63  ;;  %v4389_v27 = vmul.f32 -1.442695, %v3554_v23  ;;  %v3550_v28 = vadd.f32 %v3549_v1, %v6668_v5 }
0x12b2   :  { %v3559_v0 = vpop.f32.mrf.mxu0 }
0x12b3   :  { %v4390_v6 = vmul.f32 -1.442695, %v3556_v19  ;;  %v3560_v60 = vadd.f32 %v3559_v0, %v6658_v35 }
0x12b4   :  { %v3561_v42 = vpop.f32.mrf.mxu0 }
0x12b5   :  { %v3562_v37 = vadd.f32 %v3561_v42, %v6656_v12  ;;  %4666 = vpow2.f32 %v4390_v6  ;;  %v4391_v43 = vmul.f32 -1.442695, %v3560_v60  ;;  %v6669_v6 = vld [vmem:[#allocation38_spill] sm:$0xff] }
0x12b6   :  { %v3565_v32 = vpop.f32.mrf.mxu0 }
0x12b7   :  { %v3566_v20 = vadd.f32 %v3565_v32, %v6657_v7  ;;  %v4392_v14 = vmul.f32 -1.442695, %v3562_v37  ;;  %v3532_v7 = vadd.f32 %v6374_v9, %v6669_v6 }
0x12b8   :  { %v3567_v44 = vpop.f32.mrf.mxu0 }
0x12b9   :  { %v3568_v45 = vadd.f32 %v3567_v44, %v6659_v11  ;;  %v4393_v39 = vmul.f32 -1.442695, %v3566_v20  ;;  %4668 = vpow2.f32 %v4392_v14  ;;  %v6670_v20 = vld [vmem:[#allocation37_spill] sm:$0xff] }
0x12ba   :  { %v3571_v61 = vpop.f32.mrf.mxu0  ;;  %v3530_v35 = vadd.f32 %v6372_v8, %v6670_v20 }
0x12bb   :  { %v4394_v56 = vmul.f32 -1.442695, %v3568_v45  ;;  %v3572_v34 = vadd.f32 %v3571_v61, %v6661_v40 }
0x12bc   :  { %v3573_v30 = vpop.f32.mrf.mxu0 }
0x12bd   :  { %4670 = vpow2.f32 %v4394_v56  ;;  %v4395_v46 = vmul.f32 -1.442695, %v3572_v34  ;;  %v3574_v31 = vadd.f32 %v3573_v30, %v6662_v16 }
0x12be   :  { %4672 = vpow2.f32 %v4393_v39 }
0x12bf   :  { %4674 = vpow2.f32 %v4395_v46  ;;  %v4396_v47 = vmul.f32 -1.442695, %v3574_v31 }
0x12c0   :  { %4676 = vpow2.f32 %v4391_v43 }
0x12c1   :  { %4678 = vpow2.f32 %v4396_v47 }
0x12c2   :  { %4680 = vpow2.f32 %v4389_v27  ;;  %v4667_v57 = vpop.eup %4666 }
0x12c3   :  { %4682 = vtanh.f32 %v3536_v52  ;;  %v3609_v32 = vadd.f32 1.0, %v4667_v57  ;;  %v4400_v57 = vld [vmem:[%s6558_s6 + $0xb8] sm:$0xff] }
0x12c4   :  { %4684 = vtanh.f32 %v3538_v41  ;;  %v4397_v41 = vld [vmem:[%s6558_s6 + $0xa0] sm:$0xff] }
0x12c5   :  { %4686 = vtanh.f32 %v3542_v48  ;;  %v4399_v48 = vld [vmem:[%s6558_s6 + $0xb0] sm:$0xff] }
0x12c6   :  { %v4669_v49 = vpop.eup %4668  ;;  %4688 = vtanh.f32 %v3544_v62 }
0x12c7   :  { %4690 = vtanh.f32 %v3548_v59  ;;  %v3611_v12 = vadd.f32 1.0, %v4669_v49  ;;  %v6671_v59 = vld [vmem:[#allocation3_spill] sm:$0xff] }
0x12c8   :  { %4692 = vtanh.f32 %v3550_v28 }
0x12ca   :  { %v4671_v4 = vpop.eup %4670 }
0x12cb   :  { %v4673_v0 = vpop.eup %4672  ;;  %v3613_v63 = vadd.f32 1.0, %v4671_v4  ;;  %v6672_v4 = vld [vmem:[#allocation4_spill] sm:$0xff] }
0x12cc   :  { %v4675_v19 = vpop.eup %4674  ;;  %v3612_v42 = vadd.f32 1.0, %v4673_v0  ;;  %v1689_v5 = vadd.f32 %v6672_v4, %v6671_v59 }
0x12cd   :  { %v4677_v10 = vpop.eup %4676  ;;  %v3614_v24 = vadd.f32 1.0, %v4675_v19  ;;  %4694 = vrcp.f32 %v3613_v63 }
0x12ce   :  { %v4679_v15 = vpop.eup %4678  ;;  %v3610_v29 = vadd.f32 1.0, %v4677_v10  ;;  %v2207_v0 = vadd.f32 %v5805_v17, %v1689_v5 }
0x12cf   :  { %v4681_v36 = vpop.eup %4680  ;;  %v3615_v37 = vadd.f32 1.0, %v4679_v15  ;;  %4696 = vrcp.f32 %v3614_v24 }
0x12d0   :  { %v3608_v1 = vadd.f32 1.0, %v4681_v36  ;;  %v4683_v60 = vpop.eup %4682  ;;  %v2725_v19 = vadd.f32 %v6023_v2, %v2207_v0  ;;  %v3908_v0 = vld [vmem:[%s6560_s8 + $0x8] sm:$0xff] }
0x12d1   :  { %4698 = vrcp.f32 %v3615_v37  ;;  %v4685_v14 = vpop.eup %4684 }
0x12d2   :  { %4700 = vrcp.f32 %v3612_v42  ;;  %v4687_v44 = vpop.eup %4686  ;;  %v3243_v24 = vadd.f32 %v6241_v58, %v2725_v19  ;;  %v3910_v19 = vld [vmem:[%s6560_s8 + $0x18] sm:$0xff] }
0x12d3   :  { %4702 = vrcp.f32 %v3611_v12  ;;  %v4689_v11 = vpop.eup %4688 }
0x12d4   :  { %4704 = vrcp.f32 %v3610_v29  ;;  %v4691_v45 = vpop.eup %4690 }
0x12d5   :  { %4706 = vrcp.f32 %v3609_v32  ;;  %v4693_v22 = vpop.eup %4692 }
0x12d6   :  { %4708 = vrcp.f32 %v3608_v1 }
0x12d7   :  { %4710 = vtanh.f32 %v3532_v7 }
0x12d8   :  { %4712 = vtanh.f32 %v3530_v35  ;;  %v3758_v35 = vld [vmem:[%s6559_s7 + $0x20] sm:$0xff] }
0x12da   :  { %v4695_v23 = vpop.eup %4694 }
0x12db   :  { %v3637_v8 = vmul.f32 %v4695_v23, %v4689_v11 }
0x12dc   :  { %v4697_v39 = vpop.eup %4696 }
0x12dd   :  { %v3638_v34 = vmul.f32 %v4697_v39, %v4691_v45 }
0x12de   :  { %v4699_v61 = vpop.eup %4698 }
0x12df   :  { %v4701_v56 = vpop.eup %4700  ;;  %v3639_v9 = vmul.f32 %v4699_v61, %v4693_v22 }
0x12e0   :  { %v4703_v40 = vpop.eup %4702  ;;  %v3636_v46 = vmul.f32 %v4701_v56, %v4687_v44  ;;  %v3761_v44 = vld [vmem:[%s6559_s7 + $0x38] sm:$0xff] }
0x12e1   :  { %v4705_v43 = vpop.eup %4704  ;;  %3681 = vmatprep.subr.mxu1 %v3639_v9  ;;  %v3635_v31 = vmul.f32 %v4703_v40, %v4685_v14  ;;  %v3760_v14 = vld [vmem:[%s6559_s7 + $0x30] sm:$0xff] }
0x12e2   :  { %v4707_v30 = vpop.eup %4706  ;;  %3682 = vmatpush1.msra.mxu1 %v3638_v34  ;;  %v3634_v47 = vmul.f32 %v4705_v43, %v4683_v60  ;;  %v3759_v60 = vld [vmem:[%s6559_s7 + $0x28] sm:$0xff] }
0x12e3   :  { %v4709_v16 = vpop.eup %4708  ;;  %3683 = vmatprep.subr.mxu1 %v3637_v8 }
0x12e4   :  { %v4711_v27 = vpop.eup %4710  ;;  %3684 = vmatpush1.msra.mxu1 %v3636_v46 }
0x12e5   :  { %v4713_v26 = vpop.eup %4712  ;;  %3685 = vmatprep.subr.mxu1 %v3635_v31  ;;  %v3633_v52 = vmul.f32 %v4711_v27, %v4707_v30 }
0x12e6   :  { %3686 = vmatpush1.msra.mxu1 %v3634_v47  ;;  %v3632_v38 = vmul.f32 %v4713_v26, %v4709_v16 }
0x12e7   :  { %3687 = vmatprep.subr.mxu1 %v3633_v52 }
0x12e8   :  { %3688 = vmatpush1.msra.mxu1 %v3632_v38 }
0x12e9   :  { %4401 = vmatmul.mubr.msk.f32.vlgmr.msra.gmra.mxu1 %vm663_vm0, %v4397_v41 }
0x12ea   :  { %3727 = vmatprep.mubr.f32.mxu1 %v6621_v13 }
0x12ed   :  { %4402 = vmatmul.mubr.msk.f32.gmra.mxu1 %vm663_vm0, %v4398_v55 }
0x12ee   :  { %3733 = vmatprep.mubr.f32.mxu1 %v6621_v13 }
0x12f1   :  { %4403 = vmatmul.mubr.msk.f32.gmra.mxu1 %vm663_vm0, %v4399_v48 }
0x12f2   :  { %3739 = vmatprep.mubr.f32.mxu1 %v6621_v13 }
0x12f5   :  { %4404 = vmatmul.mubr.msk.f32.gmra.mxu1 %vm663_vm0, %v4400_v57 }
0x12f6   :  { %4020 = vmatprep.mubr.f32.mxu1 %v6621_v13 }
0x13a9   :  { %v3723_v3 = vpop.f32.mrf.mxu1 }
0x13aa   :  { %v3746_v58 = vadd.f32 %v3723_v3, %v6221_v53  ;;  %v3755_v53 = vld [vmem:[%s6559_s7 + $0x8] sm:$0xff] }
0x13ab   :  { %v3725_v62 = vpop.f32.mrf.mxu1 }
0x13ac   :  { %v3747_v6 = vadd.f32 %v3725_v62, %v6224_v18  ;;  %v3756_v18 = vld [vmem:[%s6559_s7 + $0x10] sm:$0xff] }
0x13ad   :  { %v3729_v49 = vpop.f32.mrf.mxu1 }
0x13ae   :  { %v3748_v1 = vadd.f32 %v3729_v49, %v6227_v25  ;;  %v3763_v20 = vmax.f32 %v3747_v6, 0.0  ;;  %v3754_v25 = vld [vmem:[%s6559_s7] sm:$0xff] }
0x13af   :  { %v3731_v50 = vpop.f32.mrf.mxu1 }
0x13b0   :  { %v3749_v29 = vadd.f32 %v3731_v50, %v6230_v54  ;;  %v3757_v54 = vld [vmem:[%s6559_s7 + $0x18] sm:$0xff] }
0x13b1   :  { %v3735_v28 = vpop.f32.mrf.mxu1 }
0x13b2   :  { %v3750_v37 = vadd.f32 %v3735_v28, %v6233_v21  ;;  %v3762_v21 = vmax.f32 %v3746_v58, 0.0  ;;  %v3907_v28 = vld [vmem:[%s6560_s8] sm:$0xff] }
0x13b3   :  { %v3737_v63 = vpop.f32.mrf.mxu1 }
0x13b4   :  { %v3751_v36 = vadd.f32 %v3737_v63, %v6236_v33  ;;  %v3766_v7 = vmax.f32 %v3750_v37, 0.0  ;;  %v3764_v33 = vmax.f32 %v3748_v1, 0.0  ;;  %v3909_v63 = vld [vmem:[%s6560_s8 + $0x10] sm:$0xff] }
0x13b5   :  { %v3741_v10 = vpop.f32.mrf.mxu1 }
0x13b6   :  { %v3752_v15 = vadd.f32 %v3741_v10, %v6239_v51  ;;  %v3767_v2 = vmax.f32 %v3751_v36, 0.0  ;;  %v3765_v51 = vmax.f32 %v3749_v29, 0.0  ;;  %v3911_v10 = vld [vmem:[%s6560_s8 + $0x20] sm:$0xff] }
0x13b7   :  { %v3743_v42 = vpop.f32.mrf.mxu1 }
0x13b8   :  { %v3753_v12 = vadd.f32 %v3743_v42, %v3243_v24  ;;  %v3768_v17 = vmax.f32 %v3752_v15, 0.0  ;;  %v3912_v24 = vld [vmem:[%s6560_s8 + $0x28] sm:$0xff]  ;;  %v3913_v15 = vld [vmem:[%s6560_s8 + $0x30] sm:$0xff]  ;;  %v3914_v42 = vld [vmem:[%s6560_s8 + $0x38] sm:$0xff] }
0x13ba   :  { %v3769_v32 = vmax.f32 %v3753_v12, 0.0 }
0x13bc   :  { %3818 = vmatprep.subr.mxu0 %v3769_v32 }
0x13bd   :  { %3819 = vmatpush1.msra.mxu0 %v3768_v17 }
0x13be   :  { %3820 = vmatprep.subr.mxu0 %v3767_v2 }
0x13bf   :  { %3821 = vmatpush1.msra.mxu0 %v3766_v7 }
0x13c0   :  { %3822 = vmatprep.subr.mxu0 %v3765_v51 }
0x13c1   :  { %3823 = vmatpush1.msra.mxu0 %v3764_v33 }
0x13c2   :  { %3824 = vmatprep.subr.mxu0 %v3763_v20 }
0x13c3   :  { %3825 = vmatpush1.msra.mxu0 %v3762_v21 }
0x13c4   :  { %4405 = vmatmul.mubr.msk.f32.vlgmr.msra.gmra.mxu0 %vm663_vm0, %v3754_v25 }
0x13c5   :  { %3864 = vmatprep.mubr.f32.mxu0 %v6621_v13 }
0x13c8   :  { %4406 = vmatmul.mubr.msk.f32.gmra.mxu0 %vm663_vm0, %v3755_v53 }
0x13c9   :  { %3870 = vmatprep.mubr.f32.mxu0 %v6621_v13 }
0x13cc   :  { %4407 = vmatmul.mubr.msk.f32.gmra.mxu0 %vm663_vm0, %v3756_v18 }
0x13cd   :  { %3876 = vmatprep.mubr.f32.mxu0 %v6621_v13 }
0x13d0   :  { %4408 = vmatmul.mubr.msk.f32.gmra.mxu0 %vm663_vm0, %v3757_v54 }
0x13d1   :  { %3882 = vmatprep.mubr.f32.mxu0 %v6621_v13 }
0x13d4   :  { %4409 = vmatmul.mubr.msk.f32.gmra.mxu0 %vm663_vm0, %v3758_v35 }
0x13d5   :  { %3888 = vmatprep.mubr.f32.mxu0 %v6621_v13 }
0x13d8   :  { %4410 = vmatmul.mubr.msk.f32.gmra.mxu0 %vm663_vm0, %v3759_v60 }
0x13d9   :  { %3894 = vmatprep.mubr.f32.mxu0 %v6621_v13 }
0x13dc   :  { %4411 = vmatmul.mubr.msk.f32.gmra.mxu0 %vm663_vm0, %v3760_v14 }
0x13dd   :  { %3900 = vmatprep.mubr.f32.mxu0 %v6621_v13 }
0x13e0   :  { %4412 = vmatmul.mubr.msk.f32.gmra.mxu0 %vm663_vm0, %v3761_v44 }
0x1484   :  { %v3860_v11 = vpop.f32.mrf.mxu0 }
0x1485   :  { %v3915_v5 = vmax.f32 %v3860_v11, 0.0 }
0x1486   :  { %v3862_v45 = vpop.f32.mrf.mxu0 }
0x1487   :  { %v3916_v4 = vmax.f32 %v3862_v45, 0.0 }
0x1488   :  { %v3866_v22 = vpop.f32.mrf.mxu0 }
0x1489   :  { %v3917_v59 = vmax.f32 %v3866_v22, 0.0 }
0x148a   :  { %v3868_v23 = vpop.f32.mrf.mxu0 }
0x148b   :  { %v3918_v50 = vmax.f32 %v3868_v23, 0.0 }
0x148c   :  { %v3872_v39 = vpop.f32.mrf.mxu0 }
0x148d   :  { %v3919_v49 = vmax.f32 %v3872_v39, 0.0 }
0x148e   :  { %v3874_v61 = vpop.f32.mrf.mxu0 }
0x148f   :  { %v3920_v62 = vmax.f32 %v3874_v61, 0.0 }
0x1490   :  { %v3878_v56 = vpop.f32.mrf.mxu0 }
0x1491   :  { %v3921_v3 = vmax.f32 %v3878_v56, 0.0 }
0x1492   :  { %v3880_v9 = vpop.f32.mrf.mxu0 }
0x1493   :  { %v3922_v57 = vmax.f32 %v3880_v9, 0.0 }
0x1494   :  { %v3884_v40 = vpop.f32.mrf.mxu0 }
0x1495   :  { %v3923_v48 = vmax.f32 %v3884_v40, 0.0 }
0x1496   :  { %v3886_v34 = vpop.f32.mrf.mxu0 }
0x1497   :  { %v3924_v55 = vmax.f32 %v3886_v34, 0.0 }
0x1498   :  { %v3890_v43 = vpop.f32.mrf.mxu0 }
0x1499   :  { %v3925_v41 = vmax.f32 %v3890_v43, 0.0 }
0x149a   :  { %v3892_v8 = vpop.f32.mrf.mxu0 }
0x149b   :  { %v3926_v38 = vmax.f32 %v3892_v8, 0.0 }
0x149c   :  { %v3896_v30 = vpop.f32.mrf.mxu0 }
0x149d   :  { %v3927_v52 = vmax.f32 %v3896_v30, 0.0 }
0x149e   :  { %v3898_v46 = vpop.f32.mrf.mxu0 }
0x149f   :  { %v3928_v26 = vmax.f32 %v3898_v46, 0.0 }
0x14a0   :  { %v3902_v16 = vpop.f32.mrf.mxu0 }
0x14a1   :  { %v3929_v47 = vmax.f32 %v3902_v16, 0.0 }
0x14a2   :  { %v3904_v31 = vpop.f32.mrf.mxu0 }
0x14a3   :  { %v3930_v27 = vmax.f32 %v3904_v31, 0.0 }
0x14a5   :  { %3972 = vmatprep.subr.mxu1 %v3930_v27 }
0x14a6   :  { %3973 = vmatpush1.msra.mxu1 %v3929_v47 }
0x14a7   :  { %3974 = vmatprep.subr.mxu1 %v3928_v26 }
0x14a8   :  { %3975 = vmatpush1.msra.mxu1 %v3927_v52 }
0x14a9   :  { %3976 = vmatprep.subr.mxu1 %v3926_v38 }
0x14aa   :  { %3977 = vmatpush1.msra.mxu1 %v3925_v41 }
0x14ab   :  { %3978 = vmatprep.subr.mxu1 %v3924_v55 }
0x14ac   :  { %3979 = vmatpush1.msra.mxu1 %v3923_v48 }
0x14ad   :  { %3980 = vmatprep.subr.mxu1 %v3922_v57 }
0x14ae   :  { %3981 = vmatpush1.msra.mxu1 %v3921_v3 }
0x14af   :  { %3982 = vmatprep.subr.mxu1 %v3920_v62 }
0x14b0   :  { %3983 = vmatpush1.msra.mxu1 %v3919_v49 }
0x14b1   :  { %3984 = vmatprep.subr.mxu1 %v3918_v50 }
0x14b2   :  { %3985 = vmatpush1.msra.mxu1 %v3917_v59 }
0x14b3   :  { %3986 = vmatprep.subr.mxu1 %v3916_v4 }
0x14b4   :  { %3987 = vmatpush1.msra.mxu1 %v3915_v5 }
0x14b5   :  { %4413 = vmatmul.mubr.msk.f32.vlgmr.msra.gmra.mxu1 %vm3931_vm5, %v3907_v28 }
0x14b6   :  { %4026 = vmatprep.mubr.f32.mxu1 %v6621_v13 }
0x14b9   :  { %4414 = vmatmul.mubr.msk.f32.gmra.mxu1 %vm3931_vm5, %v3908_v0 }
0x14ba   :  { %4032 = vmatprep.mubr.f32.mxu1 %v6621_v13 }
0x14bd   :  { %4415 = vmatmul.mubr.msk.f32.gmra.mxu1 %vm3931_vm5, %v3909_v63 }
0x14be   :  { %4038 = vmatprep.mubr.f32.mxu1 %v6621_v13 }
0x14c1   :  { %4416 = vmatmul.mubr.msk.f32.gmra.mxu1 %vm3931_vm5, %v3910_v19 }
0x14c2   :  { %4044 = vmatprep.mubr.f32.mxu1 %v6621_v13 }
0x14c5   :  { %4417 = vmatmul.mubr.msk.f32.gmra.mxu1 %vm3931_vm5, %v3911_v10 }
0x14c6   :  { %4050 = vmatprep.mubr.f32.mxu1 %v6621_v13 }
0x14c9   :  { %4418 = vmatmul.mubr.msk.f32.gmra.mxu1 %vm3931_vm5, %v3912_v24 }
0x14ca   :  { %4056 = vmatprep.mubr.f32.mxu1 %v6621_v13 }
0x14cd   :  { %4419 = vmatmul.mubr.msk.f32.gmra.mxu1 %vm3931_vm5, %v3913_v15 }
0x14ce   :  { %4062 = vmatprep.mubr.f32.mxu1 %v6621_v13 }
0x14d1   :  { %4420 = vmatmul.mubr.msk.f32.gmra.mxu1 %vm3931_vm5, %v3914_v42 }
0x1575   :  { %v4022_v36 = vpop.f32.mrf.mxu1 }
0x1576   :  { %4069 = vst [vmem:[%s6561_s9] sm:$0xff] %v4022_v36 }
0x1577   :  { %v4024_v12 = vpop.f32.mrf.mxu1 }
0x1578   :  { %4070 = vst [vmem:[%s6561_s9 + $0x8] sm:$0xff] %v4024_v12 }
0x1579   :  { %v4028_v37 = vpop.f32.mrf.mxu1 }
0x157a   :  { %4071 = vst [vmem:[%s6561_s9 + $0x10] sm:$0xff] %v4028_v37 }
0x157b   :  { %v4030_v13 = vpop.f32.mrf.mxu1 }
0x157c   :  { %4072 = vst [vmem:[%s6561_s9 + $0x18] sm:$0xff] %v4030_v13 }
0x157d   :  { %v4034_v29 = vpop.f32.mrf.mxu1 }
0x157e   :  { %4073 = vst [vmem:[%s6561_s9 + $0x20] sm:$0xff] %v4034_v29 }
0x157f   :  { %v4036_v32 = vpop.f32.mrf.mxu1 }
0x1580   :  { %4074 = vst [vmem:[%s6561_s9 + $0x28] sm:$0xff] %v4036_v32 }
0x1581   :  { %v4040_v1 = vpop.f32.mrf.mxu1 }
0x1582   :  { %4075 = vst [vmem:[%s6561_s9 + $0x30] sm:$0xff] %v4040_v1 }
0x1583   :  { %v4042_v17 = vpop.f32.mrf.mxu1 }
0x1584   :  { %4076 = vst [vmem:[%s6561_s9 + $0x38] sm:$0xff] %v4042_v17 }
0x1585   :  { %v4046_v6 = vpop.f32.mrf.mxu1 }
0x1586   :  { %4077 = vst [vmem:[%s6561_s9 + $0x40] sm:$0xff] %v4046_v6 }
0x1587   :  { %v4048_v2 = vpop.f32.mrf.mxu1 }
0x1588   :  { %4078 = vst [vmem:[%s6561_s9 + $0x48] sm:$0xff] %v4048_v2 }
0x1589   :  { %v4052_v58 = vpop.f32.mrf.mxu1 }
0x158a   :  { %4079 = vst [vmem:[%s6561_s9 + $0x50] sm:$0xff] %v4052_v58 }
0x158b   :  { %v4054_v7 = vpop.f32.mrf.mxu1 }
0x158c   :  { %4080 = vst [vmem:[%s6561_s9 + $0x58] sm:$0xff] %v4054_v7 }
0x158d   :  { %v4058_v51 = vpop.f32.mrf.mxu1 }
0x158e   :  { %4081 = vst [vmem:[%s6561_s9 + $0x60] sm:$0xff] %v4058_v51 }
0x158f   :  { %v4060_v33 = vpop.f32.mrf.mxu1 }
0x1590   :  { %4082 = vst [vmem:[%s6561_s9 + $0x68] sm:$0xff] %v4060_v33 }
0x1591   :  { %v4064_v20 = vpop.f32.mrf.mxu1 }
0x1592   :  { %4083 = vst [vmem:[%s6561_s9 + $0x70] sm:$0xff] %v4064_v20 }
0x1593   :  { %v4066_v21 = vpop.f32.mrf.mxu1 }
0x1594   :  { %4084 = vst [vmem:[%s6561_s9 + $0x78] sm:$0xff] %v4066_v21 }

</bundles_post_ra>
